<compile_context>
chip_gen: v5e
topology: v5e:2x2
jax: 0.10.0
libtpu: 0.0.40
codegen_flags: <defaults>
</compile_context>

<pallas_src>
import jax
import jax.numpy as jnp
import numpy as np
from jax.experimental import pallas as pl
from jax.experimental.pallas import tpu as pltpu

# ---- model hyper-parameters ---------------------------------------------------
HIDDEN = 32                       # per-node hidden size H
HEADS = 4
OUT_C = HIDDEN // HEADS           # per-head output channels
NUM_LAYERS = 3
N_NODES = 4                       # person, location, misc, org
LN_EPS = 1e-5
NEG_SLOPE = 0.2                   # GATConv LeakyReLU slope
REF_PREC = jax.lax.Precision.HIGHEST   # reference only (full f32)

FLAT = N_NODES * HIDDEN           # 128  lane-dense flattened node features
FT_W = N_NODES * FLAT             # 512  features tiled once per destination node
GRP = N_NODES * HEADS             # 16   (dst node, head) pairs per source block
LG_W = N_NODES * GRP              # 64   attention logits per sample
ZW = FT_W + LG_W                  # 576  fused projection output width


# ----------------------------- Pallas kernel ------------------------------------
def encoder_kernel(x_ref, temb_ref, wfuse_ref, eexp_ref, lnm_ref,
                   gatb_ref, lnw_ref, lnb_ref, w1_ref, b1_ref, w2_ref, b2_ref,
                   o_ref):
    f32 = jnp.float32
    bf16 = jnp.bfloat16

    # Small parameters loaded once (hoisted out of the layer loop).
    eexp = eexp_ref[...]          # [64, 512]  bf16 0/1 attention lane-expansion
    lnm = lnm_ref[...]            # [128, 128] bf16 block-diagonal per-node 1/32
    gatb = gatb_ref[...]          # [L, 128]   f32
    lnw = lnw_ref[...]            # [L, 128]
    lnb = lnb_ref[...]            # [L, 128]
    b1 = b1_ref[...]              # [L, 256]
    b2 = b2_ref[...]              # [L, 128]

    def bdot(act, w_bf16):
        # Single-pass bf16 MXU matmul with f32 accumulation.
        return jnp.dot(act.astype(bf16), w_bf16, preferred_element_type=f32)

    def group_ln(v, w_row, b_row):
        # Per-node LayerNorm over 32-lane groups, kept lane-dense: group mean /
        # variance via the block-diagonal 1/32 matrix (broadcast back by structure).
        mu = bdot(v, lnm)
        d = v - mu
        var = bdot(d * d, lnm)
        return d * jax.lax.rsqrt(var + LN_EPS) * w_row + b_row

    x = x_ref[...].astype(f32) + temb_ref[...]                    # [TB, 128]

    for l in range(NUM_LAYERS):
        # ---------------- GATConv over the dense 4-node graph (with self loops) --
        x_res = x
        # Fused projection: [TB,128] @ [128,576]
        #   z[:, j*128 + i*32 + h*8 + c] = feat(src=j, head=h, chan=c) (tiled over i)
        #   z[:, 512 + j*16 + i*4 + h]   = alpha_dst(i,h) + alpha_src(j,h)
        z = bdot(x, wfuse_ref[l])                                 # [TB, 576]

        # Attention, lane-dense over the full 64-logit slab.
        lg = z[:, FT_W:]                                          # [TB, 64]
        e = jnp.where(lg > 0, lg, NEG_SLOPE * lg)                 # LeakyReLU
        e0, e1, e2, e3 = [e[:, j * GRP:(j + 1) * GRP] for j in range(N_NODES)]
        m = jnp.maximum(jnp.maximum(e0, e1), jnp.maximum(e2, e3))  # max over src j
        p = jnp.exp(e - jnp.tile(m, (1, N_NODES)))                 # [TB, 64]
        s = (p[:, 0 * GRP:1 * GRP] + p[:, 1 * GRP:2 * GRP]
             + p[:, 2 * GRP:3 * GRP] + p[:, 3 * GRP:4 * GRP])      # [TB, 16]
        inv = pl.reciprocal(s, approx=True)                        # EUP reciprocal
        a = p * jnp.tile(inv, (1, N_NODES))                        # [TB, 64] attn

        # One wide 0/1 expansion: a[:, j*16+i*4+h] -> lanes j*128+i*32+h*8+[0..8)
        w_all = bdot(a, eexp)                                      # [TB, 512]
        wz = w_all * z[:, :FT_W]                                   # [TB, 512]
        gat = (gatb[l:l + 1]
               + wz[:, 0 * FLAT:1 * FLAT] + wz[:, 1 * FLAT:2 * FLAT]
               + wz[:, 2 * FLAT:3 * FLAT] + wz[:, 3 * FLAT:4 * FLAT])

        # residual + LayerNorm (same LN params used twice per layer, as in torch)
        x = group_ln(gat + x_res, lnw[l:l + 1], lnb[l:l + 1])

        # ---------------- FFN (block-diagonal, node-parallel) --------------------
        # TODO(synk): dropout inside GAT attention and FFN is identity (inference).
        ffn_res = x
        h1 = jnp.maximum(bdot(x, w1_ref[l]) + b1[l:l + 1], 0.0)   # [TB, 256]
        ffn = bdot(h1, w2_ref[l]) + b2[l:l + 1]                   # [TB, 128]
        x = group_ln(ffn + ffn_res, lnw[l:l + 1], lnb[l:l + 1])

    o_ref[...] = x.astype(o_ref.dtype)


# --------------------------------- wrapper --------------------------------------
def _round_up(v, m):
    return (v + m - 1) // m * m


def image_feature_encoder(x, kparams, block_b=512):
    """x: [B, N_NODES, HIDDEN] float32 -> [B, N_NODES, HIDDEN] float32."""
    (temb_f, wfuse, eexp, lnm, gatb_f, lnw_f, lnb_f, w1b, b1_f, w2b, b2_f) = kparams
    B, N, H = x.shape
    assert N == N_NODES and H == HIDDEN

    x_flat = x.reshape(B, FLAT)                        # lane-dense layout

    # Adaptive batch tiling: g grid steps, tb = round_up(ceil(B/g), 8).
    g = max(1, -(-B // block_b))
    if B >= 16 and g < 2:
        g = 2                       # >=2 steps -> v7x megacore gets both TCs busy
    if g > 1 and g % 2 == 1:
        g += 1                      # even step count -> balanced across 2 TCs
    tb = _round_up(-(-B // g), 8)
    b_pad = g * tb
    if b_pad != B:
        x_flat = jnp.pad(x_flat, ((0, b_pad - B), (0, 0)))

    def rep(a):                     # full array, same block every grid step
        return pl.BlockSpec(a.shape, lambda i, _nd=a.ndim: (0,) * _nd)

    # Advisory cost estimate so XLA schedules the custom call sensibly.
    macs_per_row = NUM_LAYERS * (FLAT * ZW            # fused GAT projection
                                 + LG_W * FT_W        # attention lane expansion
                                 + 4 * FLAT * FLAT    # 2 LayerNorms x (mean, var)
                                 + 2 * FLAT * (2 * HIDDEN * N_NODES))  # FFN
    weight_bytes = int(sum(p.size * p.dtype.itemsize for p in kparams))
    cost = pl.CostEstimate(
        flops=2 * macs_per_row * b_pad,
        transcendentals=NUM_LAYERS * (LG_W + GRP + 2 * FLAT) * b_pad,
        bytes_accessed=2 * b_pad * FLAT * 4 + weight_bytes)

    out = pl.pallas_call(
        encoder_kernel,
        out_shape=jax.ShapeDtypeStruct((b_pad, FLAT), x.dtype),
        grid_spec=pltpu.PrefetchScalarGridSpec(
            num_scalar_prefetch=0,
            grid=(g,),
            in_specs=[
                pl.BlockSpec((tb, FLAT), lambda i: (i, 0)),      # x (lane-dense)
                rep(temb_f),                                     # [1, 128]  f32
                rep(wfuse),                                      # [L, 128, 576] bf16
                rep(eexp),                                       # [64, 512] bf16
                rep(lnm),                                        # [128, 128] bf16
                rep(gatb_f), rep(lnw_f), rep(lnb_f),             # [L, 128] f32 each
                rep(w1b),                                        # [L, 128, 256] bf16
                rep(b1_f),                                       # [L, 256] f32
                rep(w2b),                                        # [L, 256, 128] bf16
                rep(b2_f),                                       # [L, 128] f32
            ],
            out_specs=pl.BlockSpec((tb, FLAT), lambda i: (i, 0)),
        ),
        compiler_params=pltpu.CompilerParams(
            dimension_semantics=("parallel",),
            vmem_limit_bytes=32 * 1024 * 1024),
        cost_estimate=cost,
    )(x_flat, temb_f, wfuse, eexp, lnm, gatb_f, lnw_f, lnb_f, w1b, b1_f, w2b, b2_f)

    return out[:B].reshape(B, N_NODES, HIDDEN)


# ------------------------- deterministic parameters ------------------------------
def make_params(key):
    ks = jax.random.split(key, 12)
    temb = 0.1 * jax.random.normal(ks[0], (N_NODES, HIDDEN), jnp.float32)

    # GATConv lin: PyTorch/PyG layout is [out=heads*out_c, in=H]; transpose for x @ W.
    gat_lin = jax.random.normal(ks[1], (NUM_LAYERS, HIDDEN, HIDDEN), jnp.float32) / jnp.sqrt(HIDDEN)
    gatw = jnp.transpose(gat_lin, (0, 2, 1))                     # [L, H_in, H_out]
    att_src = 0.2 * jax.random.normal(ks[2], (NUM_LAYERS, HEADS, OUT_C), jnp.float32)
    att_dst = 0.2 * jax.random.normal(ks[3], (NUM_LAYERS, HEADS, OUT_C), jnp.float32)
    gatb = 0.05 * jax.random.normal(ks[4], (NUM_LAYERS, HIDDEN), jnp.float32)

    lnw = 1.0 + 0.1 * jax.random.normal(ks[5], (NUM_LAYERS, HIDDEN), jnp.float32)
    lnb = 0.05 * jax.random.normal(ks[6], (NUM_LAYERS, HIDDEN), jnp.float32)

    w1_pt = jax.random.normal(ks[7], (NUM_LAYERS, 2 * HIDDEN, HIDDEN), jnp.float32) / jnp.sqrt(HIDDEN)
    w1 = jnp.transpose(w1_pt, (0, 2, 1))                         # [L, H, 2H]
    b1 = 0.05 * jax.random.normal(ks[8], (NUM_LAYERS, 2 * HIDDEN), jnp.float32)
    w2_pt = jax.random.normal(ks[9], (NUM_LAYERS, HIDDEN, 2 * HIDDEN), jnp.float32) / jnp.sqrt(2 * HIDDEN)
    w2 = jnp.transpose(w2_pt, (0, 2, 1))                         # [L, 2H, H]
    b2 = 0.05 * jax.random.normal(ks[10], (NUM_LAYERS, HIDDEN), jnp.float32)
    return temb, gatw, att_src, att_dst, gatb, lnw, lnb, w1, b1, w2, b2


def build_kernel_params(raw):
    """Host-side (one-time) repacking into the lane-dense / fused kernel layout.

    Big weight slabs are stored in bf16 (single-pass MXU operands, half the DMA /
    VMEM residency); bias / LayerNorm rows stay f32 (added elementwise).
    """
    temb, gatw, att_src, att_dst, gatb, lnw, lnb, w1, b1, w2, b2 = [
        np.asarray(p, np.float32) for p in raw]
    L, H, _ = gatw.shape
    N = N_NODES

    # Fold the attention vectors through the GAT linear layer:
    #   alpha_src[n, h] = sum_f x[n, f] * asrc[f, h]
    gw_h = gatw.reshape(L, H, HEADS, OUT_C)
    asrc = np.einsum('lfhc,lhc->lfh', gw_h, att_src)             # [L, H, HEADS]
    adst = np.einsum('lfhc,lhc->lfh', gw_h, att_dst)             # [L, H, HEADS]

    # Fused projection weight [L, 128, 576]:
    #   cols [j*128 + i*32 + o]        -> feat(src=j, out=o), replicated over dst i
    #   cols [512 + j*16 + i*4 + h]    -> alpha_dst(i,h) + alpha_src(j,h)
    wfuse = np.zeros((L, FLAT, ZW), np.float32)
    for j in range(N):            # source node
        for i in range(N):        # destination node
            wfuse[:, j * H:(j + 1) * H, j * FLAT + i * H: j * FLAT + (i + 1) * H] = gatw
            c0 = FT_W + j * GRP + i * HEADS
            wfuse[:, i * H:(i + 1) * H, c0:c0 + HEADS] += adst
            wfuse[:, j * H:(j + 1) * H, c0:c0 + HEADS] += asrc   # i == j adds both

    # Wide attention lane-expansion (0/1): [64, 512]
    #   row j*16 + i*4 + h -> lanes j*128 + i*32 + h*8 + [0..8)
    eexp = np.zeros((LG_W, FT_W), np.float32)
    for j in range(N):
        for i in range(N):
            for h in range(HEADS):
                r = j * GRP + i * HEADS + h
                c = j * FLAT + i * H + h * OUT_C
                eexp[r, c:c + OUT_C] = 1.0

    # Per-node LayerNorm group-mean matrix (block diagonal 1/H): [128, 128]
    lnm = np.zeros((FLAT, FLAT), np.float32)
    for n in range(N):
        lnm[n * H:(n + 1) * H, n * H:(n + 1) * H] = 1.0 / H

    # Block-diagonal FFN weights (same per-node Linear applied node-parallel).
    w1b = np.zeros((L, FLAT, N * 2 * H), np.float32)
    w2b = np.zeros((L, N * 2 * H, FLAT), np.float32)
    for n in range(N):
        w1b[:, n * H:(n + 1) * H, n * 2 * H:(n + 1) * 2 * H] = w1
        w2b[:, n * 2 * H:(n + 1) * 2 * H, n * H:(n + 1) * H] = w2

    temb_f = temb.reshape(1, FLAT)
    gatb_f = np.tile(gatb, (1, N))
    lnw_f = np.tile(lnw, (1, N))
    lnb_f = np.tile(lnb, (1, N))
    b1_f = np.tile(b1, (1, N))
    b2_f = np.tile(b2, (1, N))

    bf = jnp.bfloat16
    return (jnp.asarray(temb_f), jnp.asarray(wfuse, bf), jnp.asarray(eexp, bf),
            jnp.asarray(lnm, bf), jnp.asarray(gatb_f), jnp.asarray(lnw_f),
            jnp.asarray(lnb_f), jnp.asarray(w1b, bf), jnp.asarray(b1_f),
            jnp.asarray(w2b, bf), jnp.asarray(b2_f))


# ------------------------------ plain-JAX reference ------------------------------
def reference(x, raw):
    temb, gatw, att_src, att_dst, gatb, lnw, lnb, w1, b1, w2, b2 = raw

    def ln(v, w, b):
        mu = v.mean(-1, keepdims=True)
        var = ((v - mu) ** 2).mean(-1, keepdims=True)
        return (v - mu) / jnp.sqrt(var + LN_EPS) * w + b

    def one(xs):
        xs = xs + temb
        for l in range(NUM_LAYERS):
            x_res = xs
            feat = jnp.dot(xs, gatw[l], precision=REF_PREC)
            fh = feat.reshape(N_NODES, HEADS, OUT_C)
            a_s = (fh * att_src[l][None]).sum(-1)
            a_d = (fh * att_dst[l][None]).sum(-1)
            e = a_d[:, None, :] + a_s[None, :, :]
            e = jnp.where(e > 0, e, NEG_SLOPE * e)
            attn = jax.nn.softmax(e, axis=1)
            out = jnp.einsum('ijh,jhc->ihc', attn, fh,
                             precision=REF_PREC).reshape(N_NODES, HIDDEN) + gatb[l]
            xs = ln(out + x_res, lnw[l], lnb[l])
            ffn_res = xs
            h1 = jnp.maximum(jnp.dot(xs, w1[l], precision=REF_PREC) + b1[l], 0.0)
            xs = ln(jnp.dot(h1, w2[l], precision=REF_PREC) + b2[l] + ffn_res,
                    lnw[l], lnb[l])
        return xs

    return jax.vmap(one)(x)


# ------------------------------------ main ----------------------------------------
if __name__ == "__main__":
    key = jax.random.PRNGKey(0)
    k_x, k_x2, k_p = jax.random.split(key, 3)

    raw_params = make_params(k_p)
    kernel_params = build_kernel_params(raw_params)

    # Tolerance widened vs. the f32 reference to accommodate single-pass bf16 MXU
    # matmuls over 3 layers (structural bugs still produce O(1e-1)+ diffs).
    TOL = 4e-2

    # Small shape consistent with the module: [B=2, 4 image types, hidden=32].
    x = jax.random.normal(k_x, (2, N_NODES, HIDDEN), jnp.float32)
    out = jax.block_until_ready(image_feature_encoder(x, kernel_params))
    ref = jax.block_until_ready(reference(x, raw_params))
    assert out.shape == (2, N_NODES, HIDDEN)
    assert jnp.allclose(out, ref, atol=TOL, rtol=TOL), (
        f"max abs diff = {float(jnp.max(jnp.abs(out - ref)))}")

    # Also exercise the adaptive-tiling, multi-grid-step (and padded) path.
    xb = jax.random.normal(k_x2, (300, N_NODES, HIDDEN), jnp.float32)
    outb = jax.block_until_ready(image_feature_encoder(xb, kernel_params))
    refb = jax.block_until_ready(reference(xb, raw_params))
    assert jnp.allclose(outb, refb, atol=TOL, rtol=TOL), (
        f"max abs diff = {float(jnp.max(jnp.abs(outb - refb)))}")

    print("KERNEL_OK")
</pallas_src>

<mosaic_0001>
module attributes {stable_mosaic.version = 11 : i64} {
  func.func @encoder_kernel(%arg0: i32, %arg1: memref<8x128xf32, #tpu.memory_space<vmem>>, %arg2: memref<1x128xf32, #tpu.memory_space<vmem>>, %arg3: memref<3x128x576xbf16, #tpu.memory_space<vmem>>, %arg4: memref<64x512xbf16, #tpu.memory_space<vmem>>, %arg5: memref<128x128xbf16, #tpu.memory_space<vmem>>, %arg6: memref<3x128xf32, #tpu.memory_space<vmem>>, %arg7: memref<3x128xf32, #tpu.memory_space<vmem>>, %arg8: memref<3x128xf32, #tpu.memory_space<vmem>>, %arg9: memref<3x128x256xbf16, #tpu.memory_space<vmem>>, %arg10: memref<3x256xf32, #tpu.memory_space<vmem>>, %arg11: memref<3x256x128xbf16, #tpu.memory_space<vmem>>, %arg12: memref<3x128xf32, #tpu.memory_space<vmem>>, %arg13: memref<8x128xf32, #tpu.memory_space<vmem>>) attributes {dimension_semantics = [#tpu.dimension_semantics<parallel>], iteration_bounds = array<i64: 1>, scalar_prefetch = 0 : i64, scratch_operands = 0 : i64, tpu.core_type = #tpu.core_type<tc>, window_params = [{transform_indices = @transform_0, window_bounds = array<i64: 8, 128>}, {pipeline_mode = #tpu.pipeline_mode<synchronous>, transform_indices = @transform_1, window_bounds = array<i64: 1, 128>}, {pipeline_mode = #tpu.pipeline_mode<synchronous>, transform_indices = @transform_2, window_bounds = array<i64: 3, 128, 576>}, {pipeline_mode = #tpu.pipeline_mode<synchronous>, transform_indices = @transform_3, window_bounds = array<i64: 64, 512>}, {pipeline_mode = #tpu.pipeline_mode<synchronous>, transform_indices = @transform_4, window_bounds = array<i64: 128, 128>}, {pipeline_mode = #tpu.pipeline_mode<synchronous>, transform_indices = @transform_5, window_bounds = array<i64: 3, 128>}, {pipeline_mode = #tpu.pipeline_mode<synchronous>, transform_indices = @transform_6, window_bounds = array<i64: 3, 128>}, {pipeline_mode = #tpu.pipeline_mode<synchronous>, transform_indices = @transform_7, window_bounds = array<i64: 3, 128>}, {pipeline_mode = #tpu.pipeline_mode<synchronous>, transform_indices = @transform_8, window_bounds = array<i64: 3, 128, 256>}, {pipeline_mode = #tpu.pipeline_mode<synchronous>, transform_indices = @transform_9, window_bounds = array<i64: 3, 256>}, {pipeline_mode = #tpu.pipeline_mode<synchronous>, transform_indices = @transform_10, window_bounds = array<i64: 3, 256, 128>}, {pipeline_mode = #tpu.pipeline_mode<synchronous>, transform_indices = @transform_11, window_bounds = array<i64: 3, 128>}, {transform_indices = @transform_12, window_bounds = array<i64: 8, 128>}]} {
    %c0 = arith.constant 0 : index
    %c0_0 = arith.constant 0 : index
    %0 = vector.load %arg4[%c0, %c0_0] : memref<64x512xbf16, #tpu.memory_space<vmem>>, vector<64x512xbf16>
    %c0_1 = arith.constant 0 : index
    %c0_2 = arith.constant 0 : index
    %1 = vector.load %arg5[%c0_1, %c0_2] : memref<128x128xbf16, #tpu.memory_space<vmem>>, vector<128x128xbf16>
    %c0_3 = arith.constant 0 : index
    %c0_4 = arith.constant 0 : index
    %2 = vector.load %arg6[%c0_3, %c0_4] : memref<3x128xf32, #tpu.memory_space<vmem>>, vector<3x128xf32>
    %c0_5 = arith.constant 0 : index
    %c0_6 = arith.constant 0 : index
    %3 = vector.load %arg7[%c0_5, %c0_6] : memref<3x128xf32, #tpu.memory_space<vmem>>, vector<3x128xf32>
    %c0_7 = arith.constant 0 : index
    %c0_8 = arith.constant 0 : index
    %4 = vector.load %arg8[%c0_7, %c0_8] : memref<3x128xf32, #tpu.memory_space<vmem>>, vector<3x128xf32>
    %c0_9 = arith.constant 0 : index
    %c0_10 = arith.constant 0 : index
    %5 = vector.load %arg10[%c0_9, %c0_10] : memref<3x256xf32, #tpu.memory_space<vmem>>, vector<3x256xf32>
    %c0_11 = arith.constant 0 : index
    %c0_12 = arith.constant 0 : index
    %6 = vector.load %arg12[%c0_11, %c0_12] : memref<3x128xf32, #tpu.memory_space<vmem>>, vector<3x128xf32>
    %c0_13 = arith.constant 0 : index
    %c0_14 = arith.constant 0 : index
    %7 = vector.load %arg1[%c0_13, %c0_14] : memref<8x128xf32, #tpu.memory_space<vmem>>, vector<8x128xf32>
    %c0_15 = arith.constant 0 : index
    %c0_16 = arith.constant 0 : index
    %8 = vector.load %arg2[%c0_15, %c0_16] : memref<1x128xf32, #tpu.memory_space<vmem>>, vector<1x128xf32>
    %9 = vector.broadcast %8 : vector<1x128xf32> to vector<8x128xf32>
    %10 = arith.addf %7, %9 : vector<8x128xf32>
    %c0_17 = arith.constant 0 : index
    %c0_18 = arith.constant 0 : index
    %c0_19 = arith.constant 0 : index
    %11 = vector.load %arg3[%c0_17, %c0_18, %c0_19] : memref<3x128x576xbf16, #tpu.memory_space<vmem>>, vector<1x128x576xbf16>
    %12 = vector.shape_cast %11 : vector<1x128x576xbf16> to vector<128x576xbf16>
    %13 = arith.truncf %10 : vector<8x128xf32> to vector<8x128xbf16>
    %cst = arith.constant dense<0.000000e+00> : vector<8x576xf32>
    %14 = tpu.matmul %13, %12, %cst {dimension_numbers = #tpu.dot_dimension_numbers<[1], [0], [0], [1], [0, 0, 1, 1], [], []>} : vector<8x128xbf16>, vector<128x576xbf16>, vector<8x576xf32> -> vector<8x576xf32>
    %15 = vector.extract_strided_slice %14 {offsets = [0, 512], sizes = [8, 64], strides = [1, 1]} : vector<8x576xf32> to vector<8x64xf32>
    %cst_20 = arith.constant 0.000000e+00 : f32
    %16 = vector.broadcast %cst_20 : f32 to vector<8x64xf32>
    %17 = arith.cmpf ogt, %15, %16 : vector<8x64xf32>
    %cst_21 = arith.constant 2.000000e-01 : f32
    %18 = vector.broadcast %cst_21 : f32 to vector<8x64xf32>
    %19 = arith.mulf %18, %15 : vector<8x64xf32>
    %20 = arith.select %17, %15, %19 : vector<8x64xi1>, vector<8x64xf32>
    %21 = vector.extract_strided_slice %20 {offsets = [0, 0], sizes = [8, 16], strides = [1, 1]} : vector<8x64xf32> to vector<8x16xf32>
    %22 = vector.extract_strided_slice %20 {offsets = [0, 16], sizes = [8, 16], strides = [1, 1]} : vector<8x64xf32> to vector<8x16xf32>
    %23 = vector.extract_strided_slice %20 {offsets = [0, 32], sizes = [8, 16], strides = [1, 1]} : vector<8x64xf32> to vector<8x16xf32>
    %24 = vector.extract_strided_slice %20 {offsets = [0, 48], sizes = [8, 16], strides = [1, 1]} : vector<8x64xf32> to vector<8x16xf32>
    %25 = arith.maximumf %21, %22 : vector<8x16xf32>
    %26 = arith.maximumf %23, %24 : vector<8x16xf32>
    %27 = arith.maximumf %25, %26 : vector<8x16xf32>
    %28 = tpu.concatenate %27, %27, %27, %27 in 1 : vector<8x16xf32>, vector<8x16xf32>, vector<8x16xf32>, vector<8x16xf32> -> vector<8x64xf32>
    %29 = arith.subf %20, %28 : vector<8x64xf32>
    %30 = math.exp %29 : vector<8x64xf32>
    %31 = vector.extract_strided_slice %30 {offsets = [0, 0], sizes = [8, 16], strides = [1, 1]} : vector<8x64xf32> to vector<8x16xf32>
    %32 = vector.extract_strided_slice %30 {offsets = [0, 16], sizes = [8, 16], strides = [1, 1]} : vector<8x64xf32> to vector<8x16xf32>
    %33 = arith.addf %31, %32 : vector<8x16xf32>
    %34 = vector.extract_strided_slice %30 {offsets = [0, 32], sizes = [8, 16], strides = [1, 1]} : vector<8x64xf32> to vector<8x16xf32>
    %35 = arith.addf %33, %34 : vector<8x16xf32>
    %36 = vector.extract_strided_slice %30 {offsets = [0, 48], sizes = [8, 16], strides = [1, 1]} : vector<8x64xf32> to vector<8x16xf32>
    %37 = arith.addf %35, %36 : vector<8x16xf32>
    %38 = tpu.reciprocal %37 {approx = true} : vector<8x16xf32> -> vector<8x16xf32>
    %39 = tpu.concatenate %38, %38, %38, %38 in 1 : vector<8x16xf32>, vector<8x16xf32>, vector<8x16xf32>, vector<8x16xf32> -> vector<8x64xf32>
    %40 = arith.mulf %30, %39 : vector<8x64xf32>
    %41 = arith.truncf %40 : vector<8x64xf32> to vector<8x64xbf16>
    %cst_22 = arith.constant dense<0.000000e+00> : vector<8x512xf32>
    %42 = tpu.matmul %41, %0, %cst_22 {dimension_numbers = #tpu.dot_dimension_numbers<[1], [0], [0], [1], [0, 0, 1, 1], [], []>} : vector<8x64xbf16>, vector<64x512xbf16>, vector<8x512xf32> -> vector<8x512xf32>
    %43 = vector.extract_strided_slice %14 {offsets = [0, 0], sizes = [8, 512], strides = [1, 1]} : vector<8x576xf32> to vector<8x512xf32>
    %44 = arith.mulf %42, %43 : vector<8x512xf32>
    %45 = vector.extract_strided_slice %2 {offsets = [0, 0], sizes = [1, 128], strides = [1, 1]} : vector<3x128xf32> to vector<1x128xf32>
    %46 = vector.extract_strided_slice %44 {offsets = [0, 0], sizes = [8, 128], strides = [1, 1]} : vector<8x512xf32> to vector<8x128xf32>
    %47 = vector.broadcast %45 : vector<1x128xf32> to vector<8x128xf32>
    %48 = arith.addf %47, %46 : vector<8x128xf32>
    %49 = vector.extract_strided_slice %44 {offsets = [0, 128], sizes = [8, 128], strides = [1, 1]} : vector<8x512xf32> to vector<8x128xf32>
    %50 = arith.addf %48, %49 : vector<8x128xf32>
    %51 = vector.extract_strided_slice %44 {offsets = [0, 256], sizes = [8, 128], strides = [1, 1]} : vector<8x512xf32> to vector<8x128xf32>
    %52 = arith.addf %50, %51 : vector<8x128xf32>
    %53 = vector.extract_strided_slice %44 {offsets = [0, 384], sizes = [8, 128], strides = [1, 1]} : vector<8x512xf32> to vector<8x128xf32>
    %54 = arith.addf %52, %53 : vector<8x128xf32>
    %55 = arith.addf %54, %10 : vector<8x128xf32>
    %56 = vector.extract_strided_slice %3 {offsets = [0, 0], sizes = [1, 128], strides = [1, 1]} : vector<3x128xf32> to vector<1x128xf32>
    %57 = vector.extract_strided_slice %4 {offsets = [0, 0], sizes = [1, 128], strides = [1, 1]} : vector<3x128xf32> to vector<1x128xf32>
    %58 = arith.truncf %55 : vector<8x128xf32> to vector<8x128xbf16>
    %cst_23 = arith.constant dense<0.000000e+00> : vector<8x128xf32>
    %59 = tpu.matmul %58, %1, %cst_23 {dimension_numbers = #tpu.dot_dimension_numbers<[1], [0], [0], [1], [0, 0, 1, 1], [], []>} : vector<8x128xbf16>, vector<128x128xbf16>, vector<8x128xf32> -> vector<8x128xf32>
    %60 = arith.subf %55, %59 : vector<8x128xf32>
    %61 = arith.mulf %60, %60 : vector<8x128xf32>
    %62 = arith.truncf %61 : vector<8x128xf32> to vector<8x128xbf16>
    %cst_24 = arith.constant dense<0.000000e+00> : vector<8x128xf32>
    %63 = tpu.matmul %62, %1, %cst_24 {dimension_numbers = #tpu.dot_dimension_numbers<[1], [0], [0], [1], [0, 0, 1, 1], [], []>} : vector<8x128xbf16>, vector<128x128xbf16>, vector<8x128xf32> -> vector<8x128xf32>
    %cst_25 = arith.constant 9.99999974E-6 : f32
    %64 = vector.broadcast %cst_25 : f32 to vector<8x128xf32>
    %65 = arith.addf %63, %64 : vector<8x128xf32>
    %66 = math.rsqrt %65 : vector<8x128xf32>
    %67 = arith.mulf %60, %66 : vector<8x128xf32>
    %68 = vector.broadcast %56 : vector<1x128xf32> to vector<8x128xf32>
    %69 = arith.mulf %67, %68 : vector<8x128xf32>
    %70 = vector.broadcast %57 : vector<1x128xf32> to vector<8x128xf32>
    %71 = arith.addf %69, %70 : vector<8x128xf32>
    %c0_26 = arith.constant 0 : index
    %c0_27 = arith.constant 0 : index
    %c0_28 = arith.constant 0 : index
    %72 = vector.load %arg9[%c0_26, %c0_27, %c0_28] : memref<3x128x256xbf16, #tpu.memory_space<vmem>>, vector<1x128x256xbf16>
    %73 = vector.shape_cast %72 : vector<1x128x256xbf16> to vector<128x256xbf16>
    %74 = arith.truncf %71 : vector<8x128xf32> to vector<8x128xbf16>
    %cst_29 = arith.constant dense<0.000000e+00> : vector<8x256xf32>
    %75 = tpu.matmul %74, %73, %cst_29 {dimension_numbers = #tpu.dot_dimension_numbers<[1], [0], [0], [1], [0, 0, 1, 1], [], []>} : vector<8x128xbf16>, vector<128x256xbf16>, vector<8x256xf32> -> vector<8x256xf32>
    %76 = vector.extract_strided_slice %5 {offsets = [0, 0], sizes = [1, 256], strides = [1, 1]} : vector<3x256xf32> to vector<1x256xf32>
    %77 = vector.broadcast %76 : vector<1x256xf32> to vector<8x256xf32>
    %78 = arith.addf %75, %77 : vector<8x256xf32>
    %cst_30 = arith.constant 0.000000e+00 : f32
    %79 = vector.broadcast %cst_30 : f32 to vector<8x256xf32>
    %80 = arith.maximumf %78, %79 : vector<8x256xf32>
    %c0_31 = arith.constant 0 : index
    %c0_32 = arith.constant 0 : index
    %c0_33 = arith.constant 0 : index
    %81 = vector.load %arg11[%c0_31, %c0_32, %c0_33] : memref<3x256x128xbf16, #tpu.memory_space<vmem>>, vector<1x256x128xbf16>
    %82 = vector.shape_cast %81 : vector<1x256x128xbf16> to vector<256x128xbf16>
    %83 = arith.truncf %80 : vector<8x256xf32> to vector<8x256xbf16>
    %cst_34 = arith.constant dense<0.000000e+00> : vector<8x128xf32>
    %84 = tpu.matmul %83, %82, %cst_34 {dimension_numbers = #tpu.dot_dimension_numbers<[1], [0], [0], [1], [0, 0, 1, 1], [], []>} : vector<8x256xbf16>, vector<256x128xbf16>, vector<8x128xf32> -> vector<8x128xf32>
    %85 = vector.extract_strided_slice %6 {offsets = [0, 0], sizes = [1, 128], strides = [1, 1]} : vector<3x128xf32> to vector<1x128xf32>
    %86 = vector.broadcast %85 : vector<1x128xf32> to vector<8x128xf32>
    %87 = arith.addf %84, %86 : vector<8x128xf32>
    %88 = arith.addf %87, %71 : vector<8x128xf32>
    %89 = vector.extract_strided_slice %3 {offsets = [0, 0], sizes = [1, 128], strides = [1, 1]} : vector<3x128xf32> to vector<1x128xf32>
    %90 = vector.extract_strided_slice %4 {offsets = [0, 0], sizes = [1, 128], strides = [1, 1]} : vector<3x128xf32> to vector<1x128xf32>
    %91 = arith.truncf %88 : vector<8x128xf32> to vector<8x128xbf16>
    %cst_35 = arith.constant dense<0.000000e+00> : vector<8x128xf32>
    %92 = tpu.matmul %91, %1, %cst_35 {dimension_numbers = #tpu.dot_dimension_numbers<[1], [0], [0], [1], [0, 0, 1, 1], [], []>} : vector<8x128xbf16>, vector<128x128xbf16>, vector<8x128xf32> -> vector<8x128xf32>
    %93 = arith.subf %88, %92 : vector<8x128xf32>
    %94 = arith.mulf %93, %93 : vector<8x128xf32>
    %95 = arith.truncf %94 : vector<8x128xf32> to vector<8x128xbf16>
    %cst_36 = arith.constant dense<0.000000e+00> : vector<8x128xf32>
    %96 = tpu.matmul %95, %1, %cst_36 {dimension_numbers = #tpu.dot_dimension_numbers<[1], [0], [0], [1], [0, 0, 1, 1], [], []>} : vector<8x128xbf16>, vector<128x128xbf16>, vector<8x128xf32> -> vector<8x128xf32>
    %cst_37 = arith.constant 9.99999974E-6 : f32
    %97 = vector.broadcast %cst_37 : f32 to vector<8x128xf32>
    %98 = arith.addf %96, %97 : vector<8x128xf32>
    %99 = math.rsqrt %98 : vector<8x128xf32>
    %100 = arith.mulf %93, %99 : vector<8x128xf32>
    %101 = vector.broadcast %89 : vector<1x128xf32> to vector<8x128xf32>
    %102 = arith.mulf %100, %101 : vector<8x128xf32>
    %103 = vector.broadcast %90 : vector<1x128xf32> to vector<8x128xf32>
    %104 = arith.addf %102, %103 : vector<8x128xf32>
    %c1 = arith.constant 1 : index
    %c0_38 = arith.constant 0 : index
    %c0_39 = arith.constant 0 : index
    %105 = vector.load %arg3[%c1, %c0_38, %c0_39] : memref<3x128x576xbf16, #tpu.memory_space<vmem>>, vector<1x128x576xbf16>
    %106 = vector.shape_cast %105 : vector<1x128x576xbf16> to vector<128x576xbf16>
    %107 = arith.truncf %104 : vector<8x128xf32> to vector<8x128xbf16>
    %cst_40 = arith.constant dense<0.000000e+00> : vector<8x576xf32>
    %108 = tpu.matmul %107, %106, %cst_40 {dimension_numbers = #tpu.dot_dimension_numbers<[1], [0], [0], [1], [0, 0, 1, 1], [], []>} : vector<8x128xbf16>, vector<128x576xbf16>, vector<8x576xf32> -> vector<8x576xf32>
    %109 = vector.extract_strided_slice %108 {offsets = [0, 512], sizes = [8, 64], strides = [1, 1]} : vector<8x576xf32> to vector<8x64xf32>
    %cst_41 = arith.constant 0.000000e+00 : f32
    %110 = vector.broadcast %cst_41 : f32 to vector<8x64xf32>
    %111 = arith.cmpf ogt, %109, %110 : vector<8x64xf32>
    %cst_42 = arith.constant 2.000000e-01 : f32
    %112 = vector.broadcast %cst_42 : f32 to vector<8x64xf32>
    %113 = arith.mulf %112, %109 : vector<8x64xf32>
    %114 = arith.select %111, %109, %113 : vector<8x64xi1>, vector<8x64xf32>
    %115 = vector.extract_strided_slice %114 {offsets = [0, 0], sizes = [8, 16], strides = [1, 1]} : vector<8x64xf32> to vector<8x16xf32>
    %116 = vector.extract_strided_slice %114 {offsets = [0, 16], sizes = [8, 16], strides = [1, 1]} : vector<8x64xf32> to vector<8x16xf32>
    %117 = vector.extract_strided_slice %114 {offsets = [0, 32], sizes = [8, 16], strides = [1, 1]} : vector<8x64xf32> to vector<8x16xf32>
    %118 = vector.extract_strided_slice %114 {offsets = [0, 48], sizes = [8, 16], strides = [1, 1]} : vector<8x64xf32> to vector<8x16xf32>
    %119 = arith.maximumf %115, %116 : vector<8x16xf32>
    %120 = arith.maximumf %117, %118 : vector<8x16xf32>
    %121 = arith.maximumf %119, %120 : vector<8x16xf32>
    %122 = tpu.concatenate %121, %121, %121, %121 in 1 : vector<8x16xf32>, vector<8x16xf32>, vector<8x16xf32>, vector<8x16xf32> -> vector<8x64xf32>
    %123 = arith.subf %114, %122 : vector<8x64xf32>
    %124 = math.exp %123 : vector<8x64xf32>
    %125 = vector.extract_strided_slice %124 {offsets = [0, 0], sizes = [8, 16], strides = [1, 1]} : vector<8x64xf32> to vector<8x16xf32>
    %126 = vector.extract_strided_slice %124 {offsets = [0, 16], sizes = [8, 16], strides = [1, 1]} : vector<8x64xf32> to vector<8x16xf32>
    %127 = arith.addf %125, %126 : vector<8x16xf32>
    %128 = vector.extract_strided_slice %124 {offsets = [0, 32], sizes = [8, 16], strides = [1, 1]} : vector<8x64xf32> to vector<8x16xf32>
    %129 = arith.addf %127, %128 : vector<8x16xf32>
    %130 = vector.extract_strided_slice %124 {offsets = [0, 48], sizes = [8, 16], strides = [1, 1]} : vector<8x64xf32> to vector<8x16xf32>
    %131 = arith.addf %129, %130 : vector<8x16xf32>
    %132 = tpu.reciprocal %131 {approx = true} : vector<8x16xf32> -> vector<8x16xf32>
    %133 = tpu.concatenate %132, %132, %132, %132 in 1 : vector<8x16xf32>, vector<8x16xf32>, vector<8x16xf32>, vector<8x16xf32> -> vector<8x64xf32>
    %134 = arith.mulf %124, %133 : vector<8x64xf32>
    %135 = arith.truncf %134 : vector<8x64xf32> to vector<8x64xbf16>
    %cst_43 = arith.constant dense<0.000000e+00> : vector<8x512xf32>
    %136 = tpu.matmul %135, %0, %cst_43 {dimension_numbers = #tpu.dot_dimension_numbers<[1], [0], [0], [1], [0, 0, 1, 1], [], []>} : vector<8x64xbf16>, vector<64x512xbf16>, vector<8x512xf32> -> vector<8x512xf32>
    %137 = vector.extract_strided_slice %108 {offsets = [0, 0], sizes = [8, 512], strides = [1, 1]} : vector<8x576xf32> to vector<8x512xf32>
    %138 = arith.mulf %136, %137 : vector<8x512xf32>
    %139 = vector.extract_strided_slice %2 {offsets = [1, 0], sizes = [1, 128], strides = [1, 1]} : vector<3x128xf32> to vector<1x128xf32>
    %140 = vector.extract_strided_slice %138 {offsets = [0, 0], sizes = [8, 128], strides = [1, 1]} : vector<8x512xf32> to vector<8x128xf32>
    %141 = vector.broadcast %139 : vector<1x128xf32> to vector<8x128xf32>
    %142 = arith.addf %141, %140 : vector<8x128xf32>
    %143 = vector.extract_strided_slice %138 {offsets = [0, 128], sizes = [8, 128], strides = [1, 1]} : vector<8x512xf32> to vector<8x128xf32>
    %144 = arith.addf %142, %143 : vector<8x128xf32>
    %145 = vector.extract_strided_slice %138 {offsets = [0, 256], sizes = [8, 128], strides = [1, 1]} : vector<8x512xf32> to vector<8x128xf32>
    %146 = arith.addf %144, %145 : vector<8x128xf32>
    %147 = vector.extract_strided_slice %138 {offsets = [0, 384], sizes = [8, 128], strides = [1, 1]} : vector<8x512xf32> to vector<8x128xf32>
    %148 = arith.addf %146, %147 : vector<8x128xf32>
    %149 = arith.addf %148, %104 : vector<8x128xf32>
    %150 = vector.extract_strided_slice %3 {offsets = [1, 0], sizes = [1, 128], strides = [1, 1]} : vector<3x128xf32> to vector<1x128xf32>
    %151 = vector.extract_strided_slice %4 {offsets = [1, 0], sizes = [1, 128], strides = [1, 1]} : vector<3x128xf32> to vector<1x128xf32>
    %152 = arith.truncf %149 : vector<8x128xf32> to vector<8x128xbf16>
    %cst_44 = arith.constant dense<0.000000e+00> : vector<8x128xf32>
    %153 = tpu.matmul %152, %1, %cst_44 {dimension_numbers = #tpu.dot_dimension_numbers<[1], [0], [0], [1], [0, 0, 1, 1], [], []>} : vector<8x128xbf16>, vector<128x128xbf16>, vector<8x128xf32> -> vector<8x128xf32>
    %154 = arith.subf %149, %153 : vector<8x128xf32>
    %155 = arith.mulf %154, %154 : vector<8x128xf32>
    %156 = arith.truncf %155 : vector<8x128xf32> to vector<8x128xbf16>
    %cst_45 = arith.constant dense<0.000000e+00> : vector<8x128xf32>
    %157 = tpu.matmul %156, %1, %cst_45 {dimension_numbers = #tpu.dot_dimension_numbers<[1], [0], [0], [1], [0, 0, 1, 1], [], []>} : vector<8x128xbf16>, vector<128x128xbf16>, vector<8x128xf32> -> vector<8x128xf32>
    %cst_46 = arith.constant 9.99999974E-6 : f32
    %158 = vector.broadcast %cst_46 : f32 to vector<8x128xf32>
    %159 = arith.addf %157, %158 : vector<8x128xf32>
    %160 = math.rsqrt %159 : vector<8x128xf32>
    %161 = arith.mulf %154, %160 : vector<8x128xf32>
    %162 = vector.broadcast %150 : vector<1x128xf32> to vector<8x128xf32>
    %163 = arith.mulf %161, %162 : vector<8x128xf32>
    %164 = vector.broadcast %151 : vector<1x128xf32> to vector<8x128xf32>
    %165 = arith.addf %163, %164 : vector<8x128xf32>
    %c1_47 = arith.constant 1 : index
    %c0_48 = arith.constant 0 : index
    %c0_49 = arith.constant 0 : index
    %166 = vector.load %arg9[%c1_47, %c0_48, %c0_49] : memref<3x128x256xbf16, #tpu.memory_space<vmem>>, vector<1x128x256xbf16>
    %167 = vector.shape_cast %166 : vector<1x128x256xbf16> to vector<128x256xbf16>
    %168 = arith.truncf %165 : vector<8x128xf32> to vector<8x128xbf16>
    %cst_50 = arith.constant dense<0.000000e+00> : vector<8x256xf32>
    %169 = tpu.matmul %168, %167, %cst_50 {dimension_numbers = #tpu.dot_dimension_numbers<[1], [0], [0], [1], [0, 0, 1, 1], [], []>} : vector<8x128xbf16>, vector<128x256xbf16>, vector<8x256xf32> -> vector<8x256xf32>
    %170 = vector.extract_strided_slice %5 {offsets = [1, 0], sizes = [1, 256], strides = [1, 1]} : vector<3x256xf32> to vector<1x256xf32>
    %171 = vector.broadcast %170 : vector<1x256xf32> to vector<8x256xf32>
    %172 = arith.addf %169, %171 : vector<8x256xf32>
    %cst_51 = arith.constant 0.000000e+00 : f32
    %173 = vector.broadcast %cst_51 : f32 to vector<8x256xf32>
    %174 = arith.maximumf %172, %173 : vector<8x256xf32>
    %c1_52 = arith.constant 1 : index
    %c0_53 = arith.constant 0 : index
    %c0_54 = arith.constant 0 : index
    %175 = vector.load %arg11[%c1_52, %c0_53, %c0_54] : memref<3x256x128xbf16, #tpu.memory_space<vmem>>, vector<1x256x128xbf16>
    %176 = vector.shape_cast %175 : vector<1x256x128xbf16> to vector<256x128xbf16>
    %177 = arith.truncf %174 : vector<8x256xf32> to vector<8x256xbf16>
    %cst_55 = arith.constant dense<0.000000e+00> : vector<8x128xf32>
    %178 = tpu.matmul %177, %176, %cst_55 {dimension_numbers = #tpu.dot_dimension_numbers<[1], [0], [0], [1], [0, 0, 1, 1], [], []>} : vector<8x256xbf16>, vector<256x128xbf16>, vector<8x128xf32> -> vector<8x128xf32>
    %179 = vector.extract_strided_slice %6 {offsets = [1, 0], sizes = [1, 128], strides = [1, 1]} : vector<3x128xf32> to vector<1x128xf32>
    %180 = vector.broadcast %179 : vector<1x128xf32> to vector<8x128xf32>
    %181 = arith.addf %178, %180 : vector<8x128xf32>
    %182 = arith.addf %181, %165 : vector<8x128xf32>
    %183 = vector.extract_strided_slice %3 {offsets = [1, 0], sizes = [1, 128], strides = [1, 1]} : vector<3x128xf32> to vector<1x128xf32>
    %184 = vector.extract_strided_slice %4 {offsets = [1, 0], sizes = [1, 128], strides = [1, 1]} : vector<3x128xf32> to vector<1x128xf32>
    %185 = arith.truncf %182 : vector<8x128xf32> to vector<8x128xbf16>
    %cst_56 = arith.constant dense<0.000000e+00> : vector<8x128xf32>
    %186 = tpu.matmul %185, %1, %cst_56 {dimension_numbers = #tpu.dot_dimension_numbers<[1], [0], [0], [1], [0, 0, 1, 1], [], []>} : vector<8x128xbf16>, vector<128x128xbf16>, vector<8x128xf32> -> vector<8x128xf32>
    %187 = arith.subf %182, %186 : vector<8x128xf32>
    %188 = arith.mulf %187, %187 : vector<8x128xf32>
    %189 = arith.truncf %188 : vector<8x128xf32> to vector<8x128xbf16>
    %cst_57 = arith.constant dense<0.000000e+00> : vector<8x128xf32>
    %190 = tpu.matmul %189, %1, %cst_57 {dimension_numbers = #tpu.dot_dimension_numbers<[1], [0], [0], [1], [0, 0, 1, 1], [], []>} : vector<8x128xbf16>, vector<128x128xbf16>, vector<8x128xf32> -> vector<8x128xf32>
    %cst_58 = arith.constant 9.99999974E-6 : f32
    %191 = vector.broadcast %cst_58 : f32 to vector<8x128xf32>
    %192 = arith.addf %190, %191 : vector<8x128xf32>
    %193 = math.rsqrt %192 : vector<8x128xf32>
    %194 = arith.mulf %187, %193 : vector<8x128xf32>
    %195 = vector.broadcast %183 : vector<1x128xf32> to vector<8x128xf32>
    %196 = arith.mulf %194, %195 : vector<8x128xf32>
    %197 = vector.broadcast %184 : vector<1x128xf32> to vector<8x128xf32>
    %198 = arith.addf %196, %197 : vector<8x128xf32>
    %c2 = arith.constant 2 : index
    %c0_59 = arith.constant 0 : index
    %c0_60 = arith.constant 0 : index
    %199 = vector.load %arg3[%c2, %c0_59, %c0_60] : memref<3x128x576xbf16, #tpu.memory_space<vmem>>, vector<1x128x576xbf16>
    %200 = vector.shape_cast %199 : vector<1x128x576xbf16> to vector<128x576xbf16>
    %201 = arith.truncf %198 : vector<8x128xf32> to vector<8x128xbf16>
    %cst_61 = arith.constant dense<0.000000e+00> : vector<8x576xf32>
    %202 = tpu.matmul %201, %200, %cst_61 {dimension_numbers = #tpu.dot_dimension_numbers<[1], [0], [0], [1], [0, 0, 1, 1], [], []>} : vector<8x128xbf16>, vector<128x576xbf16>, vector<8x576xf32> -> vector<8x576xf32>
    %203 = vector.extract_strided_slice %202 {offsets = [0, 512], sizes = [8, 64], strides = [1, 1]} : vector<8x576xf32> to vector<8x64xf32>
    %cst_62 = arith.constant 0.000000e+00 : f32
    %204 = vector.broadcast %cst_62 : f32 to vector<8x64xf32>
    %205 = arith.cmpf ogt, %203, %204 : vector<8x64xf32>
    %cst_63 = arith.constant 2.000000e-01 : f32
    %206 = vector.broadcast %cst_63 : f32 to vector<8x64xf32>
    %207 = arith.mulf %206, %203 : vector<8x64xf32>
    %208 = arith.select %205, %203, %207 : vector<8x64xi1>, vector<8x64xf32>
    %209 = vector.extract_strided_slice %208 {offsets = [0, 0], sizes = [8, 16], strides = [1, 1]} : vector<8x64xf32> to vector<8x16xf32>
    %210 = vector.extract_strided_slice %208 {offsets = [0, 16], sizes = [8, 16], strides = [1, 1]} : vector<8x64xf32> to vector<8x16xf32>
    %211 = vector.extract_strided_slice %208 {offsets = [0, 32], sizes = [8, 16], strides = [1, 1]} : vector<8x64xf32> to vector<8x16xf32>
    %212 = vector.extract_strided_slice %208 {offsets = [0, 48], sizes = [8, 16], strides = [1, 1]} : vector<8x64xf32> to vector<8x16xf32>
    %213 = arith.maximumf %209, %210 : vector<8x16xf32>
    %214 = arith.maximumf %211, %212 : vector<8x16xf32>
    %215 = arith.maximumf %213, %214 : vector<8x16xf32>
    %216 = tpu.concatenate %215, %215, %215, %215 in 1 : vector<8x16xf32>, vector<8x16xf32>, vector<8x16xf32>, vector<8x16xf32> -> vector<8x64xf32>
    %217 = arith.subf %208, %216 : vector<8x64xf32>
    %218 = math.exp %217 : vector<8x64xf32>
    %219 = vector.extract_strided_slice %218 {offsets = [0, 0], sizes = [8, 16], strides = [1, 1]} : vector<8x64xf32> to vector<8x16xf32>
    %220 = vector.extract_strided_slice %218 {offsets = [0, 16], sizes = [8, 16], strides = [1, 1]} : vector<8x64xf32> to vector<8x16xf32>
    %221 = arith.addf %219, %220 : vector<8x16xf32>
    %222 = vector.extract_strided_slice %218 {offsets = [0, 32], sizes = [8, 16], strides = [1, 1]} : vector<8x64xf32> to vector<8x16xf32>
    %223 = arith.addf %221, %222 : vector<8x16xf32>
    %224 = vector.extract_strided_slice %218 {offsets = [0, 48], sizes = [8, 16], strides = [1, 1]} : vector<8x64xf32> to vector<8x16xf32>
    %225 = arith.addf %223, %224 : vector<8x16xf32>
    %226 = tpu.reciprocal %225 {approx = true} : vector<8x16xf32> -> vector<8x16xf32>
    %227 = tpu.concatenate %226, %226, %226, %226 in 1 : vector<8x16xf32>, vector<8x16xf32>, vector<8x16xf32>, vector<8x16xf32> -> vector<8x64xf32>
    %228 = arith.mulf %218, %227 : vector<8x64xf32>
    %229 = arith.truncf %228 : vector<8x64xf32> to vector<8x64xbf16>
    %cst_64 = arith.constant dense<0.000000e+00> : vector<8x512xf32>
    %230 = tpu.matmul %229, %0, %cst_64 {dimension_numbers = #tpu.dot_dimension_numbers<[1], [0], [0], [1], [0, 0, 1, 1], [], []>} : vector<8x64xbf16>, vector<64x512xbf16>, vector<8x512xf32> -> vector<8x512xf32>
    %231 = vector.extract_strided_slice %202 {offsets = [0, 0], sizes = [8, 512], strides = [1, 1]} : vector<8x576xf32> to vector<8x512xf32>
    %232 = arith.mulf %230, %231 : vector<8x512xf32>
    %233 = vector.extract_strided_slice %2 {offsets = [2, 0], sizes = [1, 128], strides = [1, 1]} : vector<3x128xf32> to vector<1x128xf32>
    %234 = vector.extract_strided_slice %232 {offsets = [0, 0], sizes = [8, 128], strides = [1, 1]} : vector<8x512xf32> to vector<8x128xf32>
    %235 = vector.broadcast %233 : vector<1x128xf32> to vector<8x128xf32>
    %236 = arith.addf %235, %234 : vector<8x128xf32>
    %237 = vector.extract_strided_slice %232 {offsets = [0, 128], sizes = [8, 128], strides = [1, 1]} : vector<8x512xf32> to vector<8x128xf32>
    %238 = arith.addf %236, %237 : vector<8x128xf32>
    %239 = vector.extract_strided_slice %232 {offsets = [0, 256], sizes = [8, 128], strides = [1, 1]} : vector<8x512xf32> to vector<8x128xf32>
    %240 = arith.addf %238, %239 : vector<8x128xf32>
    %241 = vector.extract_strided_slice %232 {offsets = [0, 384], sizes = [8, 128], strides = [1, 1]} : vector<8x512xf32> to vector<8x128xf32>
    %242 = arith.addf %240, %241 : vector<8x128xf32>
    %243 = arith.addf %242, %198 : vector<8x128xf32>
    %244 = vector.extract_strided_slice %3 {offsets = [2, 0], sizes = [1, 128], strides = [1, 1]} : vector<3x128xf32> to vector<1x128xf32>
    %245 = vector.extract_strided_slice %4 {offsets = [2, 0], sizes = [1, 128], strides = [1, 1]} : vector<3x128xf32> to vector<1x128xf32>
    %246 = arith.truncf %243 : vector<8x128xf32> to vector<8x128xbf16>
    %cst_65 = arith.constant dense<0.000000e+00> : vector<8x128xf32>
    %247 = tpu.matmul %246, %1, %cst_65 {dimension_numbers = #tpu.dot_dimension_numbers<[1], [0], [0], [1], [0, 0, 1, 1], [], []>} : vector<8x128xbf16>, vector<128x128xbf16>, vector<8x128xf32> -> vector<8x128xf32>
    %248 = arith.subf %243, %247 : vector<8x128xf32>
    %249 = arith.mulf %248, %248 : vector<8x128xf32>
    %250 = arith.truncf %249 : vector<8x128xf32> to vector<8x128xbf16>
    %cst_66 = arith.constant dense<0.000000e+00> : vector<8x128xf32>
    %251 = tpu.matmul %250, %1, %cst_66 {dimension_numbers = #tpu.dot_dimension_numbers<[1], [0], [0], [1], [0, 0, 1, 1], [], []>} : vector<8x128xbf16>, vector<128x128xbf16>, vector<8x128xf32> -> vector<8x128xf32>
    %cst_67 = arith.constant 9.99999974E-6 : f32
    %252 = vector.broadcast %cst_67 : f32 to vector<8x128xf32>
    %253 = arith.addf %251, %252 : vector<8x128xf32>
    %254 = math.rsqrt %253 : vector<8x128xf32>
    %255 = arith.mulf %248, %254 : vector<8x128xf32>
    %256 = vector.broadcast %244 : vector<1x128xf32> to vector<8x128xf32>
    %257 = arith.mulf %255, %256 : vector<8x128xf32>
    %258 = vector.broadcast %245 : vector<1x128xf32> to vector<8x128xf32>
    %259 = arith.addf %257, %258 : vector<8x128xf32>
    %c2_68 = arith.constant 2 : index
    %c0_69 = arith.constant 0 : index
    %c0_70 = arith.constant 0 : index
    %260 = vector.load %arg9[%c2_68, %c0_69, %c0_70] : memref<3x128x256xbf16, #tpu.memory_space<vmem>>, vector<1x128x256xbf16>
    %261 = vector.shape_cast %260 : vector<1x128x256xbf16> to vector<128x256xbf16>
    %262 = arith.truncf %259 : vector<8x128xf32> to vector<8x128xbf16>
    %cst_71 = arith.constant dense<0.000000e+00> : vector<8x256xf32>
    %263 = tpu.matmul %262, %261, %cst_71 {dimension_numbers = #tpu.dot_dimension_numbers<[1], [0], [0], [1], [0, 0, 1, 1], [], []>} : vector<8x128xbf16>, vector<128x256xbf16>, vector<8x256xf32> -> vector<8x256xf32>
    %264 = vector.extract_strided_slice %5 {offsets = [2, 0], sizes = [1, 256], strides = [1, 1]} : vector<3x256xf32> to vector<1x256xf32>
    %265 = vector.broadcast %264 : vector<1x256xf32> to vector<8x256xf32>
    %266 = arith.addf %263, %265 : vector<8x256xf32>
    %cst_72 = arith.constant 0.000000e+00 : f32
    %267 = vector.broadcast %cst_72 : f32 to vector<8x256xf32>
    %268 = arith.maximumf %266, %267 : vector<8x256xf32>
    %c2_73 = arith.constant 2 : index
    %c0_74 = arith.constant 0 : index
    %c0_75 = arith.constant 0 : index
    %269 = vector.load %arg11[%c2_73, %c0_74, %c0_75] : memref<3x256x128xbf16, #tpu.memory_space<vmem>>, vector<1x256x128xbf16>
    %270 = vector.shape_cast %269 : vector<1x256x128xbf16> to vector<256x128xbf16>
    %271 = arith.truncf %268 : vector<8x256xf32> to vector<8x256xbf16>
    %cst_76 = arith.constant dense<0.000000e+00> : vector<8x128xf32>
    %272 = tpu.matmul %271, %270, %cst_76 {dimension_numbers = #tpu.dot_dimension_numbers<[1], [0], [0], [1], [0, 0, 1, 1], [], []>} : vector<8x256xbf16>, vector<256x128xbf16>, vector<8x128xf32> -> vector<8x128xf32>
    %273 = vector.extract_strided_slice %6 {offsets = [2, 0], sizes = [1, 128], strides = [1, 1]} : vector<3x128xf32> to vector<1x128xf32>
    %274 = vector.broadcast %273 : vector<1x128xf32> to vector<8x128xf32>
    %275 = arith.addf %272, %274 : vector<8x128xf32>
    %276 = arith.addf %275, %259 : vector<8x128xf32>
    %277 = vector.extract_strided_slice %3 {offsets = [2, 0], sizes = [1, 128], strides = [1, 1]} : vector<3x128xf32> to vector<1x128xf32>
    %278 = vector.extract_strided_slice %4 {offsets = [2, 0], sizes = [1, 128], strides = [1, 1]} : vector<3x128xf32> to vector<1x128xf32>
    %279 = arith.truncf %276 : vector<8x128xf32> to vector<8x128xbf16>
    %cst_77 = arith.constant dense<0.000000e+00> : vector<8x128xf32>
    %280 = tpu.matmul %279, %1, %cst_77 {dimension_numbers = #tpu.dot_dimension_numbers<[1], [0], [0], [1], [0, 0, 1, 1], [], []>} : vector<8x128xbf16>, vector<128x128xbf16>, vector<8x128xf32> -> vector<8x128xf32>
    %281 = arith.subf %276, %280 : vector<8x128xf32>
    %282 = arith.mulf %281, %281 : vector<8x128xf32>
    %283 = arith.truncf %282 : vector<8x128xf32> to vector<8x128xbf16>
    %cst_78 = arith.constant dense<0.000000e+00> : vector<8x128xf32>
    %284 = tpu.matmul %283, %1, %cst_78 {dimension_numbers = #tpu.dot_dimension_numbers<[1], [0], [0], [1], [0, 0, 1, 1], [], []>} : vector<8x128xbf16>, vector<128x128xbf16>, vector<8x128xf32> -> vector<8x128xf32>
    %cst_79 = arith.constant 9.99999974E-6 : f32
    %285 = vector.broadcast %cst_79 : f32 to vector<8x128xf32>
    %286 = arith.addf %284, %285 : vector<8x128xf32>
    %287 = math.rsqrt %286 : vector<8x128xf32>
    %288 = arith.mulf %281, %287 : vector<8x128xf32>
    %289 = vector.broadcast %277 : vector<1x128xf32> to vector<8x128xf32>
    %290 = arith.mulf %288, %289 : vector<8x128xf32>
    %291 = vector.broadcast %278 : vector<1x128xf32> to vector<8x128xf32>
    %292 = arith.addf %290, %291 : vector<8x128xf32>
    %c0_80 = arith.constant 0 : index
    %c0_81 = arith.constant 0 : index
    %293 = vector.load %arg13[%c0_80, %c0_81] : memref<8x128xf32, #tpu.memory_space<vmem>>, vector<8x128xf32>
    tpu.vector_store %arg13[%c0_80, %c0_81], %292 {strides = array<i32>} : memref<8x128xf32, #tpu.memory_space<vmem>>, vector<8x128xf32>,
    return
  }
  func.func @transform_0(%arg0: i32) -> (i32, i32) {
    %c0_i32 = arith.constant 0 : i32
    %c0_i32_0 = arith.constant 0 : i32
    return %arg0, %c0_i32 : i32, i32
  }
  func.func @transform_1(%arg0: i32) -> (i32, i32) {
    %c0_i32 = arith.constant 0 : i32
    %c0_i32_0 = arith.constant 0 : i32
    %c0_i32_1 = arith.constant 0 : i32
    return %c0_i32, %c0_i32_0 : i32, i32
  }
  func.func @transform_2(%arg0: i32) -> (i32, i32, i32) {
    %c0_i32 = arith.constant 0 : i32
    %c0_i32_0 = arith.constant 0 : i32
    %c0_i32_1 = arith.constant 0 : i32
    %c0_i32_2 = arith.constant 0 : i32
    return %c0_i32, %c0_i32_0, %c0_i32_1 : i32, i32, i32
  }
  func.func @transform_3(%arg0: i32) -> (i32, i32) {
    %c0_i32 = arith.constant 0 : i32
    %c0_i32_0 = arith.constant 0 : i32
    %c0_i32_1 = arith.constant 0 : i32
    return %c0_i32, %c0_i32_0 : i32, i32
  }
  func.func @transform_4(%arg0: i32) -> (i32, i32) {
    %c0_i32 = arith.constant 0 : i32
    %c0_i32_0 = arith.constant 0 : i32
    %c0_i32_1 = arith.constant 0 : i32
    return %c0_i32, %c0_i32_0 : i32, i32
  }
  func.func @transform_5(%arg0: i32) -> (i32, i32) {
    %c0_i32 = arith.constant 0 : i32
    %c0_i32_0 = arith.constant 0 : i32
    %c0_i32_1 = arith.constant 0 : i32
    return %c0_i32, %c0_i32_0 : i32, i32
  }
  func.func @transform_6(%arg0: i32) -> (i32, i32) {
    %c0_i32 = arith.constant 0 : i32
    %c0_i32_0 = arith.constant 0 : i32
    %c0_i32_1 = arith.constant 0 : i32
    return %c0_i32, %c0_i32_0 : i32, i32
  }
  func.func @transform_7(%arg0: i32) -> (i32, i32) {
    %c0_i32 = arith.constant 0 : i32
    %c0_i32_0 = arith.constant 0 : i32
    %c0_i32_1 = arith.constant 0 : i32
    return %c0_i32, %c0_i32_0 : i32, i32
  }
  func.func @transform_8(%arg0: i32) -> (i32, i32, i32) {
    %c0_i32 = arith.constant 0 : i32
    %c0_i32_0 = arith.constant 0 : i32
    %c0_i32_1 = arith.constant 0 : i32
    %c0_i32_2 = arith.constant 0 : i32
    return %c0_i32, %c0_i32_0, %c0_i32_1 : i32, i32, i32
  }
  func.func @transform_9(%arg0: i32) -> (i32, i32) {
    %c0_i32 = arith.constant 0 : i32
    %c0_i32_0 = arith.constant 0 : i32
    %c0_i32_1 = arith.constant 0 : i32
    return %c0_i32, %c0_i32_0 : i32, i32
  }
  func.func @transform_10(%arg0: i32) -> (i32, i32, i32) {
    %c0_i32 = arith.constant 0 : i32
    %c0_i32_0 = arith.constant 0 : i32
    %c0_i32_1 = arith.constant 0 : i32
    %c0_i32_2 = arith.constant 0 : i32
    return %c0_i32, %c0_i32_0, %c0_i32_1 : i32, i32, i32
  }
  func.func @transform_11(%arg0: i32) -> (i32, i32) {
    %c0_i32 = arith.constant 0 : i32
    %c0_i32_0 = arith.constant 0 : i32
    %c0_i32_1 = arith.constant 0 : i32
    return %c0_i32, %c0_i32_0 : i32, i32
  }
  func.func @transform_12(%arg0: i32) -> (i32, i32) {
    %c0_i32 = arith.constant 0 : i32
    %c0_i32_0 = arith.constant 0 : i32
    return %arg0, %c0_i32 : i32, i32
  }
}

</mosaic_0001>

<bundles_post_ra>
// kernel: tpu_custom_call.1
= control target key start
LH: loop header
LB: loop body
LE: loop exit
PB: predicated region body
PF: predicated region fallthrough
CT: control target
= control target key end

     0   :  { %s5994_s0 = inlined_call_operand.vmem [shape: f32[8,128], index: 0, kind: input, shape index: {}]   ;;  %s5995_s1 = inlined_call_operand.vmem [shape: f32[1,128], index: 1, kind: input, shape index: {}]   ;;  %s5996_s2 = inlined_call_operand.vmem [shape: bf16[3,128,576], index: 2, kind: input, shape index: {}]   ;;  %s5997_s3 = inlined_call_operand.vmem [shape: bf16[64,512], index: 3, kind: input, shape index: {}]   ;;  %s5998_s4 = inlined_call_operand.vmem [shape: bf16[128,128], index: 4, kind: input, shape index: {}]   ;;  %s5999_s5 = inlined_call_operand.vmem [shape: f32[3,128], index: 5, kind: input, shape index: {}]   ;;  %s6000_s6 = inlined_call_operand.vmem [shape: f32[3,128], index: 6, kind: input, shape index: {}]   ;;  %s6001_s7 = inlined_call_operand.vmem [shape: f32[3,128], index: 7, kind: input, shape index: {}]   ;;  %s6002_s8 = inlined_call_operand.vmem [shape: bf16[3,128,256], index: 8, kind: input, shape index: {}]   ;;  %s6003_s9 = inlined_call_operand.vmem [shape: f32[3,256], index: 9, kind: input, shape index: {}]   ;;  %s6004_s10 = inlined_call_operand.vmem [shape: bf16[3,256,128], index: 10, kind: input, shape index: {}]   ;;  %s6005_s11 = inlined_call_operand.vmem [shape: f32[3,128], index: 11, kind: input, shape index: {}]   ;;  %s6006_s12 = inlined_call_operand.hbm [shape: f32[8,128], index: 12, kind: output, shape index: {}]  }
   0x1   :  { %v2850_v0 = vld [vmem:[%s5996_s2 + $0x118] sm:$0xf]  ;;  %v3933_v1 = vld [vmem:[%s5996_s2 + $0x128] sm:$0xf0]  ;;  %v2830_v2 = vld [vmem:[%s5996_s2 + $0xf0] sm:$0xf] }
   0x2   :  { %v2851_v3 = vor.u32 %v3933_v1, %v2850_v0  ;;  %v3928_v4 = vld [vmem:[%s5996_s2 + $0x100] sm:$0xf0]  ;;  %v2810_v6 = vld [vmem:[%s5996_s2 + $0xc8] sm:$0xf]  ;;  %v3923_v7 = vld [vmem:[%s5996_s2 + $0xd8] sm:$0xf0] }
   0x3   :  { %v2831_v5 = vor.u32 %v3928_v4, %v2830_v2  ;;  %v2811_v8 = vor.u32 %v3923_v7, %v2810_v6  ;;  %v2790_v9 = vld [vmem:[%s5996_s2 + $0xa0] sm:$0xf]  ;;  %v3918_v10 = vld [vmem:[%s5996_s2 + $0xb0] sm:$0xf0] }
   0x4   :  { %343 = vmatpush.bf16.msra.mxu0 %v2851_v3 }
   0x8   :  { %344 = vmatpush.bf16.msra.mxu0 %v2831_v5 }
   0x9   :  { %17 = vsyncpa [#allocation3], 0  ;;  %v2791_v11 = vor.u32 %v3918_v10, %v2790_v9  ;;  %v2770_v12 = vld [vmem:[%s5996_s2 + $0x78] sm:$0xf]  ;;  %v3913_v13 = vld [vmem:[%s5996_s2 + $0x88] sm:$0xf0] }
   0xa   :  { %v2771_v14 = vor.u32 %v3913_v13, %v2770_v12  ;;  %v2750_v15 = vld [vmem:[%s5996_s2 + $0x50] sm:$0xf]  ;;  %v3908_v16 = vld [vmem:[%s5996_s2 + $0x60] sm:$0xf0]  ;;  %v2730_v18 = vld [vmem:[%s5996_s2 + $0x28] sm:$0xf] }
   0xb   :  { %v2751_v17 = vor.u32 %v3908_v16, %v2750_v15  ;;  %v3903_v19 = vld [vmem:[%s5996_s2 + $0x38] sm:$0xf0]  ;;  %v4119_v20 = vld [vmem:[%s5995_s1] ss:$0 sm:$0xff]  ;;  %v3898_v24 = vld [vmem:[%s5996_s2 + $0x10] sm:$0xf0] }
   0xc   :  { %345 = vmatpush.bf16.msra.mxu0 %v2811_v8  ;;  %v2731_v21 = vor.u32 %v3903_v19, %v2730_v18  ;;  %v80_v22 = vld [vmem:[%s5994_s0] sm:$0xff]  ;;  %v2866_v25 = vld [vmem:[%s5996_s2 + $0x128] sm:$0xf]  ;;  %v3935_v26 = vld [vmem:[%s5996_s2 + $0x138] sm:$0xf0]  ;;  %s4183_s13 = smov 112  }
   0xd   :  { %v2710_v23 = vld [vmem:[%s5996_s2] sm:$0xf]  ;;  %v4315_v27 = vadd.f32 %v4119_v20, %v80_v22  ;;  %v2867_v29 = vor.u32 %v3935_v26, %v2866_v25  ;;  %v3930_v31 = vld [vmem:[%s5996_s2 + $0x110] sm:$0xf0]  ;;  %v2826_v34 = vld [vmem:[%s5996_s2 + $0xd8] sm:$0xf] }
   0xe   :  { %v2711_v28 = vor.u32 %v3898_v24, %v2710_v23  ;;  %v2846_v30 = vld [vmem:[%s5996_s2 + $0x100] sm:$0xf]  ;;  %v3925_v35 = vld [vmem:[%s5996_s2 + $0xe8] sm:$0xf0]  ;;  %v2806_v37 = vld [vmem:[%s5996_s2 + $0xb0] sm:$0xf] }
   0xf   :  { %v4325_v32 = vpack.c.bf16 %v4315_v27, %v4315_v27  ;;  %v2847_v33 = vor.u32 %v3930_v31, %v2846_v30  ;;  %v2827_v36 = vor.u32 %v3925_v35, %v2826_v34  ;;  %v3920_v38 = vld [vmem:[%s5996_s2 + $0xc0] sm:$0xf0]  ;;  %v2786_v40 = vld [vmem:[%s5996_s2 + $0x88] sm:$0xf]  ;;  %v3915_v41 = vld [vmem:[%s5996_s2 + $0x98] sm:$0xf0] }
  0x10   :  { %346 = vmatpush.bf16.msra.mxu0 %v2791_v11  ;;  %v2807_v39 = vor.u32 %v3920_v38, %v2806_v37  ;;  %v2787_v42 = vor.u32 %v3915_v41, %v2786_v40  ;;  %v2766_v43 = vld [vmem:[%s5996_s2 + $0x60] sm:$0xf]  ;;  %v3910_v44 = vld [vmem:[%s5996_s2 + $0x70] sm:$0xf0]  ;;  %v2746_v46 = vld [vmem:[%s5996_s2 + $0x38] sm:$0xf] }
  0x11   :  { %v2767_v45 = vor.u32 %v3910_v44, %v2766_v43  ;;  %v3905_v47 = vld [vmem:[%s5996_s2 + $0x48] sm:$0xf0]  ;;  %v2726_v49 = vld [vmem:[%s5996_s2 + $0x10] sm:$0xf]  ;;  %v3900_v50 = vld [vmem:[%s5996_s2 + $0x20] sm:$0xf0] }
  0x12   :  { %v2747_v48 = vor.u32 %v3905_v47, %v2746_v46  ;;  %v2727_v51 = vor.u32 %v3900_v50, %v2726_v49  ;;  %s4184_s14 = smov 96   ;;  %s4185_s15 = smov 48   ;;  %vm431_vm1 = vcmask 130048   ;;  %vm433_vm2 = vcmask 261120   ;;  %v3931_v7 = vld [vmem:[%s5996_s2 + $0x11c] sm:$0xf] }
  0x13   :  { %s4186_s16 = smov 16   ;;  %s4187_s17 = smov 32   ;;  %vm435_vm3 = vcmask 392192   ;;  %v2852_v8 = vld [vmem:[%s5996_s2 + $0x12c] sm:$0xf0]  ;;  %vm549_vm4 = vcmask 523264  }
  0x14   :  { %347 = vmatpush.bf16.msra.mxu0 %v2771_v14  ;;  %s4188_s18 = smov 80   ;;  %v3926_v9 = vld [vmem:[%s5996_s2 + $0xf4] sm:$0xf]  ;;  %v2855_v10 = vor.u32 %v3931_v7, %v2852_v8  ;;  %v2832_v11 = vld [vmem:[%s5996_s2 + $0x104] sm:$0xf0] }
  0x15   :  { %v2858_v12 = vld [vmem:[%s5996_s2 + $0x120] sm:$0xf]  ;;  %v3934_v13 = vld [vmem:[%s5996_s2 + $0x130] sm:$0xf0]  ;;  %v3932_v15 = vld [vmem:[%s5996_s2 + $0x124] sm:$0xf]  ;;  %v2835_v16 = vor.u32 %v3926_v9, %v2832_v11 }
  0x16   :  { %v2859_v14 = vor.u32 %v3934_v13, %v2858_v12  ;;  %356 = vmatpush.bf16.msra.mxu1 %v2855_v10  ;;  %v2838_v18 = vld [vmem:[%s5996_s2 + $0xf8] sm:$0xf]  ;;  %v3929_v19 = vld [vmem:[%s5996_s2 + $0x108] sm:$0xf0]  ;;  %v3927_v24 = vld [vmem:[%s5996_s2 + $0xfc] sm:$0xf] }
  0x17   :  { %v3921_v20 = vld [vmem:[%s5996_s2 + $0xcc] sm:$0xf]  ;;  %v2839_v23 = vor.u32 %v3929_v19, %v2838_v18  ;;  %v2840_v25 = vld [vmem:[%s5996_s2 + $0x10c] sm:$0xf0]  ;;  %v3922_v31 = vld [vmem:[%s5996_s2 + $0xd4] sm:$0xf] }
  0x18   :  { %348 = vmatpush.bf16.msra.mxu0 %v2751_v17  ;;  %v2860_v17 = vld [vmem:[%s5996_s2 + $0x134] sm:$0xf0]  ;;  %369 = vmatpush.bf16.msra.mxu2 %v2859_v14  ;;  %v2818_v26 = vld [vmem:[%s5996_s2 + $0xd0] sm:$0xf]  ;;  %v3916_v34 = vld [vmem:[%s5996_s2 + $0xa4] sm:$0xf] }
  0x19   :  { %v2863_v22 = vor.u32 %v3932_v15, %v2860_v17  ;;  %v2792_v35 = vld [vmem:[%s5996_s2 + $0xb4] sm:$0xf0]  ;;  %v2798_v37 = vld [vmem:[%s5996_s2 + $0xa8] sm:$0xf]  ;;  %v3919_v38 = vld [vmem:[%s5996_s2 + $0xb8] sm:$0xf0] }
  0x1a   :  { %357 = vmatpush.bf16.msra.mxu1 %v2835_v16  ;;  %v2795_v40 = vor.u32 %v3916_v34, %v2792_v35  ;;  %v3917_v41 = vld [vmem:[%s5996_s2 + $0xac] sm:$0xf]  ;;  %v3911_v43 = vld [vmem:[%s5996_s2 + $0x7c] sm:$0xf]  ;;  %v2772_v44 = vld [vmem:[%s5996_s2 + $0x8c] sm:$0xf0] }
  0x1b   :  { %382 = vmatpush.bf16.msra.mxu3 %v2863_v22  ;;  %v2778_v46 = vld [vmem:[%s5996_s2 + $0x80] sm:$0xf]  ;;  %v3914_v47 = vld [vmem:[%s5996_s2 + $0x90] sm:$0xf0]  ;;  %v2775_v50 = vor.u32 %v3911_v43, %v2772_v44  ;;  %v3896_v8 = vld [vmem:[%s5996_s2 + $0x4] sm:$0xf] }
  0x1c   :  { %349 = vmatpush.bf16.msra.mxu0 %v2731_v21  ;;  %v2812_v21 = vld [vmem:[%s5996_s2 + $0xdc] sm:$0xf0]  ;;  %370 = vmatpush.bf16.msra.mxu2 %v2839_v23  ;;  %v2712_v9 = vld [vmem:[%s5996_s2 + $0x14] sm:$0xf0]  ;;  %v3907_v10 = vld [vmem:[%s5996_s2 + $0x5c] sm:$0xf] }
  0x1d   :  { %v2815_v30 = vor.u32 %v3921_v20, %v2812_v21  ;;  %v2715_v11 = vor.u32 %v3896_v8, %v2712_v9  ;;  %v2760_v12 = vld [vmem:[%s5996_s2 + $0x6c] sm:$0xf0]  ;;  %v3904_v14 = vld [vmem:[%s5996_s2 + $0x40] sm:$0xf0]  ;;  %v3902_v17 = vld [vmem:[%s5996_s2 + $0x34] sm:$0xf] }
  0x1e   :  { %v2738_v13 = vld [vmem:[%s5996_s2 + $0x30] sm:$0xf]  ;;  %v2763_v15 = vor.u32 %v3907_v10, %v2760_v12  ;;  %v2740_v18 = vld [vmem:[%s5996_s2 + $0x44] sm:$0xf0]  ;;  %v3899_v20 = vld [vmem:[%s5996_s2 + $0x18] sm:$0xf0] }
  0x1f   :  { %358 = vmatpush.bf16.msra.mxu1 %v2815_v30  ;;  %v2739_v16 = vor.u32 %v3904_v14, %v2738_v13  ;;  %v2718_v19 = vld [vmem:[%s5996_s2 + $0x8] sm:$0xf]  ;;  %v3897_v21 = vld [vmem:[%s5996_s2 + $0xc] sm:$0xf]  ;;  %v2743_v22 = vor.u32 %v3902_v17, %v2740_v18  ;;  %v2918_v23 = vld [vmem:[%s5997_s3 + $0x60] sm:$0xf] }
  0x20   :  { %350 = vmatpush.bf16.msra.mxu0 %v2711_v28  ;;  %v3924_v28 = vld [vmem:[%s5996_s2 + $0xe0] sm:$0xf0]  ;;  %v2920_v30 = vld [vmem:[%s5997_s3 + $0x70] sm:$0xf0]  ;;  %v3887_v34 = vld [vmem:[%s5997_s3 + $0x74] sm:$0xf0] }
  0x21   :  { %v2902_v35 = vld [vmem:[%s5997_s3 + $0x40] sm:$0xf]  ;;  %v3877_v8 = vld [vmem:[%s5997_s3 + $0x2c] sm:$0xf]  ;;  %v2896_v9 = vld [vmem:[%s5997_s3 + $0x38] sm:$0xf0] }
  0x22   :  { %v4671_v10 = vor.u32 %v3877_v8, %v2896_v9  ;;  %v2880_v12 = vld [vmem:[%s5997_s3 + $0x18] sm:$0xf0]  ;;  %v3951_v8 = vld [vmem:[%s6002_s8 + $0x74] sm:$0xf0]  ;;  %v3950_v9 = vld [vmem:[%s6002_s8 + $0x74] sm:$0xf] }
  0x23   :  { %351 = vmatmul.bf16.vlgmr.msra.gmra.mxu0 %v4325_v32  ;;  %359 = vmatpush.bf16.msra.mxu1 %v2795_v40 }
  0x24   :  { %395 = vmatpush.bf16.msrb.mxu0 %v2867_v29  ;;  %v2843_v29 = vor.u32 %v3927_v24, %v2840_v25  ;;  %v3886_v24 = vld [vmem:[%s5997_s3 + $0x6c] sm:$0xf0]  ;;  %v3884_v25 = vld [vmem:[%s5997_s3 + $0x64] sm:$0xf] }
  0x26   :  { %383 = vmatpush.bf16.msra.mxu3 %v2843_v29  ;;  %v4545_v29 = vor.u32 %v3886_v24, %v2918_v23 }
  0x27   :  { %360 = vmatpush.bf16.msra.mxu1 %v2775_v50  ;;  %v2888_v50 = vld [vmem:[%s5997_s3 + $0x30] sm:$0xf0] }
  0x28   :  { %396 = vmatpush.bf16.msrb.mxu0 %v2847_v33  ;;  %v2820_v33 = vld [vmem:[%s5996_s2 + $0xe4] sm:$0xf0] }
  0x2c   :  { %397 = vmatpush.bf16.msrb.mxu0 %v2827_v36  ;;  %v2819_v36 = vor.u32 %v3924_v28, %v2818_v26  ;;  %v2719_v26 = vor.u32 %v3899_v20, %v2718_v19  ;;  %v2720_v28 = vld [vmem:[%s5996_s2 + $0x1c] sm:$0xf0] }
  0x2d   :  { %v2723_v40 = vor.u32 %v3897_v21, %v2720_v28 }
  0x2e   :  { %371 = vmatpush.bf16.msra.mxu2 %v2819_v36  ;;  %v3882_v36 = vld [vmem:[%s5997_s3 + $0x4c] sm:$0xf0] }
  0x30   :  { %398 = vmatpush.bf16.msrb.mxu0 %v2807_v39  ;;  %v2823_v39 = vor.u32 %v3922_v31, %v2820_v33  ;;  %v2926_v31 = vld [vmem:[%s5997_s3 + $0x68] sm:$0xf]  ;;  %v4554_v33 = vor.u32 %v3884_v25, %v2920_v30 }
  0x31   :  { %v4580_v43 = vor.u32 %v3887_v34, %v2926_v31  ;;  %v4709_v30 = vld [vmem:[%s5998_s4 + $0x28] sm:$0xff]  ;;  %v4716_v31 = vld [vmem:[%s5998_s4 + $0x20] sm:$0xff]  ;;  %v4723_v34 = vld [vmem:[%s5998_s4 + $0x18] sm:$0xff] }
  0x32   :  { %384 = vmatpush.bf16.msra.mxu3 %v2823_v39  ;;  %v2904_v39 = vld [vmem:[%s5997_s3 + $0x50] sm:$0xf0] }
  0x34   :  { %399 = vmatpush.bf16.msrb.mxu0 %v2787_v42  ;;  %v2800_v42 = vld [vmem:[%s5996_s2 + $0xbc] sm:$0xf0] }
  0x38   :  { %400 = vmatpush.bf16.msrb.mxu0 %v2767_v45  ;;  %v2799_v45 = vor.u32 %v3919_v38, %v2798_v37  ;;  %v4566_v37 = vor.u32 %v3882_v36, %v2902_v35  ;;  %v3880_v38 = vld [vmem:[%s5997_s3 + $0x44] sm:$0xf]  ;;  %v4730_v35 = vld [vmem:[%s5998_s4 + $0x10] sm:$0xff]  ;;  %v4737_v36 = vld [vmem:[%s5998_s4 + $0x8] sm:$0xff] }
  0x39   :  { %v4583_v44 = vor.u32 %v3880_v38, %v2904_v39  ;;  %v4744_v38 = vld [vmem:[%s5998_s4] sm:$0xff] }
  0x3a   :  { %372 = vmatpush.bf16.msra.mxu2 %v2799_v45  ;;  %v2910_v45 = vld [vmem:[%s5997_s3 + $0x48] sm:$0xf] }
  0x3c   :  { %401 = vmatpush.bf16.msrb.mxu0 %v2747_v48  ;;  %v2803_v48 = vor.u32 %v3917_v41, %v2800_v42  ;;  %v2886_v41 = vld [vmem:[%s5997_s3 + $0x20] sm:$0xf]  ;;  %v3878_v42 = vld [vmem:[%s5997_s3 + $0x2c] sm:$0xf0] }
  0x3e   :  { %385 = vmatpush.bf16.msra.mxu3 %v2803_v48 }
  0x40   :  { %402 = vmatpush.bf16.msrb.mxu0 %v2727_v51  ;;  %v3912_v51 = vld [vmem:[%s5996_s2 + $0x84] sm:$0xf] }
  0x43   :  { %403 = vmatmul.bf16.vlgmr.msrb.gmra.mxu0 %v4325_v32 }
  0xa0   :  { %v4365_v52 = vpop.f32.mrf.mxu0 }
  0xa8   :  { %v354_v53 = vpop.f32.mrf.mxu0 }
  0xa9   :  { %v2780_v53 = vld [vmem:[%s5996_s2 + $0x94] sm:$0xf0] }
  0xc0   :  { %v404_v54 = vpop.f32.mrf.mxu0 }
  0xc1   :  { %vm408_vm0 = vcmp.gt.f32.partialorder %v404_v54, 0.0  ;;  %v409_v55 = vmul.f32 0.2, %v404_v54 }
  0xc3   :  { %v410_v56 = vsel %vm408_vm0, %v404_v54, %v409_v55  ;;  %v3906_v54 = vld [vmem:[%s5996_s2 + $0x54] sm:$0xf]  ;;  %v2752_v55 = vld [vmem:[%s5996_s2 + $0x64] sm:$0xf0] }
  0xc4   :  { %412 = vrot.lane.b32.xlu0 %v410_v56, %s4183_s13 }
  0xc8   :  { %v406_v57 = vpop.f32.mrf.mxu0 }
 0x136   :  { %v413_v58 = vpop.permute.xlu0 %412 }
 0x137   :  { %v415_v59 = vmax.f32 %v410_v56, %v413_v58  ;;  %v2783_v58 = vor.u32 %v3912_v51, %v2780_v53  ;;  %v2894_v51 = vld [vmem:[%s5997_s3 + $0x28] sm:$0xf] }
 0x139   :  { %417 = vrot.lane.b32.xlu0 %v415_v59, %s4184_s14  ;;  %386 = vmatpush.bf16.msra.mxu3 %v2783_v58 }
 0x13d   :  { %387 = vmatpush.bf16.msra.mxu3 %v2763_v15 }
 0x141   :  { %388 = vmatpush.bf16.msra.mxu3 %v2743_v22 }
 0x145   :  { %389 = vmatpush.bf16.msra.mxu3 %v2723_v40  ;;  %v4751_v40 = vld [vmem:[%s5999_s5] sm:$0x7] }
 0x148   :  { %390 = vmatmul.bf16.vlgmr.msra.gmra.mxu3 %v4325_v32 }
 0x149   :  { %583 = vmatpush.bf16.msrb.mxu3 %v4580_v43 }
 0x1ab   :  { %v418_v60 = vpop.permute.xlu0 %417 }
 0x1ac   :  { %v420_v61 = vmax.f32 %v415_v59, %v418_v60  ;;  %v2755_v60 = vor.u32 %v3906_v54, %v2752_v55  ;;  %v2870_v55 = vld [vmem:[%s5997_s3] sm:$0xf] }
 0x1ae   :  { %428 = vrot.lane.b32.xlu2 %v420_v61, %s4185_s15  ;;  %422 = vrot.lane.b32.xlu1 %v420_v61, %s4186_s16 }
 0x1af   :  { %361 = vmatpush.bf16.msra.mxu1 %v2755_v60  ;;  %v2878_v60 = vld [vmem:[%s5997_s3 + $0x8] sm:$0xf] }
 0x1b6   :  { %425 = vrot.lane.b32.xlu1 %v420_v61, %s4187_s17 }
 0x1cb   :  { %v391_v25 = vpop.f32.mrf.mxu3 }
 0x1d3   :  { %v393_v28 = vpop.f32.mrf.mxu3 }
 0x1d4   :  { %v3946_v28 = vld [vmem:[%s6002_s8 + $0x54] sm:$0xf] }
 0x208   :  { %v429_v1 = vpop.permute.xlu2 %428 }
 0x220   :  { %v423_v62 = vpop.permute.xlu1 %422 }
 0x221   :  { %v432_v63 = vsel %vm431_vm1, %v420_v61, %v423_v62  ;;  %v3901_v62 = vld [vmem:[%s5996_s2 + $0x2c] sm:$0xf] }
 0x228   :  { %v426_v0 = vpop.permute.xlu1 %425 }
 0x229   :  { %v434_v2 = vsel %vm433_vm2, %v432_v63, %v426_v0  ;;  %v2732_v63 = vld [vmem:[%s5996_s2 + $0x3c] sm:$0xf0] }
 0x22a   :  { %v436_v3 = vsel %vm435_vm3, %v434_v2, %v429_v1  ;;  %v2735_v2 = vor.u32 %v3901_v62, %v2732_v63 }
 0x22b   :  { %v437_v4 = vsub.f32 %v410_v56, %v436_v3  ;;  %v2779_v56 = vor.u32 %v3914_v47, %v2778_v46  ;;  %v3883_v46 = vld [vmem:[%s5997_s3 + $0x54] sm:$0xf0]  ;;  %v4592_v47 = vor.u32 %v3878_v42, %v2886_v41 }
 0x22c   :  { %362 = vmatpush.bf16.msra.mxu1 %v2735_v2  ;;  %v4596_v48 = vor.u32 %v3883_v46, %v2910_v45  ;;  %v609_v45 = vperm.slane %v4751_v40, 0 }
 0x22d   :  { %v438_v5 = vmul.f32 1.442695, %v437_v4  ;;  %373 = vmatpush.bf16.msra.mxu2 %v2779_v56  ;;  %v2758_v4 = vld [vmem:[%s5996_s2 + $0x58] sm:$0xf]  ;;  %v3874_v56 = vld [vmem:[%s5997_s3 + $0xc] sm:$0xf0] }
 0x22e   :  { %584 = vmatpush.bf16.msrb.mxu3 %v4596_v48  ;;  %v4629_v58 = vor.u32 %v3874_v56, %v2870_v55 }
 0x22f   :  { %4120 = vpow2.f32 %v438_v5  ;;  %v3909_v5 = vld [vmem:[%s5996_s2 + $0x68] sm:$0xf0] }
 0x230   :  { %v2759_v7 = vor.u32 %v3909_v5, %v2758_v4  ;;  %363 = vmatpush.bf16.msra.mxu1 %v2715_v11  ;;  %v3881_v4 = vld [vmem:[%s5997_s3 + $0x4c] sm:$0xf]  ;;  %v2912_v5 = vld [vmem:[%s5997_s3 + $0x58] sm:$0xf0] }
 0x231   :  { %v3873_v11 = vld [vmem:[%s5997_s3 + $0xc] sm:$0xf] }
 0x232   :  { %374 = vmatpush.bf16.msra.mxu2 %v2759_v7  ;;  %v4662_v7 = vor.u32 %v3881_v4, %v2912_v5  ;;  %v4680_v13 = vor.u32 %v3873_v11, %v2880_v12 }
 0x233   :  { %364 = vmatmul.bf16.vlgmr.msra.gmra.mxu1 %v4325_v32 }
 0x234   :  { %557 = vmatpush.bf16.msrb.mxu1 %v4545_v29 }
 0x235   :  { %v4375_v6 = vpop.eup %4120 }
 0x236   :  { %449 = vrot.lane.b32.xlu1 %v4375_v6, %s4188_s18  ;;  %445 = vrot.lane.b32.xlu0 %v4375_v6, %s4184_s14 }
 0x237   :  { %441 = vrot.lane.b32.xlu2 %v4375_v6, %s4183_s13  ;;  %375 = vmatpush.bf16.msra.mxu2 %v2739_v16 }
 0x238   :  { %558 = vmatpush.bf16.msrb.mxu1 %v4566_v37 }
 0x23b   :  { %376 = vmatpush.bf16.msra.mxu2 %v2719_v26 }
 0x23c   :  { %559 = vmatpush.bf16.msrb.mxu1 %v4592_v47 }
 0x23e   :  { %377 = vmatmul.bf16.vlgmr.msra.gmra.mxu2 %v4325_v32  ;;  %v3879_v32 = vld [vmem:[%s5997_s3 + $0x34] sm:$0xf0] }
 0x23f   :  { %570 = vmatpush.bf16.msrb.mxu2 %v4554_v33  ;;  %v4616_v54 = vor.u32 %v3879_v32, %v2894_v51 }
 0x240   :  { %560 = vmatpush.bf16.msrb.mxu1 %v4629_v58 }
 0x241   :  { %585 = vmatpush.bf16.msrb.mxu3 %v4616_v54 }
 0x243   :  { %571 = vmatpush.bf16.msrb.mxu2 %v4583_v44 }
 0x291   :  { %v442_v49 = vpop.permute.xlu2 %441 }
 0x292   :  { %v444_v57 = vadd.f32 %v4375_v6, %v442_v49  ;;  %v3876_v49 = vld [vmem:[%s5997_s3 + $0x24] sm:$0xf] }
 0x293   :  { %v4611_v53 = vor.u32 %v3876_v49, %v2888_v50 }
 0x295   :  { %572 = vmatpush.bf16.msrb.mxu2 %v4611_v53 }
 0x2a8   :  { %v446_v59 = vpop.permute.xlu0 %445  ;;  %v450_v0 = vpop.permute.xlu1 %449 }
 0x2a9   :  { %v448_v61 = vadd.f32 %v446_v59, %v444_v57  ;;  %v3872_v57 = vld [vmem:[%s5997_s3 + $0x4] sm:$0xf]  ;;  %v2872_v59 = vld [vmem:[%s5997_s3 + $0x10] sm:$0xf0] }
 0x2aa   :  { %v4640_v62 = vor.u32 %v3872_v57, %v2872_v59 }
 0x2ab   :  { %v452_v1 = vadd.f32 %v450_v0, %v448_v61  ;;  %v3875_v61 = vld [vmem:[%s5997_s3 + $0x14] sm:$0xf0]  ;;  %v3885_v0 = vld [vmem:[%s5997_s3 + $0x6c] sm:$0xf] }
 0x2ac   :  { %v4642_v63 = vor.u32 %v3875_v61, %v2878_v60  ;;  %573 = vmatpush.bf16.msrb.mxu2 %v4640_v62 }
 0x2ad   :  { %4122 = vrcp.f32 %v452_v1  ;;  %v2928_v1 = vld [vmem:[%s5997_s3 + $0x78] sm:$0xf0] }
 0x2ae   :  { %586 = vmatpush.bf16.msrb.mxu3 %v4642_v63  ;;  %v4653_v2 = vor.u32 %v3885_v0, %v2928_v1 }
 0x2b0   :  { %596 = vmatpush.bf16.msra.mxu1 %v4653_v2  ;;  %v365_v22 = vpop.f32.mrf.mxu1 }
 0x2b3   :  { %v4486_v3 = vpop.eup %4122 }
 0x2b4   :  { %461 = vrot.lane.b32.xlu1 %v4486_v3, %s4185_s15  ;;  %458 = vrot.lane.b32.xlu0 %v4486_v3, %s4187_s17 }
 0x2b5   :  { %455 = vrot.lane.b32.xlu2 %v4486_v3, %s4186_s16  ;;  %597 = vmatpush.bf16.msra.mxu1 %v4662_v7 }
 0x2b8   :  { %v367_v23 = vpop.f32.mrf.mxu1 }
 0x2b9   :  { %598 = vmatpush.bf16.msra.mxu1 %v4671_v10  ;;  %v3020_v23 = vld [vmem:[%s6002_s8 + $0x68] sm:$0xf0] }
 0x2bd   :  { %599 = vmatpush.bf16.msra.mxu1 %v4680_v13 }
 0x2c1   :  { %v378_v24 = vpop.f32.mrf.mxu2 }
 0x2c9   :  { %v380_v26 = vpop.f32.mrf.mxu2 }
 0x2ca   :  { %v3947_v26 = vld [vmem:[%s6002_s8 + $0x54] sm:$0xf0] }
 0x30f   :  { %v456_v14 = vpop.permute.xlu2 %455 }
 0x310   :  { %v464_v15 = vsel %vm431_vm1, %v4486_v3, %v456_v14  ;;  %v4695_v3 = vld [vmem:[%s5998_s4 + $0x38] sm:$0xff] }
 0x311   :  { %664 = vmatpush.bf16.msra.mxu2 %v4695_v3  ;;  %680 = vmatpush.bf16.msra.mxu3 %v4695_v3 }
 0x326   :  { %v462_v16 = vpop.permute.xlu1 %461  ;;  %v459_v17 = vpop.permute.xlu0 %458 }
 0x327   :  { %v465_v18 = vsel %vm433_vm2, %v464_v15, %v459_v17 }
 0x328   :  { %v466_v19 = vsel %vm435_vm3, %v465_v18, %v462_v16 }
 0x329   :  { %v467_v20 = vmul.f32 %v4375_v6, %v466_v19  ;;  %v4702_v6 = vld [vmem:[%s5998_s4 + $0x30] sm:$0xff]  ;;  %v3018_v19 = vld [vmem:[%s6002_s8 + $0x60] sm:$0xf] }
 0x32a   :  { %665 = vmatpush.bf16.msra.mxu2 %v4702_v6  ;;  %681 = vmatpush.bf16.msra.mxu3 %v4702_v6 }
 0x32b   :  { %v468_v21 = vpack.c.bf16 %v467_v20, %v467_v20  ;;  %v3949_v20 = vld [vmem:[%s6002_s8 + $0x64] sm:$0xf0] }
 0x32d   :  { %2932 = vmatmul.msk.bf16.vlgmr.msrb.gmra.mxu1 %vm549_vm4, %v468_v21  ;;  %2933 = vmatmul.msk.bf16.vlgmr.msrb.gmra.mxu2 %vm549_vm4, %v468_v21 }
 0x32e   :  { %2934 = vmatmul.msk.bf16.vlgmr.msrb.gmra.mxu3 %vm549_vm4, %v468_v21  ;;  %666 = vmatpush.bf16.msra.mxu2 %v4709_v30 }
 0x32f   :  { %682 = vmatpush.bf16.msra.mxu3 %v4709_v30 }
 0x332   :  { %667 = vmatpush.bf16.msra.mxu2 %v4716_v31 }
 0x333   :  { %683 = vmatpush.bf16.msra.mxu3 %v4716_v31 }
 0x336   :  { %668 = vmatpush.bf16.msra.mxu2 %v4723_v34 }
 0x337   :  { %684 = vmatpush.bf16.msra.mxu3 %v4723_v34 }
 0x33a   :  { %669 = vmatpush.bf16.msra.mxu2 %v4730_v35 }
 0x33b   :  { %685 = vmatpush.bf16.msra.mxu3 %v4730_v35 }
 0x33d   :  { %2935 = vmatmul.msk.bf16.vlgmr.msra.gmra.mxu1 %vm549_vm4, %v468_v21  ;;  %v3948_v21 = vld [vmem:[%s6002_s8 + $0x64] sm:$0xf] }
 0x33e   :  { %670 = vmatpush.bf16.msra.mxu2 %v4737_v36 }
 0x33f   :  { %686 = vmatpush.bf16.msra.mxu3 %v4737_v36 }
 0x342   :  { %671 = vmatpush.bf16.msra.mxu2 %v4744_v38 }
 0x343   :  { %687 = vmatpush.bf16.msra.mxu3 %v4744_v38 }
 0x3aa   :  { %v562_v39 = vpop.f32.mrf.mxu1 }
 0x3ab   :  { %v605_v42 = vmul.f32 %v562_v39, %v4365_v52  ;;  %v3026_v52 = vld [vmem:[%s6002_s8 + $0x70] sm:$0xf] }
 0x3ac   :  { %v3027_v11 = vor.u32 %v3951_v8, %v3026_v52  ;;  %v2988_v52 = vld [vmem:[%s6002_s8 + $0x28] sm:$0xf0] }
 0x3ad   :  { %v610_v51 = vadd.f32 %v609_v45, %v605_v42  ;;  %v3002_v45 = vld [vmem:[%s6002_s8 + $0x40] sm:$0xf] }
 0x3ae   :  { %812 = vmatpush.bf16.msra.mxu0 %v3027_v11  ;;  %v3939_v11 = vld [vmem:[%s6002_s8 + $0x14] sm:$0xf0] }
 0x3b0   :  { %v575_v41 = vpop.f32.mrf.mxu2 }
 0x3b1   :  { %v588_v46 = vpop.f32.mrf.mxu3  ;;  %v606_v50 = vmul.f32 %v575_v41, %v365_v22  ;;  %v3019_v22 = vor.u32 %v3949_v20, %v3018_v19  ;;  %v3012_v41 = vld [vmem:[%s6002_s8 + $0x58] sm:$0xf0]  ;;  %v3936_v19 = vld [vmem:[%s6002_s8 + $0x4] sm:$0xf] }
 0x3b2   :  { %v564_v49 = vpop.f32.mrf.mxu1  ;;  %v607_v56 = vmul.f32 %v588_v46, %v378_v24  ;;  %v3023_v24 = vor.u32 %v3948_v21, %v3020_v23  ;;  %v3015_v42 = vor.u32 %v3946_v28, %v3012_v41  ;;  %v3945_v46 = vld [vmem:[%s6002_s8 + $0x44] sm:$0xf0]  ;;  %v2972_v21 = vld [vmem:[%s6002_s8 + $0x8] sm:$0xf0]  ;;  %v3959_v23 = vld [vmem:[%s6004_s10 + $0x38] sm:$0xff] }
 0x3b3   :  { %v611_v32 = vadd.f32 %v610_v51, %v606_v50  ;;  %813 = vmatpush.bf16.msra.mxu0 %v3019_v22  ;;  %v3944_v49 = vld [vmem:[%s6002_s8 + $0x44] sm:$0xf]  ;;  %v3003_v50 = vor.u32 %v3945_v46, %v3002_v45  ;;  %v3004_v51 = vld [vmem:[%s6002_s8 + $0x48] sm:$0xf0]  ;;  %v2975_v22 = vor.u32 %v3936_v19, %v2972_v21  ;;  %971 = vmatpush.bf16.msrb.mxu2 %v3959_v23 }
 0x3b4   :  { %v3957_v41 = vld [vmem:[%s6004_s10 + $0x28] sm:$0xff]  ;;  %v3956_v45 = vld [vmem:[%s6004_s10 + $0x20] sm:$0xff] }
 0x3b5   :  { %v612_v60 = vadd.f32 %v611_v32, %v607_v56  ;;  %v3007_v32 = vor.u32 %v3944_v49, %v3004_v51  ;;  %v3943_v56 = vld [vmem:[%s6002_s8 + $0x34] sm:$0xf0]  ;;  %v3964_v46 = vld [vmem:[%s6004_s10 + $0x60] sm:$0xff] }
 0x3b8   :  { %v577_v55 = vpop.f32.mrf.mxu2 }
 0x3b9   :  { %v590_v57 = vpop.f32.mrf.mxu3  ;;  %v2994_v55 = vld [vmem:[%s6002_s8 + $0x30] sm:$0xf] }
 0x3ba   :  { %v601_v59 = vpop.f32.mrf.mxu1  ;;  %v3942_v57 = vld [vmem:[%s6002_s8 + $0x34] sm:$0xf] }
 0x3bb   :  { %v608_v61 = vmul.f32 %v601_v59, %v391_v25  ;;  %v3010_v25 = vld [vmem:[%s6002_s8 + $0x50] sm:$0xf]  ;;  %v2995_v59 = vor.u32 %v3943_v56, %v2994_v55  ;;  %v3963_v55 = vld [vmem:[%s6004_s10 + $0x58] sm:$0xff] }
 0x3bc   :  { %v3011_v39 = vor.u32 %v3947_v26, %v3010_v25  ;;  %v3958_v25 = vld [vmem:[%s6004_s10 + $0x30] sm:$0xff] }
 0x3bd   :  { %v613_v0 = vadd.f32 %v612_v60, %v608_v61  ;;  %v2996_v60 = vld [vmem:[%s6002_s8 + $0x38] sm:$0xf0]  ;;  %v3966_v26 = vld [vmem:[%s6004_s10 + $0x70] sm:$0xff]  ;;  %972 = vmatpush.bf16.msrb.mxu2 %v3958_v25 }
 0x3be   :  { %814 = vmatpush.bf16.msra.mxu0 %v3011_v39  ;;  %v2999_v61 = vor.u32 %v3942_v57, %v2996_v60  ;;  %v3962_v60 = vld [vmem:[%s6004_s10 + $0x50] sm:$0xff] }
 0x3bf   :  { %v614_v1 = vadd.f32 %v613_v0, %v4315_v27  ;;  %v3028_v27 = vld [vmem:[%s6002_s8 + $0x78] sm:$0xf0]  ;;  %v2986_v0 = vld [vmem:[%s6002_s8 + $0x20] sm:$0xf] }
 0x3c0   :  { %v3031_v12 = vor.u32 %v3950_v9, %v3028_v27  ;;  %v2978_v9 = vld [vmem:[%s6002_s8 + $0x10] sm:$0xf]  ;;  %v3938_v27 = vld [vmem:[%s6002_s8 + $0x14] sm:$0xf] }
 0x3c1   :  { %v615_v4 = vpack.c.bf16 %v614_v1, %v614_v1  ;;  %973 = vmatpush.bf16.msrb.mxu2 %v3957_v41 }
 0x3c2   :  { %v603_v5 = vpop.f32.mrf.mxu1  ;;  %825 = vmatpush.bf16.msrb.mxu1 %v3031_v12  ;;  %815 = vmatpush.bf16.msra.mxu0 %v3003_v50  ;;  %v2979_v12 = vor.u32 %v3939_v11, %v2978_v9 }
 0x3c3   :  { %672 = vmatmul.bf16.vlgmr.msra.gmra.mxu2 %v615_v4  ;;  %v3940_v4 = vld [vmem:[%s6002_s8 + $0x24] sm:$0xf] }
 0x3c4   :  { %v2991_v8 = vor.u32 %v3940_v4, %v2988_v52  ;;  %v4912_v4 = vld [vmem:[%s6001_s7] sm:$0x7] }
 0x3c5   :  { %974 = vmatpush.bf16.msrb.mxu2 %v3956_v45  ;;  %v706_v9 = vperm.slane %v4912_v4, 0 }
 0x3c6   :  { %826 = vmatpush.bf16.msrb.mxu1 %v3023_v24  ;;  %816 = vmatpush.bf16.msra.mxu0 %v2995_v59  ;;  %v3967_v24 = vld [vmem:[%s6004_s10 + $0x78] sm:$0xff]  ;;  %v3954_v59 = vld [vmem:[%s6004_s10 + $0x10] sm:$0xff] }
 0x3c7   :  { %984 = vmatpush.bf16.msrb.mxu3 %v3967_v24 }
 0x3ca   :  { %827 = vmatpush.bf16.msrb.mxu1 %v3015_v42  ;;  %v3965_v42 = vld [vmem:[%s6004_s10 + $0x68] sm:$0xff] }
 0x3cb   :  { %985 = vmatpush.bf16.msrb.mxu3 %v3966_v26 }
 0x3ce   :  { %828 = vmatpush.bf16.msrb.mxu1 %v3007_v32  ;;  %v3955_v32 = vld [vmem:[%s6004_s10 + $0x18] sm:$0xff] }
 0x3cf   :  { %986 = vmatpush.bf16.msrb.mxu3 %v3965_v42  ;;  %975 = vmatpush.bf16.msrb.mxu2 %v3955_v32 }
 0x3d2   :  { %829 = vmatpush.bf16.msrb.mxu1 %v2999_v61  ;;  %v4905_v61 = vld [vmem:[%s6000_s6] sm:$0x7] }
 0x3d3   :  { %987 = vmatpush.bf16.msrb.mxu3 %v3964_v46  ;;  %976 = vmatpush.bf16.msrb.mxu2 %v3954_v59 }
 0x3d6   :  { %830 = vmatpush.bf16.msrb.mxu1 %v2991_v8 }
 0x3d7   :  { %988 = vmatpush.bf16.msrb.mxu3 %v3963_v55 }
 0x3db   :  { %989 = vmatpush.bf16.msrb.mxu3 %v3962_v60 }
 0x446   :  { %v673_v14 = vpop.f32.mrf.mxu2 }
 0x447   :  { %v4768_v15 = vsub.f32 %v614_v1, %v673_v14  ;;  %v3941_v1 = vld [vmem:[%s6002_s8 + $0x24] sm:$0xf0]  ;;  %v2980_v14 = vld [vmem:[%s6002_s8 + $0x18] sm:$0xf0] }
 0x448   :  { %v2987_v5 = vor.u32 %v3941_v1, %v2986_v0 }
 0x449   :  { %v678_v16 = vmul.f32 %v4768_v15, %v4768_v15 }
 0x44a   :  { %817 = vmatpush.bf16.msra.mxu0 %v2987_v5  ;;  %v704_v5 = vperm.slane %v4905_v61, 0 }
 0x44b   :  { %v679_v17 = vpack.c.bf16 %v678_v16, %v678_v16  ;;  %v2983_v16 = vor.u32 %v3938_v27, %v2980_v14  ;;  %v3961_v14 = vld [vmem:[%s6004_s10 + $0x48] sm:$0xff] }
 0x44c   :  { %990 = vmatpush.bf16.msrb.mxu3 %v3961_v14 }
 0x44d   :  { %688 = vmatmul.bf16.vlgmr.msra.gmra.mxu3 %v679_v17  ;;  %v2970_v17 = vld [vmem:[%s6002_s8] sm:$0xf]  ;;  %831 = vmatpush.bf16.msrb.mxu1 %v2983_v16 }
 0x44e   :  { %v675_v18 = vpop.f32.mrf.mxu2  ;;  %818 = vmatpush.bf16.msra.mxu0 %v2979_v12  ;;  %v3952_v16 = vld [vmem:[%s6004_s10] sm:$0xff] }
 0x44f   :  { %v3937_v18 = vld [vmem:[%s6002_s8 + $0x4] sm:$0xf0] }
 0x450   :  { %v2971_v20 = vor.u32 %v3937_v18, %v2970_v17  ;;  %v3960_v17 = vld [vmem:[%s6004_s10 + $0x40] sm:$0xff] }
 0x451   :  { %832 = vmatpush.bf16.msrb.mxu1 %v2975_v22  ;;  %991 = vmatpush.bf16.msrb.mxu3 %v3960_v17  ;;  %v4940_v18 = vld [vmem:[%s6003_s9] sm:$0x77] }
 0x452   :  { %819 = vmatpush.bf16.msra.mxu0 %v2971_v20  ;;  %v726_v19 = vperm.slane %v4940_v18, 0  ;;  %v727_v20 = vperm.slane %v4940_v18, 4  ;;  %v3294_v17 = vld [vmem:[%s5996_s2 + $0x260] sm:$0xf] }
 0x454   :  { %v730_v21 = vperm.slane %v726_v19, 0  ;;  %v731_v22 = vperm.slane %v727_v20, 0  ;;  %v4006_v19 = vld [vmem:[%s5996_s2 + $0x270] sm:$0xf0]  ;;  %v3995_v20 = vld [vmem:[%s5996_s2 + $0x218] sm:$0xf0] }
 0x455   :  { %1015 = vmatpush.bf16.msra.mxu1 %v4695_v3 }
 0x456   :  { %999 = vmatpush.bf16.msrb.mxu0 %v4695_v3 }
 0x459   :  { %1016 = vmatpush.bf16.msra.mxu1 %v4702_v6 }
 0x45a   :  { %1000 = vmatpush.bf16.msrb.mxu0 %v4702_v6 }
 0x45d   :  { %1017 = vmatpush.bf16.msra.mxu1 %v4709_v30 }
 0x45e   :  { %1001 = vmatpush.bf16.msrb.mxu0 %v4709_v30 }
 0x461   :  { %1018 = vmatpush.bf16.msra.mxu1 %v4716_v31 }
 0x462   :  { %1002 = vmatpush.bf16.msrb.mxu0 %v4716_v31 }
 0x465   :  { %1019 = vmatpush.bf16.msra.mxu1 %v4723_v34 }
 0x466   :  { %1003 = vmatpush.bf16.msrb.mxu0 %v4723_v34 }
 0x469   :  { %1020 = vmatpush.bf16.msra.mxu1 %v4730_v35 }
 0x46a   :  { %1004 = vmatpush.bf16.msrb.mxu0 %v4730_v35 }
 0x46d   :  { %1021 = vmatpush.bf16.msra.mxu1 %v4737_v36 }
 0x46e   :  { %1005 = vmatpush.bf16.msrb.mxu0 %v4737_v36 }
 0x471   :  { %1022 = vmatpush.bf16.msra.mxu1 %v4744_v38 }
 0x472   :  { %1006 = vmatpush.bf16.msrb.mxu0 %v4744_v38 }
 0x4d0   :  { %v689_v28 = vpop.f32.mrf.mxu3 }
 0x4d1   :  { %v690_v39 = vadd.f32 1e-05, %v689_v28 }
 0x4d3   :  { %4124 = vrsqrt.f32 %v690_v39  ;;  %vm699_vm6 = vweird.f32 %v690_v39 }
 0x4d8   :  { %v691_v49 = vpop.f32.mrf.mxu3 }
 0x4d9   :  { %v4125_v50 = vpop.eup %4124  ;;  %v4947_v49 = vld [vmem:[%s6005_s11] sm:$0x7] }
 0x4da   :  { %v694_v51 = vmul.f32 %v4125_v50, %v690_v39  ;;  %vm700_vm5 = vweird.f32 %v4125_v50 }
 0x4db   :  { %vm701_vm7 = vmor %vm699_vm6, %vm700_vm5 }
 0x4dc   :  { %v695_v56 = vmul.f32 %v4125_v50, %v694_v51 }
 0x4de   :  { %v696_v57 = vmul.f32 0.5, %v695_v56 }
 0x4e0   :  { %v697_v0 = vsub.f32 1.5, %v696_v57 }
 0x4e2   :  { %v698_v1 = vmul.f32 %v4125_v50, %v697_v0 }
 0x4e4   :  { %v702_v52 = vsel %vm701_vm7, %v4125_v50, %v698_v1  ;;  %v874_v50 = vperm.slane %v4947_v49, 0  ;;  %v3286_v1 = vld [vmem:[%s5996_s2 + $0x258] sm:$0xf] }
 0x4e5   :  { %v703_v8 = vmul.f32 %v702_v52, %v4768_v15  ;;  %v3953_v15 = vld [vmem:[%s6004_s10 + $0x8] sm:$0xff] }
 0x4e6   :  { %977 = vmatpush.bf16.msrb.mxu2 %v3953_v15  ;;  %v4005_v52 = vld [vmem:[%s5996_s2 + $0x268] sm:$0xf0]  ;;  %v4003_v15 = vld [vmem:[%s5996_s2 + $0x25c] sm:$0xf] }
 0x4e7   :  { %v705_v11 = vmul.f32 %v704_v5, %v703_v8  ;;  %v3266_v8 = vld [vmem:[%s5996_s2 + $0x230] sm:$0xf] }
 0x4e9   :  { %v707_v27 = vadd.f32 %v706_v9, %v705_v11  ;;  %v3287_v11 = vor.u32 %v4005_v52, %v3286_v1  ;;  %v4001_v1 = vld [vmem:[%s5996_s2 + $0x248] sm:$0xf0]  ;;  %v3999_v52 = vld [vmem:[%s5996_s2 + $0x23c] sm:$0xf] }
 0x4ea   :  { %978 = vmatpush.bf16.msrb.mxu2 %v3952_v16  ;;  %v3288_v16 = vld [vmem:[%s5996_s2 + $0x26c] sm:$0xf0] }
 0x4eb   :  { %v724_v12 = vpack.c.bf16 %v707_v27, %v707_v27 }
 0x4ed   :  { %820 = vmatmul.bf16.vlgmr.msra.gmra.mxu0 %v724_v12  ;;  %833 = vmatmul.bf16.vlgmr.msrb.gmra.mxu1 %v724_v12  ;;  %v3246_v12 = vld [vmem:[%s5996_s2 + $0x208] sm:$0xf] }
 0x4ee   :  { %1299 = vmatpush.bf16.msra.mxu2 %v3287_v11 }
 0x56a   :  { %v821_v23 = vpop.f32.mrf.mxu0  ;;  %v834_v24 = vpop.f32.mrf.mxu1 }
 0x56b   :  { %v822_v25 = vadd.f32 %v821_v23, %v730_v21  ;;  %v835_v26 = vadd.f32 %v834_v24, %v731_v22  ;;  %v3291_v21 = vor.u32 %v4003_v15, %v3288_v16  ;;  %v3295_v22 = vor.u32 %v4006_v19, %v3294_v17  ;;  %v4004_v23 = vld [vmem:[%s5996_s2 + $0x264] sm:$0xf]  ;;  %v3296_v24 = vld [vmem:[%s5996_s2 + $0x274] sm:$0xf0]  ;;  %v3993_v16 = vld [vmem:[%s5996_s2 + $0x20c] sm:$0xf] }
 0x56c   :  { %v3980_v15 = vld [vmem:[%s5996_s2 + $0x1a0] sm:$0xf0]  ;;  %v3248_v17 = vld [vmem:[%s5996_s2 + $0x21c] sm:$0xf0]  ;;  %v3254_v19 = vld [vmem:[%s5996_s2 + $0x210] sm:$0xf] }
 0x56d   :  { %v838_v28 = vmax.f32 %v822_v25, 0.0  ;;  %v839_v39 = vmax.f32 %v835_v26, 0.0  ;;  %v3299_v25 = vor.u32 %v4004_v23, %v3296_v24  ;;  %1312 = vmatpush.bf16.msra.mxu3 %v3291_v21  ;;  %1325 = vmatpush.bf16.msra.mxu0 %v3295_v22  ;;  %v3247_v26 = vor.u32 %v3995_v20, %v3246_v12  ;;  %v3186_v12 = vld [vmem:[%s5996_s2 + $0x190] sm:$0xf]  ;;  %v3996_v21 = vld [vmem:[%s5996_s2 + $0x220] sm:$0xf0] }
 0x56e   :  { %v3251_v20 = vor.u32 %v3993_v16, %v3248_v17  ;;  %v3994_v22 = vld [vmem:[%s5996_s2 + $0x214] sm:$0xf]  ;;  %v3256_v23 = vld [vmem:[%s5996_s2 + $0x224] sm:$0xf0]  ;;  %v3255_v24 = vor.u32 %v3996_v21, %v3254_v19  ;;  %v4007_v19 = vld [vmem:[%s5996_s2 + $0x278] sm:$0xf0] }
 0x56f   :  { %v872_v41 = vpack.c.bf16 %v838_v28, %v838_v28  ;;  %v873_v42 = vpack.c.bf16 %v839_v39, %v839_v39  ;;  %1338 = vmatpush.bf16.msrb.mxu1 %v3299_v25  ;;  %v3226_v28 = vld [vmem:[%s5996_s2 + $0x1e0] sm:$0xf]  ;;  %v3990_v39 = vld [vmem:[%s5996_s2 + $0x1f0] sm:$0xf0]  ;;  %v3259_v25 = vor.u32 %v3994_v22, %v3256_v23  ;;  %v3302_v17 = vld [vmem:[%s5996_s2 + $0x268] sm:$0xf] }
 0x570   :  { %v3978_v21 = vld [vmem:[%s5996_s2 + $0x194] sm:$0xf]  ;;  %v3188_v22 = vld [vmem:[%s5996_s2 + $0x1a4] sm:$0xf0]  ;;  %v3194_v23 = vld [vmem:[%s5996_s2 + $0x198] sm:$0xf] }
 0x571   :  { %979 = vmatmul.bf16.vlgmr.msrb.gmra.mxu2 %v872_v41  ;;  %992 = vmatmul.bf16.vlgmr.msrb.gmra.mxu3 %v873_v42  ;;  %v3227_v41 = vor.u32 %v3990_v39, %v3226_v28  ;;  %v3975_v28 = vld [vmem:[%s5996_s2 + $0x178] sm:$0xf0] }
 0x572   :  { %v823_v45 = vpop.f32.mrf.mxu0  ;;  %v836_v46 = vpop.f32.mrf.mxu1 }
 0x5f4   :  { %v980_v51 = vpop.f32.mrf.mxu2  ;;  %v993_v32 = vpop.f32.mrf.mxu3 }
 0x5f5   :  { %v981_v55 = vadd.f32 %v980_v51, %v874_v50 }
 0x5f7   :  { %v994_v56 = vadd.f32 %v993_v32, %v981_v55  ;;  %v3206_v32 = vld [vmem:[%s5996_s2 + $0x1b8] sm:$0xf]  ;;  %v3985_v55 = vld [vmem:[%s5996_s2 + $0x1c8] sm:$0xf0] }
 0x5f9   :  { %v997_v57 = vadd.f32 %v994_v56, %v707_v27  ;;  %v4000_v27 = vld [vmem:[%s5996_s2 + $0x240] sm:$0xf0]  ;;  %v3207_v56 = vor.u32 %v3985_v55, %v3206_v32  ;;  %v3989_v32 = vld [vmem:[%s5996_s2 + $0x1ec] sm:$0xf]  ;;  %v3236_v55 = vld [vmem:[%s5996_s2 + $0x1fc] sm:$0xf0] }
 0x5fa   :  { %v3267_v14 = vor.u32 %v4000_v27, %v3266_v8  ;;  %v3276_v8 = vld [vmem:[%s5996_s2 + $0x24c] sm:$0xf0] }
 0x5fb   :  { %v998_v59 = vpack.c.bf16 %v997_v57, %v997_v57  ;;  %v3279_v27 = vor.u32 %v3999_v52, %v3276_v8  ;;  %v3208_v52 = vld [vmem:[%s5996_s2 + $0x1cc] sm:$0xf0]  ;;  %v3214_v8 = vld [vmem:[%s5996_s2 + $0x1c0] sm:$0xf] }
 0x5fc   :  { %v982_v60 = vpop.f32.mrf.mxu2  ;;  %v995_v0 = vpop.f32.mrf.mxu3  ;;  %1300 = vmatpush.bf16.msra.mxu2 %v3267_v14  ;;  %v3187_v14 = vor.u32 %v3980_v15, %v3186_v12  ;;  %v3984_v12 = vld [vmem:[%s5996_s2 + $0x1c4] sm:$0xf]  ;;  %v3216_v15 = vld [vmem:[%s5996_s2 + $0x1d4] sm:$0xf0] }
 0x5fd   :  { %1007 = vmatmul.bf16.vlgmr.msrb.gmra.mxu0 %v998_v59  ;;  %v3268_v59 = vld [vmem:[%s5996_s2 + $0x244] sm:$0xf0]  ;;  %v3274_v60 = vld [vmem:[%s5996_s2 + $0x238] sm:$0xf]  ;;  %1339 = vmatpush.bf16.msrb.mxu1 %v3279_v27  ;;  %v3986_v27 = vld [vmem:[%s5996_s2 + $0x1d0] sm:$0xf0]  ;;  %v3219_v16 = vor.u32 %v3984_v12, %v3216_v15 }
 0x5fe   :  { %v3275_v11 = vor.u32 %v4001_v1, %v3274_v60  ;;  %v3970_v60 = vld [vmem:[%s5996_s2 + $0x150] sm:$0xf0]  ;;  %v3983_v1 = vld [vmem:[%s5996_s2 + $0x1bc] sm:$0xf]  ;;  %v3148_v12 = vld [vmem:[%s5996_s2 + $0x154] sm:$0xf0] }
 0x5ff   :  { %v3154_v15 = vld [vmem:[%s5996_s2 + $0x148] sm:$0xf] }
 0x600   :  { %1301 = vmatpush.bf16.msra.mxu2 %v3247_v26  ;;  %1326 = vmatpush.bf16.msra.mxu0 %v3275_v11  ;;  %v3166_v26 = vld [vmem:[%s5996_s2 + $0x168] sm:$0xf]  ;;  %v3211_v11 = vor.u32 %v3983_v1, %v3208_v52  ;;  %v3262_v52 = vld [vmem:[%s5996_s2 + $0x218] sm:$0xf] }
 0x601   :  { %1340 = vmatpush.bf16.msrb.mxu1 %v3259_v25  ;;  %v3167_v39 = vor.u32 %v3975_v28, %v3166_v26  ;;  %v3981_v25 = vld [vmem:[%s5996_s2 + $0x1a8] sm:$0xf0]  ;;  %v3979_v26 = vld [vmem:[%s5996_s2 + $0x19c] sm:$0xf]  ;;  %v3196_v28 = vld [vmem:[%s5996_s2 + $0x1ac] sm:$0xf0] }
 0x604   :  { %1302 = vmatpush.bf16.msra.mxu2 %v3227_v41  ;;  %1327 = vmatpush.bf16.msra.mxu0 %v3255_v24  ;;  %v3988_v41 = vld [vmem:[%s5996_s2 + $0x1e4] sm:$0xf]  ;;  %v3191_v24 = vor.u32 %v3978_v21, %v3188_v22  ;;  %v3242_v22 = vld [vmem:[%s5996_s2 + $0x1f0] sm:$0xf] }
 0x608   :  { %1303 = vmatpush.bf16.msra.mxu2 %v3207_v56 }
 0x60c   :  { %1304 = vmatpush.bf16.msra.mxu2 %v3187_v14  ;;  %v3215_v14 = vor.u32 %v3986_v27, %v3214_v8  ;;  %v3997_v8 = vld [vmem:[%s5996_s2 + $0x228] sm:$0xf0]  ;;  %v3968_v27 = vld [vmem:[%s5996_s2 + $0x144] sm:$0xf] }
 0x610   :  { %1305 = vmatpush.bf16.msra.mxu2 %v3167_v39  ;;  %v3195_v39 = vor.u32 %v3981_v25, %v3194_v23  ;;  %v3992_v23 = vld [vmem:[%s5996_s2 + $0x200] sm:$0xf0]  ;;  %v3222_v25 = vld [vmem:[%s5996_s2 + $0x1c8] sm:$0xf] }
 0x67a   :  { %v1008_v42 = vpop.f32.mrf.mxu0 }
 0x67b   :  { %v4992_v45 = vsub.f32 %v997_v57, %v1008_v42  ;;  %v3998_v57 = vld [vmem:[%s5996_s2 + $0x234] sm:$0xf]  ;;  %v3228_v42 = vld [vmem:[%s5996_s2 + $0x1f4] sm:$0xf0] }
 0x67c   :  { %v3271_v0 = vor.u32 %v3998_v57, %v3268_v59  ;;  %v3239_v57 = vor.u32 %v3989_v32, %v3236_v55  ;;  %v3146_v59 = vld [vmem:[%s5996_s2 + $0x140] sm:$0xf]  ;;  %v3174_v55 = vld [vmem:[%s5996_s2 + $0x170] sm:$0xf] }
 0x67d   :  { %v1013_v46 = vmul.f32 %v4992_v45, %v4992_v45  ;;  %v3168_v32 = vld [vmem:[%s5996_s2 + $0x17c] sm:$0xf0] }
 0x67e   :  { %1313 = vmatpush.bf16.msra.mxu3 %v3271_v0  ;;  %1341 = vmatpush.bf16.msrb.mxu1 %v3239_v57  ;;  %v3147_v0 = vor.u32 %v3970_v60, %v3146_v59  ;;  %v3976_v57 = vld [vmem:[%s5996_s2 + $0x180] sm:$0xf0]  ;;  %v3974_v59 = vld [vmem:[%s5996_s2 + $0x174] sm:$0xf]  ;;  %v3176_v60 = vld [vmem:[%s5996_s2 + $0x184] sm:$0xf0] }
 0x67f   :  { %v1014_v50 = vpack.c.bf16 %v1013_v46, %v1013_v46  ;;  %v3234_v46 = vld [vmem:[%s5996_s2 + $0x1e8] sm:$0xf]  ;;  %v3179_v1 = vor.u32 %v3974_v59, %v3176_v60 }
 0x680   :  { %1306 = vmatpush.bf16.msra.mxu2 %v3147_v0  ;;  %v3175_v0 = vor.u32 %v3976_v57, %v3174_v55  ;;  %v3972_v57 = vld [vmem:[%s5996_s2 + $0x160] sm:$0xf0] }
 0x681   :  { %1023 = vmatmul.bf16.vlgmr.msra.gmra.mxu1 %v1014_v50  ;;  %v3231_v50 = vor.u32 %v3988_v41, %v3228_v42  ;;  %v3199_v41 = vor.u32 %v3979_v26, %v3196_v28  ;;  %v3282_v42 = vld [vmem:[%s5996_s2 + $0x240] sm:$0xf]  ;;  %v3987_v26 = vld [vmem:[%s5996_s2 + $0x1d8] sm:$0xf0] }
 0x682   :  { %v1010_v51 = vpop.f32.mrf.mxu0  ;;  %1314 = vmatpush.bf16.msra.mxu3 %v3251_v20  ;;  %v3303_v20 = vor.u32 %v4007_v19, %v3302_v17  ;;  %1342 = vmatpush.bf16.msrb.mxu1 %v3219_v16  ;;  %v3971_v16 = vld [vmem:[%s5996_s2 + $0x158] sm:$0xf0]  ;;  %v3969_v17 = vld [vmem:[%s5996_s2 + $0x14c] sm:$0xf]  ;;  %v3156_v19 = vld [vmem:[%s5996_s2 + $0x15c] sm:$0xf0]  ;;  %v3223_v28 = vor.u32 %v3987_v26, %v3222_v25 }
 0x683   :  { %v3991_v51 = vld [vmem:[%s5996_s2 + $0x1f8] sm:$0xf0]  ;;  %v3159_v21 = vor.u32 %v3969_v17, %v3156_v19 }
 0x684   :  { %v3235_v56 = vor.u32 %v3991_v51, %v3234_v46  ;;  %1351 = vmatpush.bf16.msrb.mxu2 %v3303_v20  ;;  %v4002_v46 = vld [vmem:[%s5996_s2 + $0x250] sm:$0xf0]  ;;  %v3973_v51 = vld [vmem:[%s5996_s2 + $0x16c] sm:$0xf]  ;;  %v3155_v20 = vor.u32 %v3971_v16, %v3154_v15 }
 0x686   :  { %1315 = vmatpush.bf16.msra.mxu3 %v3231_v50  ;;  %1328 = vmatpush.bf16.msra.mxu0 %v3235_v56  ;;  %v3283_v50 = vor.u32 %v4002_v46, %v3282_v42  ;;  %v3171_v56 = vor.u32 %v3973_v51, %v3168_v32  ;;  %v3182_v51 = vld [vmem:[%s5996_s2 + $0x178] sm:$0xf]  ;;  %v3977_v32 = vld [vmem:[%s5996_s2 + $0x188] sm:$0xf0] }
 0x687   :  { %1343 = vmatpush.bf16.msrb.mxu1 %v3199_v41  ;;  %v3982_v41 = vld [vmem:[%s5996_s2 + $0x1b0] sm:$0xf0]  ;;  %v3183_v55 = vor.u32 %v3977_v32, %v3182_v51 }
 0x688   :  { %1352 = vmatpush.bf16.msrb.mxu2 %v3283_v50 }
 0x68a   :  { %1316 = vmatpush.bf16.msra.mxu3 %v3211_v11  ;;  %1329 = vmatpush.bf16.msra.mxu0 %v3215_v14  ;;  %v3263_v11 = vor.u32 %v3997_v8, %v3262_v52  ;;  %v3151_v14 = vor.u32 %v3968_v27, %v3148_v12 }
 0x68b   :  { %1344 = vmatpush.bf16.msrb.mxu1 %v3179_v1 }
 0x68c   :  { %1353 = vmatpush.bf16.msrb.mxu2 %v3263_v11 }
 0x68e   :  { %1317 = vmatpush.bf16.msra.mxu3 %v3191_v24  ;;  %1330 = vmatpush.bf16.msra.mxu0 %v3195_v39  ;;  %v3243_v24 = vor.u32 %v3992_v23, %v3242_v22  ;;  %v3202_v39 = vld [vmem:[%s5996_s2 + $0x1a0] sm:$0xf] }
 0x68f   :  { %1345 = vmatpush.bf16.msrb.mxu1 %v3159_v21  ;;  %v3203_v50 = vor.u32 %v3982_v41, %v3202_v39 }
 0x690   :  { %1354 = vmatpush.bf16.msrb.mxu2 %v3243_v24 }
 0x692   :  { %1318 = vmatpush.bf16.msra.mxu3 %v3171_v56  ;;  %1331 = vmatpush.bf16.msra.mxu0 %v3175_v0  ;;  %v3162_v56 = vld [vmem:[%s5996_s2 + $0x150] sm:$0xf] }
 0x693   :  { %1455 = vmatpush.bf16.msra.mxu1 %v4580_v43  ;;  %v3163_v0 = vor.u32 %v3972_v57, %v3162_v56 }
 0x694   :  { %1355 = vmatpush.bf16.msrb.mxu2 %v3223_v28 }
 0x696   :  { %1319 = vmatpush.bf16.msra.mxu3 %v3151_v14  ;;  %1332 = vmatpush.bf16.msra.mxu0 %v3155_v20 }
 0x697   :  { %1456 = vmatpush.bf16.msra.mxu1 %v4596_v48 }
 0x698   :  { %1356 = vmatpush.bf16.msrb.mxu2 %v3203_v50 }
 0x69a   :  { %1429 = vmatpush.bf16.msrb.mxu3 %v4545_v29  ;;  %1442 = vmatpush.bf16.msrb.mxu0 %v4554_v33 }
 0x69b   :  { %1457 = vmatpush.bf16.msra.mxu1 %v4616_v54 }
 0x69c   :  { %1357 = vmatpush.bf16.msrb.mxu2 %v3183_v55 }
 0x69e   :  { %1430 = vmatpush.bf16.msrb.mxu3 %v4566_v37  ;;  %1443 = vmatpush.bf16.msrb.mxu0 %v4583_v44 }
 0x69f   :  { %1458 = vmatpush.bf16.msra.mxu1 %v4642_v63 }
 0x6a0   :  { %1358 = vmatpush.bf16.msrb.mxu2 %v3163_v0 }
 0x6a2   :  { %1431 = vmatpush.bf16.msrb.mxu3 %v4592_v47  ;;  %1444 = vmatpush.bf16.msrb.mxu0 %v4611_v53 }
 0x6a6   :  { %1432 = vmatpush.bf16.msrb.mxu3 %v4629_v58  ;;  %1445 = vmatpush.bf16.msrb.mxu0 %v4640_v62 }
 0x6fe   :  { %v1024_v42 = vpop.f32.mrf.mxu1 }
 0x6ff   :  { %v1025_v46 = vadd.f32 1e-05, %v1024_v42 }
 0x701   :  { %4126 = vrsqrt.f32 %v1025_v46  ;;  %vm1034_vm9 = vweird.f32 %v1025_v46 }
 0x706   :  { %v1026_v59 = vpop.f32.mrf.mxu1 }
 0x707   :  { %v4127_v60 = vpop.eup %4126 }
 0x708   :  { %v1029_v1 = vmul.f32 %v4127_v60, %v1025_v46  ;;  %vm1035_vm8 = vweird.f32 %v4127_v60 }
 0x709   :  { %vm1036_vm10 = vmor %vm1034_vm9, %vm1035_vm8 }
 0x70a   :  { %v1030_v52 = vmul.f32 %v4127_v60, %v1029_v1 }
 0x70c   :  { %v1031_v8 = vmul.f32 0.5, %v1030_v52 }
 0x70e   :  { %v1032_v11 = vsub.f32 1.5, %v1031_v8 }
 0x710   :  { %v1033_v27 = vmul.f32 %v4127_v60, %v1032_v11 }
 0x712   :  { %v1037_v12 = vsel %vm1036_vm10, %v4127_v60, %v1033_v27 }
 0x713   :  { %v1038_v15 = vmul.f32 %v1037_v12, %v4992_v45 }
 0x715   :  { %v1039_v14 = vmul.f32 %v1038_v15, %v704_v5 }
 0x717   :  { %v5211_v16 = vadd.f32 %v1039_v14, %v706_v9 }
 0x719   :  { %v1090_v17 = vpack.c.bf16 %v5211_v16, %v5211_v16 }
 0x71b   :  { %1307 = vmatmul.bf16.vlgmr.msra.gmra.mxu2 %v1090_v17  ;;  %1320 = vmatmul.bf16.vlgmr.msra.gmra.mxu3 %v1090_v17 }
 0x71c   :  { %1333 = vmatmul.bf16.vlgmr.msra.gmra.mxu0 %v1090_v17  ;;  %1346 = vmatmul.bf16.vlgmr.msrb.gmra.mxu1 %v1090_v17 }
 0x71d   :  { %1468 = vmatpush.bf16.msra.mxu3 %v4653_v2  ;;  %1488 = vmatpush.bf16.msra.mxu0 %v4695_v3 }
 0x71e   :  { %1504 = vmatpush.bf16.msrb.mxu1 %v4695_v3 }
 0x721   :  { %1469 = vmatpush.bf16.msra.mxu3 %v4662_v7  ;;  %1489 = vmatpush.bf16.msra.mxu0 %v4702_v6 }
 0x722   :  { %1505 = vmatpush.bf16.msrb.mxu1 %v4702_v6 }
 0x725   :  { %1470 = vmatpush.bf16.msra.mxu3 %v4671_v10  ;;  %1490 = vmatpush.bf16.msra.mxu0 %v4709_v30 }
 0x726   :  { %1506 = vmatpush.bf16.msrb.mxu1 %v4709_v30 }
 0x729   :  { %1471 = vmatpush.bf16.msra.mxu3 %v4680_v13  ;;  %1491 = vmatpush.bf16.msra.mxu0 %v4716_v31 }
 0x72a   :  { %1507 = vmatpush.bf16.msrb.mxu1 %v4716_v31 }
 0x72b   :  { %1359 = vmatmul.bf16.vlgmr.msrb.gmra.mxu2 %v1090_v17 }
 0x72d   :  { %1492 = vmatpush.bf16.msra.mxu0 %v4723_v34 }
 0x72e   :  { %1508 = vmatpush.bf16.msrb.mxu1 %v4723_v34 }
 0x731   :  { %1493 = vmatpush.bf16.msra.mxu0 %v4730_v35 }
 0x732   :  { %1509 = vmatpush.bf16.msrb.mxu1 %v4730_v35 }
 0x735   :  { %1494 = vmatpush.bf16.msra.mxu0 %v4737_v36 }
 0x736   :  { %1510 = vmatpush.bf16.msrb.mxu1 %v4737_v36 }
 0x739   :  { %1495 = vmatpush.bf16.msra.mxu0 %v4744_v38 }
 0x73a   :  { %1511 = vmatpush.bf16.msrb.mxu1 %v4744_v38 }
 0x799   :  { %v5235_v3 = vpop.f32.mrf.mxu0  ;;  %v5237_v6 = vpop.f32.mrf.mxu1 }
 0x79e   :  { %v1308_v30 = vpop.f32.mrf.mxu2  ;;  %v5239_v31 = vpop.f32.mrf.mxu3 }
 0x7a1   :  { %v1336_v34 = vpop.f32.mrf.mxu0  ;;  %v1349_v5 = vpop.f32.mrf.mxu1 }
 0x7a6   :  { %v1310_v9 = vpop.f32.mrf.mxu2  ;;  %v1323_v45 = vpop.f32.mrf.mxu3 }
 0x7ae   :  { %v1360_v35 = vpop.f32.mrf.mxu2 }
 0x7af   :  { %vm1364_vm11 = vcmp.gt.f32.partialorder %v1360_v35, 0.0  ;;  %v1365_v19 = vmul.f32 0.2, %v1360_v35 }
 0x7b1   :  { %v1366_v20 = vsel %vm1364_vm11, %v1360_v35, %v1365_v19  ;;  %v1481_v35 = vperm.slane %v4751_v40, 1  ;;  %v3382_v40 = vld [vmem:[%s6002_s8 + $0xf0] sm:$0xf] }
 0x7b2   :  { %1368 = vrot.lane.b32.xlu2 %v1366_v20, %s4183_s13 }
 0x7b6   :  { %v1362_v36 = vpop.f32.mrf.mxu2 }
 0x80c   :  { %v1369_v21 = vpop.permute.xlu2 %1368 }
 0x80d   :  { %v1371_v38 = vmax.f32 %v1366_v20, %v1369_v21 }
 0x80f   :  { %1373 = vrot.lane.b32.xlu0 %v1371_v38, %s4184_s14 }
 0x881   :  { %v1374_v22 = vpop.permute.xlu0 %1373 }
 0x882   :  { %v1376_v23 = vmax.f32 %v1371_v38, %v1374_v22 }
 0x884   :  { %1384 = vrot.lane.b32.xlu0 %v1376_v23, %s4185_s15  ;;  %1381 = vrot.lane.b32.xlu2 %v1376_v23, %s4187_s17 }
 0x885   :  { %1378 = vrot.lane.b32.xlu1 %v1376_v23, %s4186_s16 }
 0x8de   :  { %v1382_v25 = vpop.permute.xlu2 %1381 }
 0x8f6   :  { %v1385_v28 = vpop.permute.xlu0 %1384 }
 0x8f7   :  { %v1379_v24 = vpop.permute.xlu1 %1378 }
 0x8f8   :  { %v1387_v26 = vsel %vm431_vm1, %v1376_v23, %v1379_v24 }
 0x8f9   :  { %v1388_v39 = vsel %vm433_vm2, %v1387_v26, %v1382_v25 }
 0x8fa   :  { %v1389_v41 = vsel %vm435_vm3, %v1388_v39, %v1385_v28 }
 0x8fb   :  { %v1390_v42 = vsub.f32 %v1366_v20, %v1389_v41 }
 0x8fd   :  { %v1391_v46 = vmul.f32 1.442695, %v1390_v42 }
 0x8ff   :  { %4128 = vpow2.f32 %v1391_v46 }
 0x905   :  { %v4129_v50 = vpop.eup %4128 }
 0x906   :  { %1402 = vrot.lane.b32.xlu0 %v4129_v50, %s4188_s18  ;;  %1398 = vrot.lane.b32.xlu2 %v4129_v50, %s4184_s14 }
 0x907   :  { %1394 = vrot.lane.b32.xlu1 %v4129_v50, %s4183_s13 }
 0x960   :  { %v1399_v55 = vpop.permute.xlu2 %1398 }
 0x978   :  { %v1403_v57 = vpop.permute.xlu0 %1402 }
 0x979   :  { %v1395_v51 = vpop.permute.xlu1 %1394 }
 0x97a   :  { %v1397_v32 = vadd.f32 %v4129_v50, %v1395_v51 }
 0x97c   :  { %v1401_v56 = vadd.f32 %v1399_v55, %v1397_v32  ;;  %v3374_v32 = vld [vmem:[%s6002_s8 + $0xe0] sm:$0xf]  ;;  %v4021_v55 = vld [vmem:[%s6002_s8 + $0xe4] sm:$0xf0] }
 0x97e   :  { %v1405_v59 = vadd.f32 %v1403_v57, %v1401_v56  ;;  %v4020_v56 = vld [vmem:[%s6002_s8 + $0xe4] sm:$0xf]  ;;  %v3375_v57 = vor.u32 %v4021_v55, %v3374_v32  ;;  %v4031_v32 = vld [vmem:[%s6004_s10 + $0xb8] sm:$0xff] }
 0x97f   :  { %v4039_v55 = vld [vmem:[%s6004_s10 + $0xf8] sm:$0xff] }
 0x980   :  { %4130 = vrcp.f32 %v1405_v59  ;;  %v3376_v59 = vld [vmem:[%s6002_s8 + $0xe8] sm:$0xf0] }
 0x986   :  { %v4131_v60 = vpop.eup %4130 }
 0x987   :  { %1414 = vrot.lane.b32.xlu0 %v4131_v60, %s4185_s15  ;;  %1411 = vrot.lane.b32.xlu2 %v4131_v60, %s4187_s17 }
 0x988   :  { %1408 = vrot.lane.b32.xlu1 %v4131_v60, %s4186_s16 }
 0x9e1   :  { %v1412_v1 = vpop.permute.xlu2 %1411 }
 0x9f9   :  { %v1415_v8 = vpop.permute.xlu0 %1414 }
 0x9fa   :  { %v1409_v0 = vpop.permute.xlu1 %1408 }
 0x9fb   :  { %v1417_v52 = vsel %vm431_vm1, %v4131_v60, %v1409_v0  ;;  %v3379_v60 = vor.u32 %v4020_v56, %v3376_v59  ;;  %v3366_v0 = vld [vmem:[%s6002_s8 + $0xd0] sm:$0xf] }
 0x9fc   :  { %v1418_v11 = vsel %vm433_vm2, %v1417_v52, %v1412_v1  ;;  %v4019_v1 = vld [vmem:[%s6002_s8 + $0xd4] sm:$0xf0]  ;;  %v4018_v52 = vld [vmem:[%s6002_s8 + $0xd4] sm:$0xf] }
 0x9fd   :  { %v1419_v27 = vsel %vm435_vm3, %v1418_v11, %v1415_v8  ;;  %v3367_v8 = vor.u32 %v4019_v1, %v3366_v0  ;;  %v3368_v11 = vld [vmem:[%s6002_s8 + $0xd8] sm:$0xf0]  ;;  %v4030_v56 = vld [vmem:[%s6004_s10 + $0xb0] sm:$0xff]  ;;  %v4029_v1 = vld [vmem:[%s6004_s10 + $0xa8] sm:$0xff] }
 0x9fe   :  { %v1420_v12 = vmul.f32 %v4129_v50, %v1419_v27  ;;  %v3371_v27 = vor.u32 %v4018_v52, %v3368_v11  ;;  %v4037_v52 = vld [vmem:[%s6004_s10 + $0xe8] sm:$0xff]  ;;  %v4028_v11 = vld [vmem:[%s6004_s10 + $0xa0] sm:$0xff] }
 0xa00   :  { %v1421_v15 = vpack.c.bf16 %v1420_v12, %v1420_v12  ;;  %v3358_v12 = vld [vmem:[%s6002_s8 + $0xc0] sm:$0xf] }
 0xa02   :  { %3304 = vmatmul.msk.bf16.vlgmr.msrb.gmra.mxu3 %vm549_vm4, %v1421_v15  ;;  %3305 = vmatmul.msk.bf16.vlgmr.msrb.gmra.mxu0 %vm549_vm4, %v1421_v15 }
 0xa03   :  { %3306 = vmatmul.msk.bf16.vlgmr.msra.gmra.mxu1 %vm549_vm4, %v1421_v15  ;;  %1796 = vmatpush.bf16.msrb.mxu0 %v4031_v32 }
 0xa04   :  { %1809 = vmatpush.bf16.msra.mxu1 %v4039_v55 }
 0xa07   :  { %1797 = vmatpush.bf16.msrb.mxu0 %v4030_v56 }
 0xa0b   :  { %1798 = vmatpush.bf16.msrb.mxu0 %v4029_v1 }
 0xa0f   :  { %1799 = vmatpush.bf16.msrb.mxu0 %v4028_v11 }
 0xa12   :  { %3307 = vmatmul.msk.bf16.vlgmr.msra.gmra.mxu3 %vm549_vm4, %v1421_v15  ;;  %v4017_v15 = vld [vmem:[%s6002_s8 + $0xc4] sm:$0xf0] }
 0xa7f   :  { %v1447_v14 = vpop.f32.mrf.mxu0 }
 0xa80   :  { %v1460_v17 = vpop.f32.mrf.mxu1  ;;  %v1478_v36 = vmul.f32 %v1447_v14, %v5239_v31  ;;  %v4016_v14 = vld [vmem:[%s6002_s8 + $0xc4] sm:$0xf] }
 0xa81   :  { %v1479_v38 = vmul.f32 %v1460_v17, %v5235_v3  ;;  %v4022_v3 = vld [vmem:[%s6002_s8 + $0xf4] sm:$0xf]  ;;  %v3359_v17 = vor.u32 %v4017_v15, %v3358_v12  ;;  %v5415_v15 = vld [vmem:[%s5998_s4 + $0x20] sm:$0xff] }
 0xa85   :  { %v1434_v34 = vpop.f32.mrf.mxu3 }
 0xa86   :  { %v1477_v45 = vmul.f32 %v1434_v34, %v1308_v30  ;;  %v4023_v30 = vld [vmem:[%s6002_s8 + $0xf4] sm:$0xf0]  ;;  %v3360_v34 = vld [vmem:[%s6002_s8 + $0xc8] sm:$0xf0] }
 0xa87   :  { %v1449_v5 = vpop.f32.mrf.mxu0 }
 0xa88   :  { %v1462_v9 = vpop.f32.mrf.mxu1  ;;  %v1482_v20 = vadd.f32 %v1481_v35, %v1477_v45  ;;  %v3363_v5 = vor.u32 %v4016_v14, %v3360_v34  ;;  %v4015_v45 = vld [vmem:[%s6002_s8 + $0xb4] sm:$0xf0]  ;;  %v4014_v35 = vld [vmem:[%s6002_s8 + $0xb4] sm:$0xf] }
 0xa89   :  { %v3350_v9 = vld [vmem:[%s6002_s8 + $0xb0] sm:$0xf]  ;;  %v4027_v34 = vld [vmem:[%s6004_s10 + $0x98] sm:$0xff] }
 0xa8a   :  { %v1483_v21 = vadd.f32 %v1482_v20, %v1478_v36  ;;  %v3352_v20 = vld [vmem:[%s6002_s8 + $0xb8] sm:$0xf0]  ;;  %1800 = vmatpush.bf16.msrb.mxu0 %v4027_v34 }
 0xa8b   :  { %v3355_v36 = vor.u32 %v4014_v35, %v3352_v20  ;;  %v4034_v20 = vld [vmem:[%s6004_s10 + $0xd0] sm:$0xff] }
 0xa8c   :  { %v1484_v24 = vadd.f32 %v1483_v21, %v1479_v38  ;;  %v3342_v21 = vld [vmem:[%s6002_s8 + $0xa0] sm:$0xf]  ;;  %v4013_v38 = vld [vmem:[%s6002_s8 + $0xa4] sm:$0xf0] }
 0xa8d   :  { %v1436_v19 = vpop.f32.mrf.mxu3 }
 0xa8e   :  { %v3351_v19 = vor.u32 %v4015_v45, %v3350_v9  ;;  %v5428_v45 = vld [vmem:[%s5998_s4 + $0x18] sm:$0xff] }
 0xa95   :  { %v1473_v22 = vpop.f32.mrf.mxu3 }
 0xa96   :  { %v1480_v23 = vmul.f32 %v1473_v22, %v5237_v6  ;;  %v3383_v6 = vor.u32 %v4023_v30, %v3382_v40  ;;  %v4012_v22 = vld [vmem:[%s6002_s8 + $0xa4] sm:$0xf]  ;;  %v3336_v30 = vld [vmem:[%s6002_s8 + $0x98] sm:$0xf0] }
 0xa98   :  { %v1485_v25 = vadd.f32 %v1484_v24, %v1480_v23  ;;  %1636 = vmatpush.bf16.msra.mxu2 %v3383_v6  ;;  %v3343_v23 = vor.u32 %v4013_v38, %v3342_v21  ;;  %v3344_v24 = vld [vmem:[%s6002_s8 + $0xa8] sm:$0xf0]  ;;  %v3326_v6 = vld [vmem:[%s6002_s8 + $0x80] sm:$0xf]  ;;  %v5441_v21 = vld [vmem:[%s5998_s4 + $0x10] sm:$0xff] }
 0xa9a   :  { %v1486_v26 = vadd.f32 %v1485_v25, %v5211_v16  ;;  %v3384_v16 = vld [vmem:[%s6002_s8 + $0xf8] sm:$0xf0]  ;;  %v3347_v25 = vor.u32 %v4012_v22, %v3344_v24  ;;  %v1528_v22 = vperm.slane %v4905_v61, 1  ;;  %v5449_v24 = vld [vmem:[%s5998_s4 + $0x8] sm:$0xff] }
 0xa9b   :  { %v3387_v31 = vor.u32 %v4022_v3, %v3384_v16  ;;  %v4009_v16 = vld [vmem:[%s6002_s8 + $0x84] sm:$0xf0] }
 0xa9c   :  { %v1487_v28 = vpack.c.bf16 %v1486_v26, %v1486_v26  ;;  %1637 = vmatpush.bf16.msra.mxu2 %v3375_v57  ;;  %v4038_v57 = vld [vmem:[%s6004_s10 + $0xf0] sm:$0xff] }
 0xa9d   :  { %v1475_v39 = vpop.f32.mrf.mxu3  ;;  %1649 = vmatpush.bf16.msrb.mxu3 %v3387_v31  ;;  %v4008_v31 = vld [vmem:[%s6002_s8 + $0x84] sm:$0xf]  ;;  %1810 = vmatpush.bf16.msra.mxu1 %v4038_v57 }
 0xa9e   :  { %1496 = vmatmul.bf16.vlgmr.msra.gmra.mxu0 %v1487_v28  ;;  %v4011_v28 = vld [vmem:[%s6002_s8 + $0x94] sm:$0xf0]  ;;  %v4010_v39 = vld [vmem:[%s6002_s8 + $0x94] sm:$0xf] }
 0xa9f   :  { %v3339_v3 = vor.u32 %v4010_v39, %v3336_v30  ;;  %v5460_v39 = vld [vmem:[%s5998_s4] sm:$0xff]  ;;  %v4025_v30 = vld [vmem:[%s6004_s10 + $0x88] sm:$0xff] }
 0xaa0   :  { %1638 = vmatpush.bf16.msra.mxu2 %v3367_v8  ;;  %v5402_v8 = vld [vmem:[%s5998_s4 + $0x28] sm:$0xff] }
 0xaa1   :  { %1650 = vmatpush.bf16.msrb.mxu3 %v3379_v60  ;;  %v5389_v60 = vld [vmem:[%s5998_s4 + $0x30] sm:$0xff]  ;;  %1811 = vmatpush.bf16.msra.mxu1 %v4037_v52 }
 0xaa4   :  { %1639 = vmatpush.bf16.msra.mxu2 %v3359_v17 }
 0xaa5   :  { %1651 = vmatpush.bf16.msrb.mxu3 %v3371_v27  ;;  %v4036_v27 = vld [vmem:[%s6004_s10 + $0xe0] sm:$0xff] }
 0xaa6   :  { %1812 = vmatpush.bf16.msra.mxu1 %v4036_v27 }
 0xaa8   :  { %1640 = vmatpush.bf16.msra.mxu2 %v3351_v19  ;;  %v4026_v19 = vld [vmem:[%s6004_s10 + $0x90] sm:$0xff] }
 0xaa9   :  { %1652 = vmatpush.bf16.msrb.mxu3 %v3363_v5  ;;  %v4035_v5 = vld [vmem:[%s6004_s10 + $0xd8] sm:$0xff]  ;;  %1801 = vmatpush.bf16.msrb.mxu0 %v4026_v19 }
 0xaaa   :  { %1813 = vmatpush.bf16.msra.mxu1 %v4035_v5 }
 0xaac   :  { %1641 = vmatpush.bf16.msra.mxu2 %v3343_v23 }
 0xaad   :  { %1653 = vmatpush.bf16.msrb.mxu3 %v3355_v36  ;;  %1802 = vmatpush.bf16.msrb.mxu0 %v4025_v30  ;;  %v3682_v30 = vld [vmem:[%s5996_s2 + $0x3a0] sm:$0xf] }
 0xaae   :  { %1814 = vmatpush.bf16.msra.mxu1 %v4034_v20  ;;  %v3674_v20 = vld [vmem:[%s5996_s2 + $0x398] sm:$0xf] }
 0xab1   :  { %1654 = vmatpush.bf16.msrb.mxu3 %v3347_v25 }
 0xab5   :  { %1655 = vmatpush.bf16.msrb.mxu3 %v3339_v3  ;;  %v4033_v3 = vld [vmem:[%s6004_s10 + $0xc8] sm:$0xff] }
 0xab6   :  { %1815 = vmatpush.bf16.msra.mxu1 %v4033_v3  ;;  %v4078_v3 = vld [vmem:[%s5996_s2 + $0x3b0] sm:$0xf0] }
 0xb1b   :  { %v1497_v41 = vpop.f32.mrf.mxu0 }
 0xb1c   :  { %v5279_v42 = vsub.f32 %v1486_v26, %v1497_v41  ;;  %v3334_v26 = vld [vmem:[%s6002_s8 + $0x90] sm:$0xf]  ;;  %v3327_v41 = vor.u32 %v4009_v16, %v3326_v6  ;;  %v4024_v6 = vld [vmem:[%s6004_s10 + $0x80] sm:$0xff] }
 0xb1d   :  { %v3335_v40 = vor.u32 %v4011_v28, %v3334_v26  ;;  %v1530_v26 = vperm.slane %v4912_v4, 1  ;;  %v4032_v16 = vld [vmem:[%s6004_s10 + $0xc0] sm:$0xff]  ;;  %1803 = vmatpush.bf16.msrb.mxu0 %v4024_v6  ;;  %v4067_v6 = vld [vmem:[%s5996_s2 + $0x358] sm:$0xf0] }
 0xb1e   :  { %v1502_v46 = vmul.f32 %v5279_v42, %v5279_v42  ;;  %1816 = vmatpush.bf16.msra.mxu1 %v4032_v16 }
 0xb1f   :  { %1642 = vmatpush.bf16.msra.mxu2 %v3335_v40 }
 0xb20   :  { %v1503_v50 = vpack.c.bf16 %v1502_v46, %v1502_v46  ;;  %v3328_v46 = vld [vmem:[%s6002_s8 + $0x88] sm:$0xf0] }
 0xb22   :  { %1512 = vmatmul.bf16.vlgmr.msrb.gmra.mxu1 %v1503_v50  ;;  %v3331_v50 = vor.u32 %v4008_v31, %v3328_v46  ;;  %v1550_v31 = vperm.slane %v4940_v18, 1 }
 0xb23   :  { %v1499_v51 = vpop.f32.mrf.mxu0  ;;  %1643 = vmatpush.bf16.msra.mxu2 %v3327_v41  ;;  %v1551_v41 = vperm.slane %v4940_v18, 5 }
 0xb24   :  { %1656 = vmatpush.bf16.msrb.mxu3 %v3331_v50  ;;  %v5370_v51 = vld [vmem:[%s5998_s4 + $0x38] sm:$0xff]  ;;  %v1554_v46 = vperm.slane %v1550_v31, 1  ;;  %v3683_v31 = vor.u32 %v4078_v3, %v3682_v30  ;;  %v4068_v30 = vld [vmem:[%s5996_s2 + $0x360] sm:$0xf0]  ;;  %v4066_v3 = vld [vmem:[%s5996_s2 + $0x354] sm:$0xf] }
 0xb25   :  { %v1555_v50 = vperm.slane %v1551_v41, 1  ;;  %v4076_v41 = vld [vmem:[%s5996_s2 + $0x3a4] sm:$0xf] }
 0xb27   :  { %1824 = vmatpush.bf16.msrb.mxu2 %v5370_v51 }
 0xb28   :  { %1840 = vmatpush.bf16.msra.mxu3 %v5370_v51 }
 0xb2b   :  { %1825 = vmatpush.bf16.msrb.mxu2 %v5389_v60 }
 0xb2c   :  { %1841 = vmatpush.bf16.msra.mxu3 %v5389_v60 }
 0xb2f   :  { %1826 = vmatpush.bf16.msrb.mxu2 %v5402_v8 }
 0xb30   :  { %1842 = vmatpush.bf16.msra.mxu3 %v5402_v8 }
 0xb33   :  { %1827 = vmatpush.bf16.msrb.mxu2 %v5415_v15 }
 0xb34   :  { %1843 = vmatpush.bf16.msra.mxu3 %v5415_v15 }
 0xb37   :  { %1828 = vmatpush.bf16.msrb.mxu2 %v5428_v45 }
 0xb38   :  { %1844 = vmatpush.bf16.msra.mxu3 %v5428_v45 }
 0xb3b   :  { %1829 = vmatpush.bf16.msrb.mxu2 %v5441_v21 }
 0xb3c   :  { %1845 = vmatpush.bf16.msra.mxu3 %v5441_v21 }
 0xb3f   :  { %1830 = vmatpush.bf16.msrb.mxu2 %v5449_v24 }
 0xb40   :  { %1846 = vmatpush.bf16.msra.mxu3 %v5449_v24 }
 0xb43   :  { %1831 = vmatpush.bf16.msrb.mxu2 %v5460_v39 }
 0xb44   :  { %1847 = vmatpush.bf16.msra.mxu3 %v5460_v39 }
 0xb9f   :  { %v1513_v59 = vpop.f32.mrf.mxu1 }
 0xba0   :  { %v1514_v0 = vadd.f32 1e-05, %v1513_v59 }
 0xba2   :  { %4132 = vrsqrt.f32 %v1514_v0  ;;  %vm1523_vm13 = vweird.f32 %v1514_v0 }
 0xba7   :  { %v1515_v12 = vpop.f32.mrf.mxu1 }
 0xba8   :  { %v4133_v14 = vpop.eup %4132  ;;  %v1699_v12 = vperm.slane %v4947_v49, 1  ;;  %v3654_v49 = vld [vmem:[%s5996_s2 + $0x370] sm:$0xf] }
 0xba9   :  { %v1518_v17 = vmul.f32 %v4133_v14, %v1514_v0  ;;  %vm1524_vm12 = vweird.f32 %v4133_v14 }
 0xbaa   :  { %vm1525_vm14 = vmor %vm1523_vm13, %vm1524_vm12 }
 0xbab   :  { %v1519_v9 = vmul.f32 %v4133_v14, %v1518_v17 }
 0xbad   :  { %v1520_v35 = vmul.f32 0.5, %v1519_v9 }
 0xbaf   :  { %v1521_v36 = vsub.f32 1.5, %v1520_v35 }
 0xbb1   :  { %v1522_v38 = vmul.f32 %v4133_v14, %v1521_v36  ;;  %v4077_v36 = vld [vmem:[%s5996_s2 + $0x3a8] sm:$0xf0] }
 0xbb3   :  { %v1526_v23 = vsel %vm1525_vm14, %v4133_v14, %v1522_v38  ;;  %v3675_v38 = vor.u32 %v4077_v36, %v3674_v20 }
 0xbb4   :  { %v1527_v25 = vmul.f32 %v1526_v23, %v5279_v42  ;;  %v4072_v23 = vld [vmem:[%s5996_s2 + $0x380] sm:$0xf0] }
 0xbb5   :  { %2124 = vmatpush.bf16.msra.mxu0 %v3675_v38  ;;  %v4052_v38 = vld [vmem:[%s5996_s2 + $0x2e0] sm:$0xf0] }
 0xbb6   :  { %v1529_v28 = vmul.f32 %v1528_v22, %v1527_v25  ;;  %v3634_v25 = vld [vmem:[%s5996_s2 + $0x348] sm:$0xf] }
 0xbb8   :  { %v1531_v40 = vadd.f32 %v1530_v26, %v1529_v28  ;;  %v4075_v28 = vld [vmem:[%s5996_s2 + $0x39c] sm:$0xf] }
 0xbba   :  { %v1549_v42 = vpack.c.bf16 %v1531_v40, %v1531_v40 }
 0xbbc   :  { %1644 = vmatmul.bf16.vlgmr.msra.gmra.mxu2 %v1549_v42  ;;  %1657 = vmatmul.bf16.vlgmr.msrb.gmra.mxu3 %v1549_v42  ;;  %v3676_v42 = vld [vmem:[%s5996_s2 + $0x3ac] sm:$0xf0] }
 0xbbd   :  { %v3679_v16 = vor.u32 %v4075_v28, %v3676_v42  ;;  %2150 = vmatpush.bf16.msra.mxu2 %v3683_v31  ;;  %v3636_v28 = vld [vmem:[%s5996_s2 + $0x35c] sm:$0xf0] }
 0xbbf   :  { %2137 = vmatpush.bf16.msrb.mxu1 %v3679_v16 }
 0xc3f   :  { %v1645_v32 = vpop.f32.mrf.mxu2  ;;  %v1658_v55 = vpop.f32.mrf.mxu3 }
 0xc40   :  { %v1646_v56 = vadd.f32 %v1645_v32, %v1554_v46  ;;  %v1659_v57 = vadd.f32 %v1658_v55, %v1555_v50  ;;  %v3684_v46 = vld [vmem:[%s5996_s2 + $0x3b4] sm:$0xf0]  ;;  %v3635_v32 = vor.u32 %v4067_v6, %v3634_v25  ;;  %v3614_v55 = vld [vmem:[%s5996_s2 + $0x320] sm:$0xf]  ;;  %v4065_v25 = vld [vmem:[%s5996_s2 + $0x34c] sm:$0xf] }
 0xc41   :  { %v3687_v50 = vor.u32 %v4076_v41, %v3684_v46  ;;  %v3639_v42 = vor.u32 %v4065_v25, %v3636_v28  ;;  %v3644_v6 = vld [vmem:[%s5996_s2 + $0x364] sm:$0xf0]  ;;  %v4047_v46 = vld [vmem:[%s5996_s2 + $0x2b8] sm:$0xf0]  ;;  %v4050_v28 = vld [vmem:[%s5996_s2 + $0x2d4] sm:$0xf] }
 0xc42   :  { %v1662_v59 = vmax.f32 %v1646_v56, 0.0  ;;  %v1663_v0 = vmax.f32 %v1659_v57, 0.0  ;;  %v4062_v56 = vld [vmem:[%s5996_s2 + $0x330] sm:$0xf0]  ;;  %v3647_v31 = vor.u32 %v4066_v3, %v3644_v6  ;;  %v3554_v41 = vld [vmem:[%s5996_s2 + $0x2a8] sm:$0xf] }
 0xc43   :  { %2163 = vmatpush.bf16.msrb.mxu3 %v3687_v50  ;;  %v3615_v57 = vor.u32 %v4062_v56, %v3614_v55  ;;  %v3555_v50 = vor.u32 %v4047_v46, %v3554_v41  ;;  %v3616_v55 = vld [vmem:[%s5996_s2 + $0x334] sm:$0xf0]  ;;  %v3622_v56 = vld [vmem:[%s5996_s2 + $0x328] sm:$0xf]  ;;  %v4053_v3 = vld [vmem:[%s5996_s2 + $0x2e8] sm:$0xf0] }
 0xc44   :  { %v1697_v1 = vpack.c.bf16 %v1662_v59, %v1662_v59  ;;  %v1698_v52 = vpack.c.bf16 %v1663_v0, %v1663_v0  ;;  %v4051_v6 = vld [vmem:[%s5996_s2 + $0x2dc] sm:$0xf]  ;;  %v3670_v46 = vld [vmem:[%s5996_s2 + $0x380] sm:$0xf] }
 0xc46   :  { %1804 = vmatmul.bf16.vlgmr.msrb.gmra.mxu0 %v1697_v1  ;;  %1817 = vmatmul.bf16.vlgmr.msra.gmra.mxu1 %v1698_v52 }
 0xc47   :  { %v1647_v11 = vpop.f32.mrf.mxu2  ;;  %v1660_v27 = vpop.f32.mrf.mxu3 }
 0xc48   :  { %v3594_v27 = vld [vmem:[%s5996_s2 + $0x2f8] sm:$0xf] }
 0xcc3   :  { %v1805_v14 = vpop.f32.mrf.mxu0  ;;  %v1818_v17 = vpop.f32.mrf.mxu1 }
 0xcc4   :  { %v1806_v34 = vadd.f32 %v1805_v14, %v1699_v12  ;;  %v4057_v12 = vld [vmem:[%s5996_s2 + $0x308] sm:$0xf0] }
 0xcc5   :  { %v3595_v14 = vor.u32 %v4057_v12, %v3594_v27  ;;  %v3534_v12 = vld [vmem:[%s5996_s2 + $0x280] sm:$0xf] }
 0xcc6   :  { %v1819_v18 = vadd.f32 %v1818_v17, %v1806_v34  ;;  %v4070_v17 = vld [vmem:[%s5996_s2 + $0x374] sm:$0xf]  ;;  %v3656_v34 = vld [vmem:[%s5996_s2 + $0x384] sm:$0xf0] }
 0xcc8   :  { %v1822_v5 = vadd.f32 %v1819_v18, %v1531_v40  ;;  %v3655_v40 = vor.u32 %v4072_v23, %v3654_v49  ;;  %v3662_v18 = vld [vmem:[%s5996_s2 + $0x378] sm:$0xf]  ;;  %v3574_v49 = vld [vmem:[%s5996_s2 + $0x2d0] sm:$0xf] }
 0xcc9   :  { %v3575_v23 = vor.u32 %v4052_v38, %v3574_v49  ;;  %v3690_v38 = vld [vmem:[%s5996_s2 + $0x3a8] sm:$0xf] }
 0xcca   :  { %v1823_v9 = vpack.c.bf16 %v1822_v5, %v1822_v5  ;;  %2125 = vmatpush.bf16.msra.mxu0 %v3655_v40  ;;  %v3642_v40 = vld [vmem:[%s5996_s2 + $0x350] sm:$0xf] }
 0xccb   :  { %v1807_v35 = vpop.f32.mrf.mxu0  ;;  %v1820_v19 = vpop.f32.mrf.mxu1  ;;  %v3643_v16 = vor.u32 %v4068_v30, %v3642_v40  ;;  %v3576_v40 = vld [vmem:[%s5996_s2 + $0x2e4] sm:$0xf0] }
 0xccc   :  { %1832 = vmatmul.bf16.vlgmr.msrb.gmra.mxu2 %v1823_v9  ;;  %v4073_v9 = vld [vmem:[%s5996_s2 + $0x388] sm:$0xf0]  ;;  %v4071_v35 = vld [vmem:[%s5996_s2 + $0x37c] sm:$0xf]  ;;  %v3664_v19 = vld [vmem:[%s5996_s2 + $0x38c] sm:$0xf0]  ;;  %v3579_v30 = vor.u32 %v4050_v28, %v3576_v40 }
 0xccd   :  { %v3663_v20 = vor.u32 %v4073_v9, %v3662_v18  ;;  %v3667_v36 = vor.u32 %v4071_v35, %v3664_v19  ;;  %v3596_v18 = vld [vmem:[%s5996_s2 + $0x30c] sm:$0xf0]  ;;  %v4058_v35 = vld [vmem:[%s5996_s2 + $0x310] sm:$0xf0]  ;;  %v4056_v19 = vld [vmem:[%s5996_s2 + $0x304] sm:$0xf] }
 0xcce   :  { %2126 = vmatpush.bf16.msra.mxu0 %v3635_v32  ;;  %v4060_v32 = vld [vmem:[%s5996_s2 + $0x324] sm:$0xf]  ;;  %v3610_v40 = vld [vmem:[%s5996_s2 + $0x308] sm:$0xf] }
 0xccf   :  { %2151 = vmatpush.bf16.msra.mxu2 %v3663_v20  ;;  %2164 = vmatpush.bf16.msrb.mxu3 %v3667_v36  ;;  %v3604_v20 = vld [vmem:[%s5996_s2 + $0x314] sm:$0xf0] }
 0xcd0   :  { %v3607_v49 = vor.u32 %v4056_v19, %v3604_v20  ;;  %v4043_v19 = vld [vmem:[%s5996_s2 + $0x298] sm:$0xf0]  ;;  %v4041_v20 = vld [vmem:[%s5996_s2 + $0x28c] sm:$0xf] }
 0xcd2   :  { %2127 = vmatpush.bf16.msra.mxu0 %v3615_v57  ;;  %v3619_v57 = vor.u32 %v4060_v32, %v3616_v55  ;;  %v4045_v55 = vld [vmem:[%s5996_s2 + $0x2ac] sm:$0xf] }
 0xcd3   :  { %2152 = vmatpush.bf16.msra.mxu2 %v3643_v16  ;;  %2165 = vmatpush.bf16.msrb.mxu3 %v3647_v31  ;;  %v3584_v16 = vld [vmem:[%s5996_s2 + $0x2ec] sm:$0xf0] }
 0xcd4   :  { %v3587_v41 = vor.u32 %v4051_v6, %v3584_v16  ;;  %v4054_v6 = vld [vmem:[%s5996_s2 + $0x2f0] sm:$0xf0] }
 0xcd6   :  { %2128 = vmatpush.bf16.msra.mxu0 %v3595_v14  ;;  %v4042_v14 = vld [vmem:[%s5996_s2 + $0x290] sm:$0xf0] }
 0xcda   :  { %2129 = vmatpush.bf16.msra.mxu0 %v3575_v23  ;;  %v4079_v23 = vld [vmem:[%s5996_s2 + $0x3b8] sm:$0xf0] }
 0xcdb   :  { %v3691_v25 = vor.u32 %v4079_v23, %v3690_v38  ;;  %v3630_v23 = vld [vmem:[%s5996_s2 + $0x330] sm:$0xf] }
 0xcde   :  { %2130 = vmatpush.bf16.msra.mxu0 %v3555_v50  ;;  %v4074_v50 = vld [vmem:[%s5996_s2 + $0x390] sm:$0xf0] }
 0xcdf   :  { %v3671_v32 = vor.u32 %v4074_v50, %v3670_v46  ;;  %v4049_v46 = vld [vmem:[%s5996_s2 + $0x2c8] sm:$0xf0] }
 0xd4f   :  { %v1833_v59 = vpop.f32.mrf.mxu2 }
 0xd50   :  { %v5523_v0 = vsub.f32 %v1822_v5, %v1833_v59  ;;  %v3659_v5 = vor.u32 %v4070_v17, %v3656_v34  ;;  %v4063_v59 = vld [vmem:[%s5996_s2 + $0x338] sm:$0xf0]  ;;  %v3535_v17 = vor.u32 %v4042_v14, %v3534_v12  ;;  %v3650_v14 = vld [vmem:[%s5996_s2 + $0x358] sm:$0xf] }
 0xd51   :  { %v4055_v34 = vld [vmem:[%s5996_s2 + $0x2fc] sm:$0xf] }
 0xd52   :  { %v1838_v1 = vmul.f32 %v5523_v0, %v5523_v0  ;;  %2138 = vmatpush.bf16.msrb.mxu1 %v3659_v5  ;;  %v3602_v5 = vld [vmem:[%s5996_s2 + $0x300] sm:$0xf]  ;;  %v3599_v9 = vor.u32 %v4055_v34, %v3596_v18  ;;  %2131 = vmatpush.bf16.msra.mxu0 %v3535_v17  ;;  %v4069_v17 = vld [vmem:[%s5996_s2 + $0x368] sm:$0xf0]  ;;  %v4040_v18 = vld [vmem:[%s5996_s2 + $0x284] sm:$0xf] }
 0xd53   :  { %v3603_v36 = vor.u32 %v4058_v35, %v3602_v5  ;;  %v3651_v34 = vor.u32 %v4069_v17, %v3650_v14  ;;  %v3536_v5 = vld [vmem:[%s5996_s2 + $0x294] sm:$0xf0] }
 0xd54   :  { %v1839_v52 = vpack.c.bf16 %v1838_v1, %v1838_v1  ;;  %v4061_v1 = vld [vmem:[%s5996_s2 + $0x32c] sm:$0xf]  ;;  %v3539_v35 = vor.u32 %v4040_v18, %v3536_v5 }
 0xd56   :  { %1848 = vmatmul.bf16.vlgmr.msra.gmra.mxu3 %v1839_v52  ;;  %2139 = vmatpush.bf16.msrb.mxu1 %v3639_v42  ;;  %v3624_v52 = vld [vmem:[%s5996_s2 + $0x33c] sm:$0xf0]  ;;  %v3582_v42 = vld [vmem:[%s5996_s2 + $0x2d8] sm:$0xf] }
 0xd57   :  { %v1835_v11 = vpop.f32.mrf.mxu2  ;;  %v3627_v27 = vor.u32 %v4061_v1, %v3624_v52  ;;  %2176 = vmatpush.bf16.msrb.mxu0 %v3691_v25  ;;  %v3583_v31 = vor.u32 %v4053_v3, %v3582_v42  ;;  %v4048_v1 = vld [vmem:[%s5996_s2 + $0x2c0] sm:$0xf0]  ;;  %v4046_v52 = vld [vmem:[%s5996_s2 + $0x2b4] sm:$0xf]  ;;  %v4059_v42 = vld [vmem:[%s5996_s2 + $0x318] sm:$0xf0] }
 0xd58   :  { %v3623_v11 = vor.u32 %v4063_v59, %v3622_v56  ;;  %v3556_v56 = vld [vmem:[%s5996_s2 + $0x2bc] sm:$0xf0]  ;;  %v4064_v25 = vld [vmem:[%s5996_s2 + $0x340] sm:$0xf0] }
 0xd59   :  { %2166 = vmatpush.bf16.msrb.mxu3 %v3627_v27  ;;  %v3559_v59 = vor.u32 %v4045_v55, %v3556_v56  ;;  %v3631_v28 = vor.u32 %v4064_v25, %v3630_v23  ;;  %v3590_v3 = vld [vmem:[%s5996_s2 + $0x2e0] sm:$0xf] }
 0xd5a   :  { %2140 = vmatpush.bf16.msrb.mxu1 %v3619_v57  ;;  %2153 = vmatpush.bf16.msra.mxu2 %v3623_v11  ;;  %v3562_v57 = vld [vmem:[%s5996_s2 + $0x2b0] sm:$0xf]  ;;  %v3564_v11 = vld [vmem:[%s5996_s2 + $0x2c4] sm:$0xf0] }
 0xd5b   :  { %2177 = vmatpush.bf16.msrb.mxu0 %v3671_v32  ;;  %v3563_v27 = vor.u32 %v4048_v1, %v3562_v57  ;;  %v3567_v12 = vor.u32 %v4046_v52, %v3564_v11 }
 0xd5d   :  { %2167 = vmatpush.bf16.msrb.mxu3 %v3607_v49 }
 0xd5e   :  { %2141 = vmatpush.bf16.msrb.mxu1 %v3599_v9  ;;  %2154 = vmatpush.bf16.msra.mxu2 %v3603_v36  ;;  %v3542_v9 = vld [vmem:[%s5996_s2 + $0x288] sm:$0xf]  ;;  %v3544_v36 = vld [vmem:[%s5996_s2 + $0x29c] sm:$0xf0] }
 0xd5f   :  { %2178 = vmatpush.bf16.msrb.mxu0 %v3651_v34  ;;  %v3543_v49 = vor.u32 %v4043_v19, %v3542_v9  ;;  %v3547_v38 = vor.u32 %v4041_v20, %v3544_v36 }
 0xd61   :  { %2168 = vmatpush.bf16.msrb.mxu3 %v3587_v41  ;;  %v3591_v41 = vor.u32 %v4054_v6, %v3590_v3 }
 0xd62   :  { %2142 = vmatpush.bf16.msrb.mxu1 %v3579_v30  ;;  %2155 = vmatpush.bf16.msra.mxu2 %v3583_v31  ;;  %v3611_v30 = vor.u32 %v4059_v42, %v3610_v40 }
 0xd63   :  { %2179 = vmatpush.bf16.msrb.mxu0 %v3631_v28 }
 0xd65   :  { %2169 = vmatpush.bf16.msrb.mxu3 %v3567_v12 }
 0xd66   :  { %2143 = vmatpush.bf16.msrb.mxu1 %v3559_v59  ;;  %2156 = vmatpush.bf16.msra.mxu2 %v3563_v27 }
 0xd67   :  { %2180 = vmatpush.bf16.msrb.mxu0 %v3611_v30 }
 0xd69   :  { %2170 = vmatpush.bf16.msrb.mxu3 %v3547_v38 }
 0xd6a   :  { %2144 = vmatpush.bf16.msrb.mxu1 %v3539_v35  ;;  %2157 = vmatpush.bf16.msra.mxu2 %v3543_v49 }
 0xd6b   :  { %2181 = vmatpush.bf16.msrb.mxu0 %v3591_v41 }
 0xd6d   :  { %2280 = vmatpush.bf16.msra.mxu3 %v4580_v43  ;;  %v4044_v43 = vld [vmem:[%s5996_s2 + $0x2a0] sm:$0xf0] }
 0xd6e   :  { %2254 = vmatpush.bf16.msra.mxu1 %v4545_v29  ;;  %2267 = vmatpush.bf16.msrb.mxu2 %v4554_v33  ;;  %v3570_v29 = vld [vmem:[%s5996_s2 + $0x2b8] sm:$0xf] }
 0xd6f   :  { %v3571_v33 = vor.u32 %v4049_v46, %v3570_v29 }
 0xd71   :  { %2281 = vmatpush.bf16.msra.mxu3 %v4596_v48  ;;  %2182 = vmatpush.bf16.msrb.mxu0 %v3571_v33 }
 0xd72   :  { %2255 = vmatpush.bf16.msra.mxu1 %v4566_v37  ;;  %2268 = vmatpush.bf16.msrb.mxu2 %v4583_v44  ;;  %v3550_v37 = vld [vmem:[%s5996_s2 + $0x290] sm:$0xf] }
 0xd73   :  { %v3551_v48 = vor.u32 %v4044_v43, %v3550_v37 }
 0xd75   :  { %2282 = vmatpush.bf16.msra.mxu3 %v4616_v54  ;;  %2183 = vmatpush.bf16.msrb.mxu0 %v3551_v48 }
 0xd76   :  { %2256 = vmatpush.bf16.msra.mxu1 %v4592_v47  ;;  %2269 = vmatpush.bf16.msrb.mxu2 %v4611_v53 }
 0xd79   :  { %2283 = vmatpush.bf16.msra.mxu3 %v4642_v63 }
 0xd7a   :  { %2257 = vmatpush.bf16.msra.mxu1 %v4629_v58  ;;  %2270 = vmatpush.bf16.msrb.mxu2 %v4640_v62 }
 0xdd9   :  { %v1849_v16 = vpop.f32.mrf.mxu3 }
 0xdda   :  { %v1850_v31 = vadd.f32 1e-05, %v1849_v16 }
 0xddc   :  { %4134 = vrsqrt.f32 %v1850_v31  ;;  %vm1859_vm0 = vweird.f32 %v1850_v31 }
 0xde1   :  { %v1851_v44 = vpop.f32.mrf.mxu3 }
 0xde2   :  { %v4135_v50 = vpop.eup %4134  ;;  %v4152_v44 = vld [vmem:[%s5999_s5] sm:$0x7] }
 0xde3   :  { %v1854_v32 = vmul.f32 %v4135_v50, %v1850_v31  ;;  %vm1860_vm15 = vweird.f32 %v4135_v50 }
 0xde4   :  { %vm1861_vm5 = vmor %vm1859_vm0, %vm1860_vm15 }
 0xde5   :  { %v1855_v47 = vmul.f32 %v4135_v50, %v1854_v32 }
 0xde7   :  { %v1856_v55 = vmul.f32 0.5, %v1855_v47 }
 0xde9   :  { %v1857_v56 = vsub.f32 1.5, %v1856_v55 }
 0xdeb   :  { %v1858_v57 = vmul.f32 %v4135_v50, %v1857_v56 }
 0xded   :  { %v1862_v53 = vsel %vm1861_vm5, %v4135_v50, %v1858_v57  ;;  %v2306_v50 = vperm.slane %v4152_v44, 2  ;;  %v3732_v44 = vld [vmem:[%s6002_s8 + $0x128] sm:$0xf0] }
 0xdee   :  { %v1863_v54 = vmul.f32 %v1862_v53, %v5523_v0 }
 0xdf0   :  { %v1864_v59 = vmul.f32 %v1863_v54, %v1528_v22 }
 0xdf2   :  { %v5742_v58 = vadd.f32 %v1864_v59, %v1530_v26 }
 0xdf4   :  { %v1915_v62 = vpack.c.bf16 %v5742_v58, %v5742_v58 }
 0xdf6   :  { %2132 = vmatmul.bf16.vlgmr.msra.gmra.mxu0 %v1915_v62  ;;  %2145 = vmatmul.bf16.vlgmr.msrb.gmra.mxu1 %v1915_v62 }
 0xdf7   :  { %2158 = vmatmul.bf16.vlgmr.msra.gmra.mxu2 %v1915_v62  ;;  %2171 = vmatmul.bf16.vlgmr.msrb.gmra.mxu3 %v1915_v62 }
 0xdf8   :  { %2293 = vmatpush.bf16.msrb.mxu1 %v4653_v2  ;;  %2313 = vmatpush.bf16.msra.mxu2 %v5370_v51 }
 0xdf9   :  { %2329 = vmatpush.bf16.msrb.mxu3 %v5370_v51 }
 0xdfc   :  { %2294 = vmatpush.bf16.msrb.mxu1 %v4662_v7  ;;  %2314 = vmatpush.bf16.msra.mxu2 %v5389_v60 }
 0xdfd   :  { %2330 = vmatpush.bf16.msrb.mxu3 %v5389_v60 }
 0xe00   :  { %2295 = vmatpush.bf16.msrb.mxu1 %v4671_v10  ;;  %2315 = vmatpush.bf16.msra.mxu2 %v5402_v8 }
 0xe01   :  { %2331 = vmatpush.bf16.msrb.mxu3 %v5402_v8 }
 0xe04   :  { %2296 = vmatpush.bf16.msrb.mxu1 %v4680_v13  ;;  %2316 = vmatpush.bf16.msra.mxu2 %v5415_v15 }
 0xe05   :  { %2332 = vmatpush.bf16.msrb.mxu3 %v5415_v15 }
 0xe06   :  { %2184 = vmatmul.bf16.vlgmr.msrb.gmra.mxu0 %v1915_v62 }
 0xe08   :  { %2317 = vmatpush.bf16.msra.mxu2 %v5428_v45 }
 0xe09   :  { %2333 = vmatpush.bf16.msrb.mxu3 %v5428_v45 }
 0xe0c   :  { %2318 = vmatpush.bf16.msra.mxu2 %v5441_v21 }
 0xe0d   :  { %2334 = vmatpush.bf16.msrb.mxu3 %v5441_v21 }
 0xe10   :  { %2319 = vmatpush.bf16.msra.mxu2 %v5449_v24 }
 0xe11   :  { %2335 = vmatpush.bf16.msrb.mxu3 %v5449_v24 }
 0xe14   :  { %2320 = vmatpush.bf16.msra.mxu2 %v5460_v39 }
 0xe15   :  { %2336 = vmatpush.bf16.msrb.mxu3 %v5460_v39 }
 0xe73   :  { %v2133_v63 = vpop.f32.mrf.mxu0  ;;  %v5766_v2 = vpop.f32.mrf.mxu1 }
 0xe7a   :  { %v5768_v7 = vpop.f32.mrf.mxu2  ;;  %v5770_v10 = vpop.f32.mrf.mxu3 }
 0xe7b   :  { %v2135_v13 = vpop.f32.mrf.mxu0  ;;  %v2148_v61 = vpop.f32.mrf.mxu1 }
 0xe82   :  { %v2161_v4 = vpop.f32.mrf.mxu2  ;;  %v2174_v22 = vpop.f32.mrf.mxu3 }
 0xe83   :  { %v2185_v26 = vpop.f32.mrf.mxu0 }
 0xe84   :  { %vm2189_vm6 = vcmp.gt.f32.partialorder %v2185_v26, 0.0  ;;  %v2190_v0 = vmul.f32 0.2, %v2185_v26 }
 0xe86   :  { %v2191_v1 = vsel %vm2189_vm6, %v2185_v26, %v2190_v0  ;;  %v4095_v26 = vld [vmem:[%s6002_s8 + $0x174] sm:$0xf0] }
 0xe87   :  { %2193 = vrot.lane.b32.xlu1 %v2191_v1, %s4183_s13 }
 0xe8b   :  { %v2187_v52 = vpop.f32.mrf.mxu0 }
 0xef9   :  { %v2194_v11 = vpop.permute.xlu1 %2193 }
 0xefa   :  { %v2196_v27 = vmax.f32 %v2191_v1, %v2194_v11 }
 0xefc   :  { %2198 = vrot.lane.b32.xlu2 %v2196_v27, %s4184_s14 }
 0xf56   :  { %v2199_v12 = vpop.permute.xlu2 %2198 }
 0xf57   :  { %v2201_v14 = vmax.f32 %v2196_v27, %v2199_v12 }
 0xf59   :  { %2209 = vrot.lane.b32.xlu2 %v2201_v14, %s4185_s15  ;;  %2206 = vrot.lane.b32.xlu1 %v2201_v14, %s4187_s17 }
 0xf5a   :  { %2203 = vrot.lane.b32.xlu0 %v2201_v14, %s4186_s16 }
 0xfb3   :  { %v2210_v5 = vpop.permute.xlu2 %2209 }
 0xfcb   :  { %v2207_v17 = vpop.permute.xlu1 %2206 }
 0xfcc   :  { %v2204_v34 = vpop.permute.xlu0 %2203 }
 0xfcd   :  { %v2212_v18 = vsel %vm431_vm1, %v2201_v14, %v2204_v34  ;;  %v3762_v14 = vld [vmem:[%s6002_s8 + $0x160] sm:$0xf]  ;;  %v4092_v34 = vld [vmem:[%s6002_s8 + $0x164] sm:$0xf] }
 0xfce   :  { %v2213_v9 = vsel %vm433_vm2, %v2212_v18, %v2207_v17  ;;  %v4093_v17 = vld [vmem:[%s6002_s8 + $0x164] sm:$0xf0] }
 0xfcf   :  { %v2214_v35 = vsel %vm435_vm3, %v2213_v9, %v2210_v5  ;;  %v3763_v18 = vor.u32 %v4093_v17, %v3762_v14  ;;  %v3764_v5 = vld [vmem:[%s6002_s8 + $0x168] sm:$0xf0]  ;;  %v4106_v17 = vld [vmem:[%s6004_s10 + $0x150] sm:$0xff] }
 0xfd0   :  { %v2215_v19 = vsub.f32 %v2191_v1, %v2214_v35  ;;  %v3767_v9 = vor.u32 %v4092_v34, %v3764_v5  ;;  %v3754_v35 = vld [vmem:[%s6002_s8 + $0x150] sm:$0xf] }
 0xfd2   :  { %v2216_v20 = vmul.f32 1.442695, %v2215_v19  ;;  %v4091_v19 = vld [vmem:[%s6002_s8 + $0x154] sm:$0xf0] }
 0xfd4   :  { %4136 = vpow2.f32 %v2216_v20  ;;  %v4090_v20 = vld [vmem:[%s6002_s8 + $0x154] sm:$0xf] }
 0xfda   :  { %v4137_v36 = vpop.eup %4136 }
 0xfdb   :  { %2227 = vrot.lane.b32.xlu2 %v4137_v36, %s4188_s18  ;;  %2223 = vrot.lane.b32.xlu1 %v4137_v36, %s4184_s14  ;;  %s2699_s18 = sshll.u32 %s6006_s12, 4  ;;  %s2700_s18 = int_to_ptr.hbm [resolvable:$true] %s2699_s18 }
 0xfdc   :  { %2219 = vrot.lane.b32.xlu0 %v4137_v36, %s4183_s13 }
0x1035   :  { %v2228_v28 = vpop.permute.xlu2 %2227 }
0x104d   :  { %v2224_v23 = vpop.permute.xlu1 %2223 }
0x104e   :  { %v2220_v49 = vpop.permute.xlu0 %2219 }
0x104f   :  { %v2222_v38 = vadd.f32 %v4137_v36, %v2220_v49  ;;  %v3756_v49 = vld [vmem:[%s6002_s8 + $0x158] sm:$0xf0] }
0x1051   :  { %v2226_v25 = vadd.f32 %v2224_v23, %v2222_v38  ;;  %v3759_v38 = vor.u32 %v4090_v20, %v3756_v49  ;;  %v3746_v23 = vld [vmem:[%s6002_s8 + $0x140] sm:$0xf]  ;;  %v4097_v49 = vld [vmem:[%s6004_s10 + $0x108] sm:$0xff] }
0x1053   :  { %v2230_v40 = vadd.f32 %v2228_v28, %v2226_v25  ;;  %v4089_v25 = vld [vmem:[%s6002_s8 + $0x144] sm:$0xf0]  ;;  %v4088_v28 = vld [vmem:[%s6002_s8 + $0x144] sm:$0xf] }
0x1055   :  { %4138 = vrcp.f32 %v2230_v40  ;;  %v3747_v40 = vor.u32 %v4089_v25, %v3746_v23  ;;  %v4155_v23 = vld [vmem:[%s6003_s9] sm:$0x77]  ;;  %s4189_s9 = smov [#allocation2]  }
0x1056   :  { %v2375_v25 = vperm.slane %v4155_v23, 2 }
0x105b   :  { %v4139_v42 = vpop.eup %4138 }
0x105c   :  { %2239 = vrot.lane.b32.xlu2 %v4139_v42, %s4185_s15  ;;  %2236 = vrot.lane.b32.xlu1 %v4139_v42, %s4187_s17 }
0x105d   :  { %2233 = vrot.lane.b32.xlu0 %v4139_v42, %s4186_s16 }
0x10b6   :  { %v2240_v16 = vpop.permute.xlu2 %2239 }
0x10ce   :  { %v2237_v30 = vpop.permute.xlu1 %2236 }
0x10cf   :  { %v2234_v3 = vpop.permute.xlu0 %2233 }
0x10d0   :  { %v2242_v6 = vsel %vm431_vm1, %v4139_v42, %v2234_v3  ;;  %v3748_v42 = vld [vmem:[%s6002_s8 + $0x148] sm:$0xf0]  ;;  %v3738_v3 = vld [vmem:[%s6002_s8 + $0x130] sm:$0xf] }
0x10d1   :  { %v2243_v31 = vsel %vm433_vm2, %v2242_v6, %v2237_v30  ;;  %v3751_v30 = vor.u32 %v4088_v28, %v3748_v42  ;;  %v4087_v6 = vld [vmem:[%s6002_s8 + $0x134] sm:$0xf0]  ;;  %v2376_v28 = vperm.slane %v4155_v23, 6 }
0x10d2   :  { %v2244_v41 = vsel %vm435_vm3, %v2243_v31, %v2240_v16  ;;  %v4086_v16 = vld [vmem:[%s6002_s8 + $0x134] sm:$0xf]  ;;  %v3739_v31 = vor.u32 %v4087_v6, %v3738_v3 }
0x10d3   :  { %v2245_v29 = vmul.f32 %v4137_v36, %v2244_v41  ;;  %v3755_v36 = vor.u32 %v4091_v19, %v3754_v35  ;;  %v3740_v41 = vld [vmem:[%s6002_s8 + $0x138] sm:$0xf0]  ;;  %v2380_v42 = vperm.slane %v2376_v28, 2 }
0x10d5   :  { %v2246_v46 = vpack.c.bf16 %v2245_v29, %v2245_v29  ;;  %v3743_v29 = vor.u32 %v4086_v16, %v3740_v41 }
0x10d7   :  { %3692 = vmatmul.msk.bf16.vlgmr.msra.gmra.mxu1 %vm549_vm4, %v2246_v46  ;;  %3693 = vmatmul.msk.bf16.vlgmr.msrb.gmra.mxu2 %vm549_vm4, %v2246_v46 }
0x10d8   :  { %3694 = vmatmul.msk.bf16.vlgmr.msra.gmra.mxu3 %vm549_vm4, %v2246_v46 }
0x10e7   :  { %3695 = vmatmul.msk.bf16.vlgmr.msrb.gmra.mxu1 %vm549_vm4, %v2246_v46  ;;  %v3730_v46 = vld [vmem:[%s6002_s8 + $0x120] sm:$0xf] }
0x1154   :  { %v2259_v33 = vpop.f32.mrf.mxu1 }
0x1155   :  { %v2302_v43 = vmul.f32 %v2259_v33, %v2133_v63  ;;  %v4085_v33 = vld [vmem:[%s6002_s8 + $0x124] sm:$0xf0] }
0x1157   :  { %v2307_v55 = vadd.f32 %v2306_v50, %v2302_v43  ;;  %v3731_v43 = vor.u32 %v4085_v33, %v3730_v46 }
0x115a   :  { %v2272_v37 = vpop.f32.mrf.mxu2 }
0x115b   :  { %v2285_v48 = vpop.f32.mrf.mxu3  ;;  %v2303_v47 = vmul.f32 %v2272_v37, %v5766_v2  ;;  %v3770_v2 = vld [vmem:[%s6002_s8 + $0x170] sm:$0xf]  ;;  %v4084_v37 = vld [vmem:[%s6002_s8 + $0x124] sm:$0xf] }
0x115c   :  { %v2261_v32 = vpop.f32.mrf.mxu1  ;;  %v2304_v53 = vmul.f32 %v2285_v48, %v5768_v7  ;;  %v4094_v7 = vld [vmem:[%s6002_s8 + $0x174] sm:$0xf]  ;;  %v3771_v0 = vor.u32 %v4095_v26, %v3770_v2  ;;  %v3735_v50 = vor.u32 %v4084_v37, %v3732_v44  ;;  %v3722_v48 = vld [vmem:[%s6002_s8 + $0x110] sm:$0xf] }
0x115d   :  { %v2308_v56 = vadd.f32 %v2307_v55, %v2303_v47  ;;  %v4083_v32 = vld [vmem:[%s6002_s8 + $0x114] sm:$0xf0]  ;;  %v4082_v47 = vld [vmem:[%s6002_s8 + $0x114] sm:$0xf] }
0x115e   :  { %2461 = vmatpush.bf16.msra.mxu0 %v3771_v0  ;;  %v3723_v55 = vor.u32 %v4083_v32, %v3722_v48  ;;  %v4110_v2 = vld [vmem:[%s6004_s10 + $0x170] sm:$0xff]  ;;  %v4109_v0 = vld [vmem:[%s6004_s10 + $0x168] sm:$0xff] }
0x115f   :  { %v2309_v62 = vadd.f32 %v2308_v56, %v2304_v53  ;;  %v3724_v56 = vld [vmem:[%s6002_s8 + $0x118] sm:$0xf0]  ;;  %v3714_v53 = vld [vmem:[%s6002_s8 + $0x100] sm:$0xf] }
0x1162   :  { %v2274_v57 = vpop.f32.mrf.mxu2  ;;  %2462 = vmatpush.bf16.msra.mxu0 %v3763_v18 }
0x1163   :  { %v2287_v54 = vpop.f32.mrf.mxu3  ;;  %v3727_v57 = vor.u32 %v4082_v47, %v3724_v56 }
0x1164   :  { %v2298_v59 = vpop.f32.mrf.mxu1  ;;  %v4081_v54 = vld [vmem:[%s6002_s8 + $0x104] sm:$0xf0] }
0x1165   :  { %v2305_v13 = vmul.f32 %v2298_v59, %v5770_v10  ;;  %v4080_v59 = vld [vmem:[%s6002_s8 + $0x104] sm:$0xf] }
0x1166   :  { %2463 = vmatpush.bf16.msra.mxu0 %v3755_v36 }
0x1167   :  { %v2310_v63 = vadd.f32 %v2309_v62, %v2305_v13  ;;  %v3715_v62 = vor.u32 %v4081_v54, %v3714_v53  ;;  %v3716_v13 = vld [vmem:[%s6002_s8 + $0x108] sm:$0xf0] }
0x1169   :  { %v2311_v61 = vadd.f32 %v2310_v63, %v5742_v58  ;;  %v3772_v58 = vld [vmem:[%s6002_s8 + $0x178] sm:$0xf0]  ;;  %v3719_v63 = vor.u32 %v4080_v59, %v3716_v13 }
0x116a   :  { %v3775_v10 = vor.u32 %v4094_v7, %v3772_v58  ;;  %2464 = vmatpush.bf16.msra.mxu0 %v3747_v40  ;;  %v4108_v58 = vld [vmem:[%s6004_s10 + $0x160] sm:$0xff]  ;;  %v2379_v40 = vperm.slane %v2375_v25, 2 }
0x116b   :  { %v2312_v4 = vpack.c.bf16 %v2311_v61, %v2311_v61 }
0x116c   :  { %v2300_v22 = vpop.f32.mrf.mxu1  ;;  %2474 = vmatpush.bf16.msra.mxu1 %v3775_v10 }
0x116d   :  { %2321 = vmatmul.bf16.vlgmr.msra.gmra.mxu2 %v2312_v4  ;;  %v4111_v4 = vld [vmem:[%s6004_s10 + $0x178] sm:$0xff]  ;;  %v4102_v22 = vld [vmem:[%s6004_s10 + $0x130] sm:$0xff] }
0x116e   :  { %2465 = vmatpush.bf16.msra.mxu0 %v3739_v31  ;;  %2634 = vmatpush.bf16.msra.mxu3 %v4111_v4 }
0x1170   :  { %2475 = vmatpush.bf16.msra.mxu1 %v3767_v9 }
0x1172   :  { %2466 = vmatpush.bf16.msra.mxu0 %v3731_v43  ;;  %2635 = vmatpush.bf16.msra.mxu3 %v4110_v2  ;;  %v4156_v43 = vld [vmem:[%s6005_s11] sm:$0x7]  ;;  %s2697_s11 = sshll.u32 %s4189_s9, 4  ;;  %s2698_s11 = int_to_ptr.vmem [resolvable:$true] %s2697_s11 }
0x1173   :  { %v2524_v44 = vperm.slane %v4156_v43, 2 }
0x1174   :  { %2476 = vmatpush.bf16.msra.mxu1 %v3759_v38  ;;  %v4096_v38 = vld [vmem:[%s6004_s10 + $0x100] sm:$0xff] }
0x1176   :  { %2467 = vmatpush.bf16.msra.mxu0 %v3723_v55  ;;  %2636 = vmatpush.bf16.msra.mxu3 %v4109_v0 }
0x1178   :  { %2477 = vmatpush.bf16.msra.mxu1 %v3751_v30 }
0x117a   :  { %2468 = vmatpush.bf16.msra.mxu0 %v3715_v62  ;;  %2637 = vmatpush.bf16.msra.mxu3 %v4108_v58 }
0x117c   :  { %2478 = vmatpush.bf16.msra.mxu1 %v3743_v29 }
0x117e   :  { %2649 = vmatpush.bf16.msrb.mxu0 %v5370_v51 }
0x1180   :  { %2479 = vmatpush.bf16.msra.mxu1 %v3735_v50 }
0x1182   :  { %2650 = vmatpush.bf16.msrb.mxu0 %v5389_v60 }
0x1184   :  { %2480 = vmatpush.bf16.msra.mxu1 %v3727_v57 }
0x1186   :  { %2651 = vmatpush.bf16.msrb.mxu0 %v5402_v8 }
0x1188   :  { %2481 = vmatpush.bf16.msra.mxu1 %v3719_v63 }
0x118a   :  { %2652 = vmatpush.bf16.msrb.mxu0 %v5415_v15 }
0x118c   :  { %2665 = vmatpush.bf16.msrb.mxu1 %v5370_v51  ;;  %v4101_v51 = vld [vmem:[%s6004_s10 + $0x128] sm:$0xff] }
0x118e   :  { %2653 = vmatpush.bf16.msrb.mxu0 %v5428_v45 }
0x1190   :  { %2666 = vmatpush.bf16.msrb.mxu1 %v5389_v60  ;;  %v4100_v60 = vld [vmem:[%s6004_s10 + $0x120] sm:$0xff] }
0x1192   :  { %2654 = vmatpush.bf16.msrb.mxu0 %v5441_v21 }
0x1194   :  { %2667 = vmatpush.bf16.msrb.mxu1 %v5402_v8  ;;  %v4099_v8 = vld [vmem:[%s6004_s10 + $0x118] sm:$0xff] }
0x1196   :  { %2655 = vmatpush.bf16.msrb.mxu0 %v5449_v24 }
0x1198   :  { %2668 = vmatpush.bf16.msrb.mxu1 %v5415_v15  ;;  %v4098_v15 = vld [vmem:[%s6004_s10 + $0x110] sm:$0xff] }
0x119a   :  { %2656 = vmatpush.bf16.msrb.mxu0 %v5460_v39 }
0x119c   :  { %2669 = vmatpush.bf16.msrb.mxu1 %v5428_v45  ;;  %v5951_v45 = vld [vmem:[%s6000_s6] sm:$0x7] }
0x119d   :  { %v2353_v5 = vperm.slane %v5951_v45, 2 }
0x11a0   :  { %2670 = vmatpush.bf16.msrb.mxu1 %v5441_v21  ;;  %v5959_v21 = vld [vmem:[%s6001_s7] sm:$0x7] }
0x11a1   :  { %v2355_v19 = vperm.slane %v5959_v21, 2 }
0x11a4   :  { %2671 = vmatpush.bf16.msrb.mxu1 %v5449_v24  ;;  %v4105_v24 = vld [vmem:[%s6004_s10 + $0x148] sm:$0xff] }
0x11a8   :  { %2672 = vmatpush.bf16.msrb.mxu1 %v5460_v39  ;;  %v4104_v39 = vld [vmem:[%s6004_s10 + $0x140] sm:$0xff] }
0x11f0   :  { %v2322_v1 = vpop.f32.mrf.mxu2 }
0x11f1   :  { %v5812_v52 = vsub.f32 %v2311_v61, %v2322_v1  ;;  %v4103_v61 = vld [vmem:[%s6004_s10 + $0x138] sm:$0xff] }
0x11f2   :  { %2621 = vmatpush.bf16.msrb.mxu2 %v4103_v61 }
0x11f3   :  { %v2327_v11 = vmul.f32 %v5812_v52, %v5812_v52 }
0x11f5   :  { %v2328_v27 = vpack.c.bf16 %v2327_v11, %v2327_v11 }
0x11f6   :  { %2622 = vmatpush.bf16.msrb.mxu2 %v4102_v22 }
0x11f7   :  { %2337 = vmatmul.bf16.vlgmr.msrb.gmra.mxu3 %v2328_v27  ;;  %v4107_v27 = vld [vmem:[%s6004_s10 + $0x158] sm:$0xff] }
0x11f8   :  { %v2324_v12 = vpop.f32.mrf.mxu2  ;;  %2638 = vmatpush.bf16.msra.mxu3 %v4107_v27 }
0x11fa   :  { %2623 = vmatpush.bf16.msrb.mxu2 %v4101_v51 }
0x11fc   :  { %2639 = vmatpush.bf16.msra.mxu3 %v4106_v17 }
0x11fe   :  { %2624 = vmatpush.bf16.msrb.mxu2 %v4100_v60 }
0x1200   :  { %2640 = vmatpush.bf16.msra.mxu3 %v4105_v24 }
0x1202   :  { %2625 = vmatpush.bf16.msrb.mxu2 %v4099_v8 }
0x1204   :  { %2641 = vmatpush.bf16.msra.mxu3 %v4104_v39 }
0x1206   :  { %2626 = vmatpush.bf16.msrb.mxu2 %v4098_v15 }
0x120a   :  { %2627 = vmatpush.bf16.msrb.mxu2 %v4097_v49 }
0x120e   :  { %2628 = vmatpush.bf16.msrb.mxu2 %v4096_v38 }
0x127a   :  { %v2338_v26 = vpop.f32.mrf.mxu3 }
0x127b   :  { %v2339_v7 = vadd.f32 1e-05, %v2338_v26 }
0x127d   :  { %4140 = vrsqrt.f32 %v2339_v7  ;;  %vm2348_vm2 = vweird.f32 %v2339_v7 }
0x1282   :  { %v2340_v10 = vpop.f32.mrf.mxu3 }
0x1283   :  { %v4141_v1 = vpop.eup %4140 }
0x1284   :  { %v2343_v11 = vmul.f32 %v4141_v1, %v2339_v7  ;;  %vm2349_vm1 = vweird.f32 %v4141_v1 }
0x1285   :  { %vm2350_vm3 = vmor %vm2348_vm2, %vm2349_vm1 }
0x1286   :  { %v2344_v12 = vmul.f32 %v4141_v1, %v2343_v11 }
0x1288   :  { %v2345_v14 = vmul.f32 0.5, %v2344_v12 }
0x128a   :  { %v2346_v34 = vsub.f32 1.5, %v2345_v14 }
0x128c   :  { %v2347_v18 = vmul.f32 %v4141_v1, %v2346_v34 }
0x128e   :  { %v2351_v9 = vsel %vm2350_vm3, %v4141_v1, %v2347_v18 }
0x128f   :  { %v2352_v35 = vmul.f32 %v2351_v9, %v5812_v52 }
0x1291   :  { %v2354_v20 = vmul.f32 %v2353_v5, %v2352_v35 }
0x1293   :  { %v2356_v36 = vadd.f32 %v2355_v19, %v2354_v20 }
0x1295   :  { %v2374_v52 = vpack.c.bf16 %v2356_v36, %v2356_v36 }
0x1297   :  { %2469 = vmatmul.bf16.vlgmr.msra.gmra.mxu0 %v2374_v52  ;;  %2482 = vmatmul.bf16.vlgmr.msra.gmra.mxu1 %v2374_v52 }
0x1314   :  { %v2470_v30 = vpop.f32.mrf.mxu0  ;;  %v2483_v3 = vpop.f32.mrf.mxu1 }
0x1315   :  { %v2471_v6 = vadd.f32 %v2470_v30, %v2379_v40  ;;  %v2484_v16 = vadd.f32 %v2483_v3, %v2380_v42 }
0x1317   :  { %v2487_v31 = vmax.f32 %v2471_v6, 0.0  ;;  %v2488_v41 = vmax.f32 %v2484_v16, 0.0 }
0x1319   :  { %v2522_v29 = vpack.c.bf16 %v2487_v31, %v2487_v31  ;;  %v2523_v46 = vpack.c.bf16 %v2488_v41, %v2488_v41 }
0x131b   :  { %2629 = vmatmul.bf16.vlgmr.msrb.gmra.mxu2 %v2522_v29  ;;  %2642 = vmatmul.bf16.vlgmr.msra.gmra.mxu3 %v2523_v46 }
0x131c   :  { %v2472_v33 = vpop.f32.mrf.mxu0  ;;  %v2485_v37 = vpop.f32.mrf.mxu1 }
0x139e   :  { %v2630_v50 = vpop.f32.mrf.mxu2  ;;  %v2643_v48 = vpop.f32.mrf.mxu3 }
0x139f   :  { %v2631_v32 = vadd.f32 %v2630_v50, %v2524_v44 }
0x13a1   :  { %v2644_v47 = vadd.f32 %v2643_v48, %v2631_v32 }
0x13a3   :  { %v2647_v55 = vadd.f32 %v2644_v47, %v2356_v36 }
0x13a5   :  { %v2648_v56 = vpack.c.bf16 %v2647_v55, %v2647_v55 }
0x13a6   :  { %v2632_v57 = vpop.f32.mrf.mxu2  ;;  %v2645_v53 = vpop.f32.mrf.mxu3 }
0x13a7   :  { %2657 = vmatmul.bf16.vlgmr.msrb.gmra.mxu0 %v2648_v56 }
0x1424   :  { %v2658_v54 = vpop.f32.mrf.mxu0 }
0x1425   :  { %v2662_v59 = vsub.f32 %v2647_v55, %v2658_v54 }
0x1427   :  { %v2663_v62 = vmul.f32 %v2662_v59, %v2662_v59 }
0x1429   :  { %v2664_v13 = vpack.c.bf16 %v2663_v62, %v2663_v62 }
0x142b   :  { %2673 = vmatmul.bf16.vlgmr.msrb.gmra.mxu1 %v2664_v13 }
0x142c   :  { %v2660_v63 = vpop.f32.mrf.mxu0 }
0x14a8   :  { %v2674_v61 = vpop.f32.mrf.mxu1 }
0x14a9   :  { %v2675_v4 = vadd.f32 1e-05, %v2674_v61 }
0x14ab   :  { %4142 = vrsqrt.f32 %v2675_v4  ;;  %vm2684_vm7 = vweird.f32 %v2675_v4 }
0x14b0   :  { %v2676_v22 = vpop.f32.mrf.mxu1 }
0x14b1   :  { %v4143_v2 = vpop.eup %4142 }
0x14b2   :  { %v2679_v26 = vmul.f32 %v4143_v2, %v2675_v4  ;;  %vm2685_vm4 = vweird.f32 %v4143_v2 }
0x14b3   :  { %vm2686_vm8 = vmor %vm2684_vm7, %vm2685_vm4 }
0x14b4   :  { %v2680_v7 = vmul.f32 %v4143_v2, %v2679_v26 }
0x14b6   :  { %v2681_v51 = vmul.f32 0.5, %v2680_v7 }
0x14b8   :  { %v2682_v0 = vsub.f32 1.5, %v2681_v51 }
0x14ba   :  { %v2683_v60 = vmul.f32 %v4143_v2, %v2682_v0 }
0x14bc   :  { %v2687_v58 = vsel %vm2686_vm8, %v4143_v2, %v2683_v60 }
0x14bd   :  { %v2688_v10 = vmul.f32 %v2687_v58, %v2662_v59 }
0x14bf   :  { %v2689_v1 = vmul.f32 %v2688_v10, %v2353_v5 }
0x14c1   :  { %v2690_v11 = vadd.f32 %v2689_v1, %v2355_v19 }
0x14c3   :  { %2691 = vst [vmem:[#allocation2] sm:$0xff] %v2690_v11 }
0x14c4   :  { %2702 = dma.vmem_to_hbm [thread:$0]  %s2698_s11, 128, %s2700_s18, [#allocation3]  }
0x14c5   :  { %4181 = dma.done.wait [#allocation3], 128  }
0x14c6   :  { %4182 = vsyncadd [#allocation3], 4294967168 }
0x14c7   :  { %2707 = vsyncpa [#allocation3], 1 }

</bundles_post_ra>
